<compile_context>
chip_gen: v6e
topology: v6e:2x2x1
jax: 0.10.0
libtpu: 0.0.40
codegen_flags: <defaults>
</compile_context>

<pallas_src>
import math
from functools import partial

import jax
import jax.numpy as jnp
from jax.experimental import pallas as pl
from jax.experimental.pallas import tpu as pltpu

LN_EPS = 1e-6  # BERT-pytorch LayerNorm eps


def _layer_norm_f32(v, g_ref, b_ref):
    """LayerNorm over the last dim; v is f32, gamma/beta loaded once."""
    mu = jnp.mean(v, axis=-1, keepdims=True)
    d = v - mu
    var = jnp.mean(d * d, axis=-1, keepdims=True)
    return (d * jax.lax.rsqrt(var + LN_EPS) * g_ref[...].astype(jnp.float32)
            + b_ref[...].astype(jnp.float32))


def _permute01(x):
    """(a, b, d) -> (b, a, d); lane dim untouched.  One relayout instead of
    per-head masked lane-slice copies."""
    if hasattr(pltpu, "einshape"):
        return pltpu.einshape("abd->bad", x)
    return jnp.transpose(x, (1, 0, 2))  # TODO(synk): fallback for older jax


def _transformer_block_kernel(
    xq_ref,                                  # (1, TQ, D) query slab (per q-block)
    xs_ref,                                  # (1, S, D)  full sequence (K/V source)
    wq_ref, bq_ref, wk_ref, bk_ref, wv_ref, bv_ref, wo_ref, bo_ref,
    g1_ref, be1_ref,
    w1_ref, bf1_ref, w2_ref, bf2_ref,
    g2_ref, be2_ref,
    *rest,                                   # outputs then scratch
    num_heads, emit_attn,
):
    if emit_attn:
        out_ref, attn_ref, k_buf, v_buf = rest
    else:
        out_ref, k_buf, v_buf = rest
        attn_ref = None

    qi = pl.program_id(1)
    S, D = xs_ref.shape[1], xs_ref.shape[2]
    TQ = xq_ref.shape[1]
    H = num_heads
    dk = D // H
    cdt = xq_ref.dtype                       # MXU operand dtype (e.g. bf16)
    scale = 1.0 / math.sqrt(dk)

    # ---- K / V projections for the whole sequence, cached across q-blocks ----
    # Correct only because the qi grid axis is 'arbitrary' (never 'parallel').
    @pl.when(qi == 0)
    def _compute_kv():
        xf = xs_ref[0]                                               # (S, D)
        k_full = (jnp.dot(xf, wk_ref[...], preferred_element_type=jnp.float32)
                  + bk_ref[...].astype(jnp.float32)).astype(cdt)
        v_full = (jnp.dot(xf, wv_ref[...], preferred_element_type=jnp.float32)
                  + bv_ref[...].astype(jnp.float32)).astype(cdt)
        # single reshape + relayout to head-major instead of H lane-slice stores
        k_buf[...] = _permute01(k_full.reshape(S, H, dk))            # (H, S, dk)
        v_buf[...] = _permute01(v_full.reshape(S, H, dk))

    # ---- query block ----
    xq = xq_ref[0]                                                   # (TQ, D)
    xq_f32 = xq.astype(jnp.float32)

    q = (jnp.dot(xq, wq_ref[...], preferred_element_type=jnp.float32)
         + bq_ref[...].astype(jnp.float32)) * scale                  # fold 1/sqrt(dk)
    qh = _permute01(q.astype(cdt).reshape(TQ, H, dk))                # (H, TQ, dk)

    # batched attention over heads: leading-batch einsums, RHS contracted on
    # its last axis feeds the MXU directly (no explicit K^T transposes).
    scores = jnp.einsum('hqd,hkd->hqk', qh, k_buf[...],
                        preferred_element_type=jnp.float32)          # (H, TQ, S)
    m = jnp.max(scores, axis=-1, keepdims=True)
    p = jnp.exp(scores - m)
    denom = jnp.sum(p, axis=-1, keepdims=True)
    p = p * pl.reciprocal(denom, approx=True)                        # softmax
    if emit_attn:
        attn_ref[0] = p.astype(attn_ref.dtype)

    ctx = jnp.einsum('hqk,hkd->hqd', p.astype(cdt), v_buf[...],
                     preferred_element_type=jnp.float32)             # (H, TQ, dk)
    # merge heads with one relayout + reshape, then a single K=D projection
    ctx = _permute01(ctx.astype(cdt)).reshape(TQ, D)                 # (TQ, D)
    attn_out = (jnp.dot(ctx, wo_ref[...], preferred_element_type=jnp.float32)
                + bo_ref[...].astype(jnp.float32))                   # (TQ, D) f32

    x1 = _layer_norm_f32(xq_f32 + attn_out, g1_ref, be1_ref)
    x1_c = x1.astype(cdt)

    # ---- position-wise feed-forward ----
    # TODO(synk): for BERT-large on v7x (64 MiB VMEM) tile w1/w2 over a d_ff
    # axis (emit_pipeline over chunks) instead of keeping them fully resident.
    h1 = (jnp.dot(x1_c, w1_ref[...], preferred_element_type=jnp.float32)
          + bf1_ref[...].astype(jnp.float32))
    h1 = jax.nn.gelu(h1, approximate=True).astype(cdt)               # (TQ, DFF)
    ff = (jnp.dot(h1, w2_ref[...], preferred_element_type=jnp.float32)
          + bf2_ref[...].astype(jnp.float32))

    x2 = _layer_norm_f32(x1 + ff, g2_ref, be2_ref)
    out_ref[0] = x2.astype(out_ref.dtype)


_PARAM_ORDER = ("wq", "bq", "wk", "bk", "wv", "bv", "wo", "bo",
                "g1", "be1", "w1", "bf1", "w2", "bf2", "g2", "be2")

# Flipped to False at runtime if this JAX build rejects pl.Buffered(1).
_SINGLE_BUFFER_WEIGHTS = True


def _vmem_capacity_bytes():
    try:
        return int(pltpu.get_tpu_info().vmem_capacity_bytes)
    except Exception:
        return 64 << 20  # conservative (v7x-sized) default


def _pick_q_block(S, D, H, d_ff, itm, weight_bytes, emit_attn, vmem_cap):
    """Largest MXU-friendly TQ whose estimated working set fits in VMEM."""
    budget = max(vmem_cap - (8 << 20), 16 << 20)
    candidates = [c for c in (256, 128, 64, 32, 16, 8) if S % c == 0]
    if not candidates:
        return S
    for tq in candidates:
        est = (weight_bytes                               # single-buffered weights
               + S * D * itm                              # full-seq x block
               + 2 * tq * D * itm                         # query slab (2x buffered)
               + 2 * tq * D * itm                         # out block (2x buffered)
               + (2 * H * tq * S * itm if emit_attn else 0)
               + 2 * S * D * itm                          # K/V head-major scratch
               + 3 * H * tq * S * 4                       # f32 scores/exp temporaries
               + 2 * tq * d_ff * 4)                       # f32 FFN hidden
        if est <= budget:
            return tq
    return candidates[-1]


def transformer_block(x, params, num_heads, return_attn=True):
    global _SINGLE_BUFFER_WEIGHTS
    B, S, D = x.shape
    dk = D // num_heads
    weights = [params[name] for name in _PARAM_ORDER]
    d_ff = params["w1"].shape[1]
    cdt = x.dtype
    itm = jnp.dtype(cdt).itemsize
    vmem_cap = _vmem_capacity_bytes()

    def nbytes(a):
        return int(a.size) * jnp.dtype(a.dtype).itemsize

    weight_bytes = sum(nbytes(w) for w in weights)
    TQ = _pick_q_block(S, D, num_heads, d_ff, itm, weight_bytes,
                       return_attn, vmem_cap)
    n_q = max(S // TQ, 1)

    def run(single_buffer):
        use_sb = single_buffer and hasattr(pl, "Buffered")
        wkw = {"pipeline_mode": pl.Buffered(1)} if use_sb else {}

        def wspec(shape):
            ndim = len(shape)
            # Replicated across the grid (constant index_map => fetched once);
            # single-buffered so it occupies 1x, not 2x, VMEM.
            return pl.BlockSpec(shape, lambda b, qi, _n=ndim: (0,) * _n, **wkw)

        in_specs = [
            # per-q-block query slab, pipelined/double-buffered
            pl.BlockSpec((1, TQ, D), lambda b, qi: (b, qi, 0)),
            # full sequence, consumed only at qi == 0 for the K/V projection
            pl.BlockSpec((1, S, D), lambda b, qi: (b, 0, 0)),
        ]
        in_specs += [wspec(w.shape) for w in weights]

        out_specs = [pl.BlockSpec((1, TQ, D), lambda b, qi: (b, qi, 0))]
        out_shape = [jax.ShapeDtypeStruct((B, S, D), cdt)]
        if return_attn:
            out_specs.append(
                pl.BlockSpec((1, num_heads, TQ, S), lambda b, qi: (b, 0, qi, 0)))
            # attention probs in the input dtype (not f32) to halve writeback
            out_shape.append(jax.ShapeDtypeStruct((B, num_heads, S, S), cdt))

        scratch_shapes = [
            pltpu.VMEM((num_heads, S, dk), cdt),   # K, head-major, cached across q-blocks
            pltpu.VMEM((num_heads, S, dk), cdt),   # V
        ]

        # ---- VMEM budget (capacity-aware) and cost estimate ----
        wmul = 1 if use_sb else 2
        est = (wmul * weight_bytes
               + 2 * S * D * itm                   # full-seq x block (2x buffered)
               + 2 * TQ * D * itm                  # query slab
               + 2 * TQ * D * itm                  # out block
               + (2 * num_heads * TQ * S * itm if return_attn else 0)
               + 2 * S * D * itm                   # K/V scratch
               + 3 * num_heads * TQ * S * 4        # f32 scores/exp temporaries
               + 2 * TQ * d_ff * 4)                # f32 FFN hidden
        vmem_limit = int(est * 1.25) + (4 << 20)
        vmem_limit = max(vmem_limit, 32 << 20)
        vmem_limit = min(vmem_limit, vmem_cap - (8 << 20))
        vmem_limit = max(vmem_limit, 16 << 20)

        flops = 2 * B * S * (4 * D * D + 2 * S * D + 2 * D * d_ff)
        transcendentals = B * S * (num_heads * S + d_ff)
        bytes_accessed = (2 * B * S * D * itm + weight_bytes
                          + (B * num_heads * S * S * itm if return_attn else 0))

        outs = pl.pallas_call(
            partial(_transformer_block_kernel, num_heads=num_heads,
                    emit_attn=return_attn),
            grid=(B, n_q),
            in_specs=in_specs,
            out_specs=out_specs,
            out_shape=out_shape,
            scratch_shapes=scratch_shapes,
            compiler_params=pltpu.CompilerParams(
                # qi axis must stay 'arbitrary': K/V scratch is reused across it.
                dimension_semantics=("parallel", "arbitrary"),
                vmem_limit_bytes=int(vmem_limit)),
            cost_estimate=pl.CostEstimate(
                flops=flops, transcendentals=transcendentals,
                bytes_accessed=bytes_accessed),
        )(x, x, *weights)

        if return_attn:
            out, attn = outs
            return out, attn
        out = outs[0] if isinstance(outs, (list, tuple)) else outs
        return out, None

    if _SINGLE_BUFFER_WEIGHTS and hasattr(pl, "Buffered"):
        try:
            return run(True)
        except Exception:
            # This build rejects single-buffered BlockSpecs; use defaults.
            _SINGLE_BUFFER_WEIGHTS = False
    return run(False)


def bert_forward(inputs, layer_params, num_heads, return_attn=True):
    """from_other=True path: inputs are pre-embedded [B, S, D], mask=None."""
    embedded = inputs
    outputs = embedded
    attns_list = []
    for p in layer_params:
        outputs, attns = transformer_block(outputs, p, num_heads,
                                           return_attn=return_attn)
        attns_list.append(attns)
    # self.dropout(outputs): identity in eval mode
    return outputs, attns_list, embedded


def init_layer_params(key, d_model, d_ff, dtype=jnp.bfloat16):
    ks = jax.random.split(key, 12)

    def n(k, shape, s=0.02):
        return (jax.random.normal(k, shape, jnp.float32) * s).astype(dtype)

    return dict(
        wq=n(ks[0], (d_model, d_model)), bq=n(ks[1], (1, d_model)),
        wk=n(ks[2], (d_model, d_model)), bk=n(ks[3], (1, d_model)),
        wv=n(ks[4], (d_model, d_model)), bv=n(ks[5], (1, d_model)),
        wo=n(ks[6], (d_model, d_model)), bo=n(ks[7], (1, d_model)),
        g1=jnp.ones((1, d_model), jnp.float32),
        be1=jnp.zeros((1, d_model), jnp.float32),
        w1=n(ks[8], (d_model, d_ff)), bf1=n(ks[9], (1, d_ff)),
        w2=n(ks[10], (d_ff, d_model)), bf2=n(ks[11], (1, d_model)),
        g2=jnp.ones((1, d_model), jnp.float32),
        be2=jnp.zeros((1, d_model), jnp.float32),
    )


if __name__ == "__main__":
    # small config: batch=2, seq=8, d_model=32, heads=4, layers=2, ff=4*d_model
    B, S, D, H, L = 2, 8, 32, 4, 2
    D_FF = 4 * D

    key = jax.random.PRNGKey(0)
    key, k_in = jax.random.split(key)
    # bf16 activations/weights: MXU-native operands, f32 accumulation in-kernel.
    inputs = jax.random.normal(k_in, (B, S, D), jnp.float32).astype(jnp.bfloat16)

    layer_keys = jax.random.split(key, L)
    layer_params = [init_layer_params(layer_keys[i], D, D_FF, jnp.bfloat16)
                    for i in range(L)]

    outputs, attns_list, embedded = bert_forward(inputs, layer_params, H)
    jax.block_until_ready(outputs)
    for a in attns_list:
        jax.block_until_ready(a)
    jax.block_until_ready(embedded)

    assert outputs.shape == (B, S, D)
    assert len(attns_list) == L
    assert attns_list[0].shape == (B, H, S, S)
    assert embedded.shape == (B, S, D)

    # attention maps not needed -> skip the B*H*S^2 HBM writeback entirely
    outputs_na, attns_na, _ = bert_forward(inputs, layer_params, H,
                                           return_attn=False)
    jax.block_until_ready(outputs_na)
    assert all(a is None for a in attns_na)
    assert jnp.allclose(outputs_na.astype(jnp.float32),
                        outputs.astype(jnp.float32), atol=5e-2)

    print("KERNEL_OK")
</pallas_src>

<mosaic_0001>
module attributes {stable_mosaic.version = 11 : i64} {
  func.func @_transformer_block_kernel(%arg0: i32, %arg1: i32, %arg2: memref<1x8x32xbf16, #tpu.memory_space<vmem>>, %arg3: memref<1x8x32xbf16, #tpu.memory_space<vmem>>, %arg4: memref<32x32xbf16, #tpu.memory_space<vmem>>, %arg5: memref<1x32xbf16, #tpu.memory_space<vmem>>, %arg6: memref<32x32xbf16, #tpu.memory_space<vmem>>, %arg7: memref<1x32xbf16, #tpu.memory_space<vmem>>, %arg8: memref<32x32xbf16, #tpu.memory_space<vmem>>, %arg9: memref<1x32xbf16, #tpu.memory_space<vmem>>, %arg10: memref<32x32xbf16, #tpu.memory_space<vmem>>, %arg11: memref<1x32xbf16, #tpu.memory_space<vmem>>, %arg12: memref<1x32xf32, #tpu.memory_space<vmem>>, %arg13: memref<1x32xf32, #tpu.memory_space<vmem>>, %arg14: memref<32x128xbf16, #tpu.memory_space<vmem>>, %arg15: memref<1x128xbf16, #tpu.memory_space<vmem>>, %arg16: memref<128x32xbf16, #tpu.memory_space<vmem>>, %arg17: memref<1x32xbf16, #tpu.memory_space<vmem>>, %arg18: memref<1x32xf32, #tpu.memory_space<vmem>>, %arg19: memref<1x32xf32, #tpu.memory_space<vmem>>, %arg20: memref<1x8x32xbf16, #tpu.memory_space<vmem>>, %arg21: memref<1x4x8x8xbf16, #tpu.memory_space<vmem>>, %arg22: memref<4x8x8xbf16, #tpu.memory_space<vmem>>, %arg23: memref<4x8x8xbf16, #tpu.memory_space<vmem>>) attributes {dimension_semantics = [#tpu.dimension_semantics<parallel>, #tpu.dimension_semantics<arbitrary>], iteration_bounds = array<i64: 2, 1>, scalar_prefetch = 0 : i64, scratch_operands = 2 : i64, tpu.core_type = #tpu.core_type<tc>, window_params = [{transform_indices = @transform_0, window_bounds = array<i64: 1, 8, 32>}, {transform_indices = @transform_1, window_bounds = array<i64: 1, 8, 32>}, {pipeline_mode = #tpu.pipeline_mode<synchronous>, transform_indices = @transform_2, window_bounds = array<i64: 32, 32>}, {pipeline_mode = #tpu.pipeline_mode<synchronous>, transform_indices = @transform_3, window_bounds = array<i64: 1, 32>}, {pipeline_mode = #tpu.pipeline_mode<synchronous>, transform_indices = @transform_4, window_bounds = array<i64: 32, 32>}, {pipeline_mode = #tpu.pipeline_mode<synchronous>, transform_indices = @transform_5, window_bounds = array<i64: 1, 32>}, {pipeline_mode = #tpu.pipeline_mode<synchronous>, transform_indices = @transform_6, window_bounds = array<i64: 32, 32>}, {pipeline_mode = #tpu.pipeline_mode<synchronous>, transform_indices = @transform_7, window_bounds = array<i64: 1, 32>}, {pipeline_mode = #tpu.pipeline_mode<synchronous>, transform_indices = @transform_8, window_bounds = array<i64: 32, 32>}, {pipeline_mode = #tpu.pipeline_mode<synchronous>, transform_indices = @transform_9, window_bounds = array<i64: 1, 32>}, {pipeline_mode = #tpu.pipeline_mode<synchronous>, transform_indices = @transform_10, window_bounds = array<i64: 1, 32>}, {pipeline_mode = #tpu.pipeline_mode<synchronous>, transform_indices = @transform_11, window_bounds = array<i64: 1, 32>}, {pipeline_mode = #tpu.pipeline_mode<synchronous>, transform_indices = @transform_12, window_bounds = array<i64: 32, 128>}, {pipeline_mode = #tpu.pipeline_mode<synchronous>, transform_indices = @transform_13, window_bounds = array<i64: 1, 128>}, {pipeline_mode = #tpu.pipeline_mode<synchronous>, transform_indices = @transform_14, window_bounds = array<i64: 128, 32>}, {pipeline_mode = #tpu.pipeline_mode<synchronous>, transform_indices = @transform_15, window_bounds = array<i64: 1, 32>}, {pipeline_mode = #tpu.pipeline_mode<synchronous>, transform_indices = @transform_16, window_bounds = array<i64: 1, 32>}, {pipeline_mode = #tpu.pipeline_mode<synchronous>, transform_indices = @transform_17, window_bounds = array<i64: 1, 32>}, {transform_indices = @transform_18, window_bounds = array<i64: 1, 8, 32>}, {transform_indices = @transform_19, window_bounds = array<i64: 1, 4, 8, 8>}]} {
    %c0_i32 = arith.constant 0 : i32
    %0 = arith.cmpi eq, %arg1, %c0_i32 : i32
    %1 = arith.extui %0 : i1 to i32
    %c0_i32_0 = arith.constant 0 : i32
    %2 = arith.cmpi ne, %1, %c0_i32_0 : i32
    scf.if %2 {
      %c0_62 = arith.constant 0 : index
      %c0_63 = arith.constant 0 : index
      %c0_64 = arith.constant 0 : index
      %122 = vector.load %arg3[%c0_62, %c0_63, %c0_64] : memref<1x8x32xbf16, #tpu.memory_space<vmem>>, vector<1x8x32xbf16>
      %123 = vector.shape_cast %122 : vector<1x8x32xbf16> to vector<8x32xbf16>
      %c0_65 = arith.constant 0 : index
      %c0_66 = arith.constant 0 : index
      %124 = vector.load %arg6[%c0_65, %c0_66] : memref<32x32xbf16, #tpu.memory_space<vmem>>, vector<32x32xbf16>
      %cst_67 = arith.constant dense<0.000000e+00> : vector<8x32xf32>
      %125 = tpu.matmul %123, %124, %cst_67 {dimension_numbers = #tpu.dot_dimension_numbers<[1], [0], [0], [1], [0, 0, 1, 1], [], []>} : vector<8x32xbf16>, vector<32x32xbf16>, vector<8x32xf32> -> vector<8x32xf32>
      %c0_68 = arith.constant 0 : index
      %c0_69 = arith.constant 0 : index
      %126 = vector.load %arg7[%c0_68, %c0_69] : memref<1x32xbf16, #tpu.memory_space<vmem>>, vector<1x32xbf16>
      %127 = arith.extf %126 : vector<1x32xbf16> to vector<1x32xf32>
      %128 = vector.broadcast %127 : vector<1x32xf32> to vector<8x32xf32>
      %129 = arith.addf %125, %128 : vector<8x32xf32>
      %130 = arith.truncf %129 : vector<8x32xf32> to vector<8x32xbf16>
      %c0_70 = arith.constant 0 : index
      %c0_71 = arith.constant 0 : index
      %131 = vector.load %arg8[%c0_70, %c0_71] : memref<32x32xbf16, #tpu.memory_space<vmem>>, vector<32x32xbf16>
      %cst_72 = arith.constant dense<0.000000e+00> : vector<8x32xf32>
      %132 = tpu.matmul %123, %131, %cst_72 {dimension_numbers = #tpu.dot_dimension_numbers<[1], [0], [0], [1], [0, 0, 1, 1], [], []>} : vector<8x32xbf16>, vector<32x32xbf16>, vector<8x32xf32> -> vector<8x32xf32>
      %c0_73 = arith.constant 0 : index
      %c0_74 = arith.constant 0 : index
      %133 = vector.load %arg9[%c0_73, %c0_74] : memref<1x32xbf16, #tpu.memory_space<vmem>>, vector<1x32xbf16>
      %134 = arith.extf %133 : vector<1x32xbf16> to vector<1x32xf32>
      %135 = vector.broadcast %134 : vector<1x32xf32> to vector<8x32xf32>
      %136 = arith.addf %132, %135 : vector<8x32xf32>
      %137 = arith.truncf %136 : vector<8x32xf32> to vector<8x32xbf16>
      %138 = vector.shape_cast %130 : vector<8x32xbf16> to vector<8x4x8xbf16>
      %139 = tpu.transpose %138, [1, 0, 2] : vector<8x4x8xbf16> -> vector<4x8x8xbf16>
      %c0_75 = arith.constant 0 : index
      %c0_76 = arith.constant 0 : index
      %c0_77 = arith.constant 0 : index
      %140 = vector.load %arg22[%c0_75, %c0_76, %c0_77] : memref<4x8x8xbf16, #tpu.memory_space<vmem>>, vector<4x8x8xbf16>
      tpu.vector_store %arg22[%c0_75, %c0_76, %c0_77], %139 {strides = array<i32>} : memref<4x8x8xbf16, #tpu.memory_space<vmem>>, vector<4x8x8xbf16>,
      %141 = vector.shape_cast %137 : vector<8x32xbf16> to vector<8x4x8xbf16>
      %142 = tpu.transpose %141, [1, 0, 2] : vector<8x4x8xbf16> -> vector<4x8x8xbf16>
      %c0_78 = arith.constant 0 : index
      %c0_79 = arith.constant 0 : index
      %c0_80 = arith.constant 0 : index
      %143 = vector.load %arg23[%c0_78, %c0_79, %c0_80] : memref<4x8x8xbf16, #tpu.memory_space<vmem>>, vector<4x8x8xbf16>
      tpu.vector_store %arg23[%c0_78, %c0_79, %c0_80], %142 {strides = array<i32>} : memref<4x8x8xbf16, #tpu.memory_space<vmem>>, vector<4x8x8xbf16>,
    } else {
    }
    %c0 = arith.constant 0 : index
    %c0_1 = arith.constant 0 : index
    %c0_2 = arith.constant 0 : index
    %3 = vector.load %arg2[%c0, %c0_1, %c0_2] : memref<1x8x32xbf16, #tpu.memory_space<vmem>>, vector<1x8x32xbf16>
    %4 = vector.shape_cast %3 : vector<1x8x32xbf16> to vector<8x32xbf16>
    %5 = arith.extf %4 : vector<8x32xbf16> to vector<8x32xf32>
    %c0_3 = arith.constant 0 : index
    %c0_4 = arith.constant 0 : index
    %6 = vector.load %arg4[%c0_3, %c0_4] : memref<32x32xbf16, #tpu.memory_space<vmem>>, vector<32x32xbf16>
    %cst = arith.constant dense<0.000000e+00> : vector<8x32xf32>
    %7 = tpu.matmul %4, %6, %cst {dimension_numbers = #tpu.dot_dimension_numbers<[1], [0], [0], [1], [0, 0, 1, 1], [], []>} : vector<8x32xbf16>, vector<32x32xbf16>, vector<8x32xf32> -> vector<8x32xf32>
    %c0_5 = arith.constant 0 : index
    %c0_6 = arith.constant 0 : index
    %8 = vector.load %arg5[%c0_5, %c0_6] : memref<1x32xbf16, #tpu.memory_space<vmem>>, vector<1x32xbf16>
    %9 = arith.extf %8 : vector<1x32xbf16> to vector<1x32xf32>
    %10 = vector.broadcast %9 : vector<1x32xf32> to vector<8x32xf32>
    %11 = arith.addf %7, %10 : vector<8x32xf32>
    %cst_7 = arith.constant 0.353553385 : f32
    %12 = vector.broadcast %cst_7 : f32 to vector<8x32xf32>
    %13 = arith.mulf %11, %12 : vector<8x32xf32>
    %14 = arith.truncf %13 : vector<8x32xf32> to vector<8x32xbf16>
    %15 = vector.shape_cast %14 : vector<8x32xbf16> to vector<8x4x8xbf16>
    %16 = tpu.transpose %15, [1, 0, 2] : vector<8x4x8xbf16> -> vector<4x8x8xbf16>
    %c0_8 = arith.constant 0 : index
    %c0_9 = arith.constant 0 : index
    %c0_10 = arith.constant 0 : index
    %17 = vector.load %arg22[%c0_8, %c0_9, %c0_10] : memref<4x8x8xbf16, #tpu.memory_space<vmem>>, vector<4x8x8xbf16>
    "tpu.trace_start"() <{level = 10 : i32, message = "hqd,hkd->hqk"}> : () -> ()
    %cst_11 = arith.constant dense<0.000000e+00> : vector<4x8x8xf32>
    %18 = tpu.matmul %16, %17, %cst_11 {dimension_numbers = #tpu.dot_dimension_numbers<[2], [2], [1], [1], [0, 0, 0, 1, 1, 1], [0], [0]>} : vector<4x8x8xbf16>, vector<4x8x8xbf16>, vector<4x8x8xf32> -> vector<4x8x8xf32>
    "tpu.trace_stop"() : () -> ()
    %cst_12 = arith.constant dense<0xFF800000> : vector<4x8xf32>
    %19 = vector.multi_reduction <maximumf>, %18, %cst_12 [2] : vector<4x8x8xf32> to vector<4x8xf32>
    %20 = vector.shape_cast %19 : vector<4x8xf32> to vector<4x8x1xf32>
    %21 = vector.broadcast %20 : vector<4x8x1xf32> to vector<4x8x8xf32>
    %22 = arith.subf %18, %21 : vector<4x8x8xf32>
    %23 = math.exp %22 : vector<4x8x8xf32>
    %cst_13 = arith.constant dense<0.000000e+00> : vector<4x8xf32>
    %24 = vector.multi_reduction <add>, %23, %cst_13 [2] : vector<4x8x8xf32> to vector<4x8xf32>
    %25 = vector.shape_cast %24 : vector<4x8xf32> to vector<4x8x1xf32>
    %26 = tpu.reciprocal %25 {approx = true} : vector<4x8x1xf32> -> vector<4x8x1xf32>
    %27 = vector.broadcast %26 : vector<4x8x1xf32> to vector<4x8x8xf32>
    %28 = arith.mulf %23, %27 : vector<4x8x8xf32>
    %29 = arith.truncf %28 : vector<4x8x8xf32> to vector<4x8x8xbf16>
    %c0_14 = arith.constant 0 : index
    %c0_15 = arith.constant 0 : index
    %c0_16 = arith.constant 0 : index
    %c0_17 = arith.constant 0 : index
    %30 = vector.load %arg21[%c0_14, %c0_15, %c0_16, %c0_17] : memref<1x4x8x8xbf16, #tpu.memory_space<vmem>>, vector<1x4x8x8xbf16>
    %31 = vector.shape_cast %30 : vector<1x4x8x8xbf16> to vector<4x8x8xbf16>
    %32 = vector.shape_cast %29 : vector<4x8x8xbf16> to vector<1x4x8x8xbf16>
    tpu.vector_store %arg21[%c0_14, %c0_15, %c0_16, %c0_17], %32 {strides = array<i32>} : memref<1x4x8x8xbf16, #tpu.memory_space<vmem>>, vector<1x4x8x8xbf16>,
    %33 = arith.truncf %28 : vector<4x8x8xf32> to vector<4x8x8xbf16>
    %c0_18 = arith.constant 0 : index
    %c0_19 = arith.constant 0 : index
    %c0_20 = arith.constant 0 : index
    %34 = vector.load %arg23[%c0_18, %c0_19, %c0_20] : memref<4x8x8xbf16, #tpu.memory_space<vmem>>, vector<4x8x8xbf16>
    "tpu.trace_start"() <{level = 10 : i32, message = "hqk,hkd->hqd"}> : () -> ()
    %cst_21 = arith.constant dense<0.000000e+00> : vector<4x8x8xf32>
    %35 = tpu.matmul %33, %34, %cst_21 {dimension_numbers = #tpu.dot_dimension_numbers<[2], [1], [1], [2], [0, 0, 0, 1, 1, 2], [0], [0]>} : vector<4x8x8xbf16>, vector<4x8x8xbf16>, vector<4x8x8xf32> -> vector<4x8x8xf32>
    "tpu.trace_stop"() : () -> ()
    %36 = arith.truncf %35 : vector<4x8x8xf32> to vector<4x8x8xbf16>
    %37 = tpu.transpose %36, [1, 0, 2] : vector<4x8x8xbf16> -> vector<8x4x8xbf16>
    %38 = vector.shape_cast %37 : vector<8x4x8xbf16> to vector<8x32xbf16>
    %c0_22 = arith.constant 0 : index
    %c0_23 = arith.constant 0 : index
    %39 = vector.load %arg10[%c0_22, %c0_23] : memref<32x32xbf16, #tpu.memory_space<vmem>>, vector<32x32xbf16>
    %cst_24 = arith.constant dense<0.000000e+00> : vector<8x32xf32>
    %40 = tpu.matmul %38, %39, %cst_24 {dimension_numbers = #tpu.dot_dimension_numbers<[1], [0], [0], [1], [0, 0, 1, 1], [], []>} : vector<8x32xbf16>, vector<32x32xbf16>, vector<8x32xf32> -> vector<8x32xf32>
    %c0_25 = arith.constant 0 : index
    %c0_26 = arith.constant 0 : index
    %41 = vector.load %arg11[%c0_25, %c0_26] : memref<1x32xbf16, #tpu.memory_space<vmem>>, vector<1x32xbf16>
    %42 = arith.extf %41 : vector<1x32xbf16> to vector<1x32xf32>
    %43 = vector.broadcast %42 : vector<1x32xf32> to vector<8x32xf32>
    %44 = arith.addf %40, %43 : vector<8x32xf32>
    %45 = arith.addf %5, %44 : vector<8x32xf32>
    %cst_27 = arith.constant dense<0.000000e+00> : vector<8xf32>
    %46 = vector.multi_reduction <add>, %45, %cst_27 [1] : vector<8x32xf32> to vector<8xf32>
    %47 = vector.shape_cast %46 : vector<8xf32> to vector<8x1xf32>
    %cst_28 = arith.constant 3.200000e+01 : f32
    %48 = vector.broadcast %cst_28 : f32 to vector<8x1xf32>
    %49 = arith.divf %47, %48 : vector<8x1xf32>
    %50 = vector.broadcast %49 : vector<8x1xf32> to vector<8x32xf32>
    %51 = arith.subf %45, %50 : vector<8x32xf32>
    %52 = arith.mulf %51, %51 : vector<8x32xf32>
    %cst_29 = arith.constant dense<0.000000e+00> : vector<8xf32>
    %53 = vector.multi_reduction <add>, %52, %cst_29 [1] : vector<8x32xf32> to vector<8xf32>
    %54 = vector.shape_cast %53 : vector<8xf32> to vector<8x1xf32>
    %cst_30 = arith.constant 3.200000e+01 : f32
    %55 = vector.broadcast %cst_30 : f32 to vector<8x1xf32>
    %56 = arith.divf %54, %55 : vector<8x1xf32>
    %cst_31 = arith.constant 9.99999997E-7 : f32
    %57 = vector.broadcast %cst_31 : f32 to vector<8x1xf32>
    %58 = arith.addf %56, %57 : vector<8x1xf32>
    %59 = math.rsqrt %58 : vector<8x1xf32>
    %60 = vector.broadcast %59 : vector<8x1xf32> to vector<8x32xf32>
    %61 = arith.mulf %51, %60 : vector<8x32xf32>
    %c0_32 = arith.constant 0 : index
    %c0_33 = arith.constant 0 : index
    %62 = vector.load %arg12[%c0_32, %c0_33] : memref<1x32xf32, #tpu.memory_space<vmem>>, vector<1x32xf32>
    %63 = vector.broadcast %62 : vector<1x32xf32> to vector<8x32xf32>
    %64 = arith.mulf %61, %63 : vector<8x32xf32>
    %c0_34 = arith.constant 0 : index
    %c0_35 = arith.constant 0 : index
    %65 = vector.load %arg13[%c0_34, %c0_35] : memref<1x32xf32, #tpu.memory_space<vmem>>, vector<1x32xf32>
    %66 = vector.broadcast %65 : vector<1x32xf32> to vector<8x32xf32>
    %67 = arith.addf %64, %66 : vector<8x32xf32>
    %68 = arith.truncf %67 : vector<8x32xf32> to vector<8x32xbf16>
    %c0_36 = arith.constant 0 : index
    %c0_37 = arith.constant 0 : index
    %69 = vector.load %arg14[%c0_36, %c0_37] : memref<32x128xbf16, #tpu.memory_space<vmem>>, vector<32x128xbf16>
    %cst_38 = arith.constant dense<0.000000e+00> : vector<8x128xf32>
    %70 = tpu.matmul %68, %69, %cst_38 {dimension_numbers = #tpu.dot_dimension_numbers<[1], [0], [0], [1], [0, 0, 1, 1], [], []>} : vector<8x32xbf16>, vector<32x128xbf16>, vector<8x128xf32> -> vector<8x128xf32>
    %c0_39 = arith.constant 0 : index
    %c0_40 = arith.constant 0 : index
    %71 = vector.load %arg15[%c0_39, %c0_40] : memref<1x128xbf16, #tpu.memory_space<vmem>>, vector<1x128xbf16>
    %72 = arith.extf %71 : vector<1x128xbf16> to vector<1x128xf32>
    %73 = vector.broadcast %72 : vector<1x128xf32> to vector<8x128xf32>
    %74 = arith.addf %70, %73 : vector<8x128xf32>
    %75 = arith.mulf %74, %74 : vector<8x128xf32>
    %76 = arith.mulf %74, %75 : vector<8x128xf32>
    %cst_41 = arith.constant 4.471500e-02 : f32
    %77 = vector.broadcast %cst_41 : f32 to vector<8x128xf32>
    %78 = arith.mulf %77, %76 : vector<8x128xf32>
    %79 = arith.addf %74, %78 : vector<8x128xf32>
    %cst_42 = arith.constant 0.797884583 : f32
    %80 = vector.broadcast %cst_42 : f32 to vector<8x128xf32>
    %81 = arith.mulf %80, %79 : vector<8x128xf32>
    %82 = math.tanh %81 : vector<8x128xf32>
    %cst_43 = arith.constant 1.000000e+00 : f32
    %83 = vector.broadcast %cst_43 : f32 to vector<8x128xf32>
    %84 = arith.addf %83, %82 : vector<8x128xf32>
    %cst_44 = arith.constant 5.000000e-01 : f32
    %85 = vector.broadcast %cst_44 : f32 to vector<8x128xf32>
    %86 = arith.mulf %85, %84 : vector<8x128xf32>
    %87 = arith.mulf %74, %86 : vector<8x128xf32>
    %88 = arith.truncf %87 : vector<8x128xf32> to vector<8x128xbf16>
    %c0_45 = arith.constant 0 : index
    %c0_46 = arith.constant 0 : index
    %89 = vector.load %arg16[%c0_45, %c0_46] : memref<128x32xbf16, #tpu.memory_space<vmem>>, vector<128x32xbf16>
    %cst_47 = arith.constant dense<0.000000e+00> : vector<8x32xf32>
    %90 = tpu.matmul %88, %89, %cst_47 {dimension_numbers = #tpu.dot_dimension_numbers<[1], [0], [0], [1], [0, 0, 1, 1], [], []>} : vector<8x128xbf16>, vector<128x32xbf16>, vector<8x32xf32> -> vector<8x32xf32>
    %c0_48 = arith.constant 0 : index
    %c0_49 = arith.constant 0 : index
    %91 = vector.load %arg17[%c0_48, %c0_49] : memref<1x32xbf16, #tpu.memory_space<vmem>>, vector<1x32xbf16>
    %92 = arith.extf %91 : vector<1x32xbf16> to vector<1x32xf32>
    %93 = vector.broadcast %92 : vector<1x32xf32> to vector<8x32xf32>
    %94 = arith.addf %90, %93 : vector<8x32xf32>
    %95 = arith.addf %67, %94 : vector<8x32xf32>
    %cst_50 = arith.constant dense<0.000000e+00> : vector<8xf32>
    %96 = vector.multi_reduction <add>, %95, %cst_50 [1] : vector<8x32xf32> to vector<8xf32>
    %97 = vector.shape_cast %96 : vector<8xf32> to vector<8x1xf32>
    %cst_51 = arith.constant 3.200000e+01 : f32
    %98 = vector.broadcast %cst_51 : f32 to vector<8x1xf32>
    %99 = arith.divf %97, %98 : vector<8x1xf32>
    %100 = vector.broadcast %99 : vector<8x1xf32> to vector<8x32xf32>
    %101 = arith.subf %95, %100 : vector<8x32xf32>
    %102 = arith.mulf %101, %101 : vector<8x32xf32>
    %cst_52 = arith.constant dense<0.000000e+00> : vector<8xf32>
    %103 = vector.multi_reduction <add>, %102, %cst_52 [1] : vector<8x32xf32> to vector<8xf32>
    %104 = vector.shape_cast %103 : vector<8xf32> to vector<8x1xf32>
    %cst_53 = arith.constant 3.200000e+01 : f32
    %105 = vector.broadcast %cst_53 : f32 to vector<8x1xf32>
    %106 = arith.divf %104, %105 : vector<8x1xf32>
    %cst_54 = arith.constant 9.99999997E-7 : f32
    %107 = vector.broadcast %cst_54 : f32 to vector<8x1xf32>
    %108 = arith.addf %106, %107 : vector<8x1xf32>
    %109 = math.rsqrt %108 : vector<8x1xf32>
    %110 = vector.broadcast %109 : vector<8x1xf32> to vector<8x32xf32>
    %111 = arith.mulf %101, %110 : vector<8x32xf32>
    %c0_55 = arith.constant 0 : index
    %c0_56 = arith.constant 0 : index
    %112 = vector.load %arg18[%c0_55, %c0_56] : memref<1x32xf32, #tpu.memory_space<vmem>>, vector<1x32xf32>
    %113 = vector.broadcast %112 : vector<1x32xf32> to vector<8x32xf32>
    %114 = arith.mulf %111, %113 : vector<8x32xf32>
    %c0_57 = arith.constant 0 : index
    %c0_58 = arith.constant 0 : index
    %115 = vector.load %arg19[%c0_57, %c0_58] : memref<1x32xf32, #tpu.memory_space<vmem>>, vector<1x32xf32>
    %116 = vector.broadcast %115 : vector<1x32xf32> to vector<8x32xf32>
    %117 = arith.addf %114, %116 : vector<8x32xf32>
    %118 = arith.truncf %117 : vector<8x32xf32> to vector<8x32xbf16>
    %c0_59 = arith.constant 0 : index
    %c0_60 = arith.constant 0 : index
    %c0_61 = arith.constant 0 : index
    %119 = vector.load %arg20[%c0_59, %c0_60, %c0_61] : memref<1x8x32xbf16, #tpu.memory_space<vmem>>, vector<1x8x32xbf16>
    %120 = vector.shape_cast %119 : vector<1x8x32xbf16> to vector<8x32xbf16>
    %121 = vector.shape_cast %118 : vector<8x32xbf16> to vector<1x8x32xbf16>
    tpu.vector_store %arg20[%c0_59, %c0_60, %c0_61], %121 {strides = array<i32>} : memref<1x8x32xbf16, #tpu.memory_space<vmem>>, vector<1x8x32xbf16>,
    return
  }
  func.func @transform_0(%arg0: i32, %arg1: i32) -> (i32, i32, i32) {
    %c0_i32 = arith.constant 0 : i32
    %c0_i32_0 = arith.constant 0 : i32
    return %arg0, %arg1, %c0_i32 : i32, i32, i32
  }
  func.func @transform_1(%arg0: i32, %arg1: i32) -> (i32, i32, i32) {
    %c0_i32 = arith.constant 0 : i32
    %c0_i32_0 = arith.constant 0 : i32
    %c0_i32_1 = arith.constant 0 : i32
    return %arg0, %c0_i32, %c0_i32_0 : i32, i32, i32
  }
  func.func @transform_2(%arg0: i32, %arg1: i32) -> (i32, i32) {
    %c0_i32 = arith.constant 0 : i32
    %c0_i32_0 = arith.constant 0 : i32
    %c0_i32_1 = arith.constant 0 : i32
    return %c0_i32, %c0_i32_0 : i32, i32
  }
  func.func @transform_3(%arg0: i32, %arg1: i32) -> (i32, i32) {
    %c0_i32 = arith.constant 0 : i32
    %c0_i32_0 = arith.constant 0 : i32
    %c0_i32_1 = arith.constant 0 : i32
    return %c0_i32, %c0_i32_0 : i32, i32
  }
  func.func @transform_4(%arg0: i32, %arg1: i32) -> (i32, i32) {
    %c0_i32 = arith.constant 0 : i32
    %c0_i32_0 = arith.constant 0 : i32
    %c0_i32_1 = arith.constant 0 : i32
    return %c0_i32, %c0_i32_0 : i32, i32
  }
  func.func @transform_5(%arg0: i32, %arg1: i32) -> (i32, i32) {
    %c0_i32 = arith.constant 0 : i32
    %c0_i32_0 = arith.constant 0 : i32
    %c0_i32_1 = arith.constant 0 : i32
    return %c0_i32, %c0_i32_0 : i32, i32
  }
  func.func @transform_6(%arg0: i32, %arg1: i32) -> (i32, i32) {
    %c0_i32 = arith.constant 0 : i32
    %c0_i32_0 = arith.constant 0 : i32
    %c0_i32_1 = arith.constant 0 : i32
    return %c0_i32, %c0_i32_0 : i32, i32
  }
  func.func @transform_7(%arg0: i32, %arg1: i32) -> (i32, i32) {
    %c0_i32 = arith.constant 0 : i32
    %c0_i32_0 = arith.constant 0 : i32
    %c0_i32_1 = arith.constant 0 : i32
    return %c0_i32, %c0_i32_0 : i32, i32
  }
  func.func @transform_8(%arg0: i32, %arg1: i32) -> (i32, i32) {
    %c0_i32 = arith.constant 0 : i32
    %c0_i32_0 = arith.constant 0 : i32
    %c0_i32_1 = arith.constant 0 : i32
    return %c0_i32, %c0_i32_0 : i32, i32
  }
  func.func @transform_9(%arg0: i32, %arg1: i32) -> (i32, i32) {
    %c0_i32 = arith.constant 0 : i32
    %c0_i32_0 = arith.constant 0 : i32
    %c0_i32_1 = arith.constant 0 : i32
    return %c0_i32, %c0_i32_0 : i32, i32
  }
  func.func @transform_10(%arg0: i32, %arg1: i32) -> (i32, i32) {
    %c0_i32 = arith.constant 0 : i32
    %c0_i32_0 = arith.constant 0 : i32
    %c0_i32_1 = arith.constant 0 : i32
    return %c0_i32, %c0_i32_0 : i32, i32
  }
  func.func @transform_11(%arg0: i32, %arg1: i32) -> (i32, i32) {
    %c0_i32 = arith.constant 0 : i32
    %c0_i32_0 = arith.constant 0 : i32
    %c0_i32_1 = arith.constant 0 : i32
    return %c0_i32, %c0_i32_0 : i32, i32
  }
  func.func @transform_12(%arg0: i32, %arg1: i32) -> (i32, i32) {
    %c0_i32 = arith.constant 0 : i32
    %c0_i32_0 = arith.constant 0 : i32
    %c0_i32_1 = arith.constant 0 : i32
    return %c0_i32, %c0_i32_0 : i32, i32
  }
  func.func @transform_13(%arg0: i32, %arg1: i32) -> (i32, i32) {
    %c0_i32 = arith.constant 0 : i32
    %c0_i32_0 = arith.constant 0 : i32
    %c0_i32_1 = arith.constant 0 : i32
    return %c0_i32, %c0_i32_0 : i32, i32
  }
  func.func @transform_14(%arg0: i32, %arg1: i32) -> (i32, i32) {
    %c0_i32 = arith.constant 0 : i32
    %c0_i32_0 = arith.constant 0 : i32
    %c0_i32_1 = arith.constant 0 : i32
    return %c0_i32, %c0_i32_0 : i32, i32
  }
  func.func @transform_15(%arg0: i32, %arg1: i32) -> (i32, i32) {
    %c0_i32 = arith.constant 0 : i32
    %c0_i32_0 = arith.constant 0 : i32
    %c0_i32_1 = arith.constant 0 : i32
    return %c0_i32, %c0_i32_0 : i32, i32
  }
  func.func @transform_16(%arg0: i32, %arg1: i32) -> (i32, i32) {
    %c0_i32 = arith.constant 0 : i32
    %c0_i32_0 = arith.constant 0 : i32
    %c0_i32_1 = arith.constant 0 : i32
    return %c0_i32, %c0_i32_0 : i32, i32
  }
  func.func @transform_17(%arg0: i32, %arg1: i32) -> (i32, i32) {
    %c0_i32 = arith.constant 0 : i32
    %c0_i32_0 = arith.constant 0 : i32
    %c0_i32_1 = arith.constant 0 : i32
    return %c0_i32, %c0_i32_0 : i32, i32
  }
  func.func @transform_18(%arg0: i32, %arg1: i32) -> (i32, i32, i32) {
    %c0_i32 = arith.constant 0 : i32
    %c0_i32_0 = arith.constant 0 : i32
    return %arg0, %arg1, %c0_i32 : i32, i32, i32
  }
  func.func @transform_19(%arg0: i32, %arg1: i32) -> (i32, i32, i32, i32) {
    %c0_i32 = arith.constant 0 : i32
    %c0_i32_0 = arith.constant 0 : i32
    %c0_i32_1 = arith.constant 0 : i32
    return %arg0, %c0_i32, %arg1, %c0_i32_0 : i32, i32, i32, i32
  }
}

module attributes {stable_mosaic.version = 11 : i64} {
  func.func @_transformer_block_kernel(%arg0: i32, %arg1: i32, %arg2: memref<1x8x32xbf16, #tpu.memory_space<vmem>>, %arg3: memref<1x8x32xbf16, #tpu.memory_space<vmem>>, %arg4: memref<32x32xbf16, #tpu.memory_space<vmem>>, %arg5: memref<1x32xbf16, #tpu.memory_space<vmem>>, %arg6: memref<32x32xbf16, #tpu.memory_space<vmem>>, %arg7: memref<1x32xbf16, #tpu.memory_space<vmem>>, %arg8: memref<32x32xbf16, #tpu.memory_space<vmem>>, %arg9: memref<1x32xbf16, #tpu.memory_space<vmem>>, %arg10: memref<32x32xbf16, #tpu.memory_space<vmem>>, %arg11: memref<1x32xbf16, #tpu.memory_space<vmem>>, %arg12: memref<1x32xf32, #tpu.memory_space<vmem>>, %arg13: memref<1x32xf32, #tpu.memory_space<vmem>>, %arg14: memref<32x128xbf16, #tpu.memory_space<vmem>>, %arg15: memref<1x128xbf16, #tpu.memory_space<vmem>>, %arg16: memref<128x32xbf16, #tpu.memory_space<vmem>>, %arg17: memref<1x32xbf16, #tpu.memory_space<vmem>>, %arg18: memref<1x32xf32, #tpu.memory_space<vmem>>, %arg19: memref<1x32xf32, #tpu.memory_space<vmem>>, %arg20: memref<1x8x32xbf16, #tpu.memory_space<vmem>>, %arg21: memref<1x4x8x8xbf16, #tpu.memory_space<vmem>>, %arg22: memref<4x8x8xbf16, #tpu.memory_space<vmem>>, %arg23: memref<4x8x8xbf16, #tpu.memory_space<vmem>>) attributes {dimension_semantics = [#tpu.dimension_semantics<parallel>, #tpu.dimension_semantics<arbitrary>], iteration_bounds = array<i64: 2, 1>, scalar_prefetch = 0 : i64, scratch_operands = 2 : i64, tpu.core_type = #tpu.core_type<tc>, window_params = [{transform_indices = @transform_0, window_bounds = array<i64: 1, 8, 32>}, {transform_indices = @transform_1, window_bounds = array<i64: 1, 8, 32>}, {pipeline_mode = #tpu.pipeline_mode<synchronous>, transform_indices = @transform_2, window_bounds = array<i64: 32, 32>}, {pipeline_mode = #tpu.pipeline_mode<synchronous>, transform_indices = @transform_3, window_bounds = array<i64: 1, 32>}, {pipeline_mode = #tpu.pipeline_mode<synchronous>, transform_indices = @transform_4, window_bounds = array<i64: 32, 32>}, {pipeline_mode = #tpu.pipeline_mode<synchronous>, transform_indices = @transform_5, window_bounds = array<i64: 1, 32>}, {pipeline_mode = #tpu.pipeline_mode<synchronous>, transform_indices = @transform_6, window_bounds = array<i64: 32, 32>}, {pipeline_mode = #tpu.pipeline_mode<synchronous>, transform_indices = @transform_7, window_bounds = array<i64: 1, 32>}, {pipeline_mode = #tpu.pipeline_mode<synchronous>, transform_indices = @transform_8, window_bounds = array<i64: 32, 32>}, {pipeline_mode = #tpu.pipeline_mode<synchronous>, transform_indices = @transform_9, window_bounds = array<i64: 1, 32>}, {pipeline_mode = #tpu.pipeline_mode<synchronous>, transform_indices = @transform_10, window_bounds = array<i64: 1, 32>}, {pipeline_mode = #tpu.pipeline_mode<synchronous>, transform_indices = @transform_11, window_bounds = array<i64: 1, 32>}, {pipeline_mode = #tpu.pipeline_mode<synchronous>, transform_indices = @transform_12, window_bounds = array<i64: 32, 128>}, {pipeline_mode = #tpu.pipeline_mode<synchronous>, transform_indices = @transform_13, window_bounds = array<i64: 1, 128>}, {pipeline_mode = #tpu.pipeline_mode<synchronous>, transform_indices = @transform_14, window_bounds = array<i64: 128, 32>}, {pipeline_mode = #tpu.pipeline_mode<synchronous>, transform_indices = @transform_15, window_bounds = array<i64: 1, 32>}, {pipeline_mode = #tpu.pipeline_mode<synchronous>, transform_indices = @transform_16, window_bounds = array<i64: 1, 32>}, {pipeline_mode = #tpu.pipeline_mode<synchronous>, transform_indices = @transform_17, window_bounds = array<i64: 1, 32>}, {transform_indices = @transform_18, window_bounds = array<i64: 1, 8, 32>}, {transform_indices = @transform_19, window_bounds = array<i64: 1, 4, 8, 8>}]} {
    %c0_i32 = arith.constant 0 : i32
    %0 = arith.cmpi eq, %arg1, %c0_i32 : i32
    %1 = arith.extui %0 : i1 to i32
    %c0_i32_0 = arith.constant 0 : i32
    %2 = arith.cmpi ne, %1, %c0_i32_0 : i32
    scf.if %2 {
      %c0_62 = arith.constant 0 : index
      %c0_63 = arith.constant 0 : index
      %c0_64 = arith.constant 0 : index
      %122 = vector.load %arg3[%c0_62, %c0_63, %c0_64] : memref<1x8x32xbf16, #tpu.memory_space<vmem>>, vector<1x8x32xbf16>
      %123 = vector.shape_cast %122 : vector<1x8x32xbf16> to vector<8x32xbf16>
      %c0_65 = arith.constant 0 : index
      %c0_66 = arith.constant 0 : index
      %124 = vector.load %arg6[%c0_65, %c0_66] : memref<32x32xbf16, #tpu.memory_space<vmem>>, vector<32x32xbf16>
      %cst_67 = arith.constant dense<0.000000e+00> : vector<8x32xf32>
      %125 = tpu.matmul %123, %124, %cst_67 {dimension_numbers = #tpu.dot_dimension_numbers<[1], [0], [0], [1], [0, 0, 1, 1], [], []>} : vector<8x32xbf16>, vector<32x32xbf16>, vector<8x32xf32> -> vector<8x32xf32>
      %c0_68 = arith.constant 0 : index
      %c0_69 = arith.constant 0 : index
      %126 = vector.load %arg7[%c0_68, %c0_69] : memref<1x32xbf16, #tpu.memory_space<vmem>>, vector<1x32xbf16>
      %127 = arith.extf %126 : vector<1x32xbf16> to vector<1x32xf32>
      %128 = vector.broadcast %127 : vector<1x32xf32> to vector<8x32xf32>
      %129 = arith.addf %125, %128 : vector<8x32xf32>
      %130 = arith.truncf %129 : vector<8x32xf32> to vector<8x32xbf16>
      %c0_70 = arith.constant 0 : index
      %c0_71 = arith.constant 0 : index
      %131 = vector.load %arg8[%c0_70, %c0_71] : memref<32x32xbf16, #tpu.memory_space<vmem>>, vector<32x32xbf16>
      %cst_72 = arith.constant dense<0.000000e+00> : vector<8x32xf32>
      %132 = tpu.matmul %123, %131, %cst_72 {dimension_numbers = #tpu.dot_dimension_numbers<[1], [0], [0], [1], [0, 0, 1, 1], [], []>} : vector<8x32xbf16>, vector<32x32xbf16>, vector<8x32xf32> -> vector<8x32xf32>
      %c0_73 = arith.constant 0 : index
      %c0_74 = arith.constant 0 : index
      %133 = vector.load %arg9[%c0_73, %c0_74] : memref<1x32xbf16, #tpu.memory_space<vmem>>, vector<1x32xbf16>
      %134 = arith.extf %133 : vector<1x32xbf16> to vector<1x32xf32>
      %135 = vector.broadcast %134 : vector<1x32xf32> to vector<8x32xf32>
      %136 = arith.addf %132, %135 : vector<8x32xf32>
      %137 = arith.truncf %136 : vector<8x32xf32> to vector<8x32xbf16>
      %138 = vector.shape_cast %130 : vector<8x32xbf16> to vector<8x4x8xbf16>
      %139 = tpu.transpose %138, [1, 0, 2] : vector<8x4x8xbf16> -> vector<4x8x8xbf16>
      %c0_75 = arith.constant 0 : index
      %c0_76 = arith.constant 0 : index
      %c0_77 = arith.constant 0 : index
      %140 = vector.load %arg22[%c0_75, %c0_76, %c0_77] : memref<4x8x8xbf16, #tpu.memory_space<vmem>>, vector<4x8x8xbf16>
      tpu.vector_store %arg22[%c0_75, %c0_76, %c0_77], %139 {strides = array<i32>} : memref<4x8x8xbf16, #tpu.memory_space<vmem>>, vector<4x8x8xbf16>,
      %141 = vector.shape_cast %137 : vector<8x32xbf16> to vector<8x4x8xbf16>
      %142 = tpu.transpose %141, [1, 0, 2] : vector<8x4x8xbf16> -> vector<4x8x8xbf16>
      %c0_78 = arith.constant 0 : index
      %c0_79 = arith.constant 0 : index
      %c0_80 = arith.constant 0 : index
      %143 = vector.load %arg23[%c0_78, %c0_79, %c0_80] : memref<4x8x8xbf16, #tpu.memory_space<vmem>>, vector<4x8x8xbf16>
      tpu.vector_store %arg23[%c0_78, %c0_79, %c0_80], %142 {strides = array<i32>} : memref<4x8x8xbf16, #tpu.memory_space<vmem>>, vector<4x8x8xbf16>,
    } else {
    }
    %c0 = arith.constant 0 : index
    %c0_1 = arith.constant 0 : index
    %c0_2 = arith.constant 0 : index
    %3 = vector.load %arg2[%c0, %c0_1, %c0_2] : memref<1x8x32xbf16, #tpu.memory_space<vmem>>, vector<1x8x32xbf16>
    %4 = vector.shape_cast %3 : vector<1x8x32xbf16> to vector<8x32xbf16>
    %5 = arith.extf %4 : vector<8x32xbf16> to vector<8x32xf32>
    %c0_3 = arith.constant 0 : index
    %c0_4 = arith.constant 0 : index
    %6 = vector.load %arg4[%c0_3, %c0_4] : memref<32x32xbf16, #tpu.memory_space<vmem>>, vector<32x32xbf16>
    %cst = arith.constant dense<0.000000e+00> : vector<8x32xf32>
    %7 = tpu.matmul %4, %6, %cst {dimension_numbers = #tpu.dot_dimension_numbers<[1], [0], [0], [1], [0, 0, 1, 1], [], []>} : vector<8x32xbf16>, vector<32x32xbf16>, vector<8x32xf32> -> vector<8x32xf32>
    %c0_5 = arith.constant 0 : index
    %c0_6 = arith.constant 0 : index
    %8 = vector.load %arg5[%c0_5, %c0_6] : memref<1x32xbf16, #tpu.memory_space<vmem>>, vector<1x32xbf16>
    %9 = arith.extf %8 : vector<1x32xbf16> to vector<1x32xf32>
    %10 = vector.broadcast %9 : vector<1x32xf32> to vector<8x32xf32>
    %11 = arith.addf %7, %10 : vector<8x32xf32>
    %cst_7 = arith.constant 0.353553385 : f32
    %12 = vector.broadcast %cst_7 : f32 to vector<8x32xf32>
    %13 = arith.mulf %11, %12 : vector<8x32xf32>
    %14 = arith.truncf %13 : vector<8x32xf32> to vector<8x32xbf16>
    %15 = vector.shape_cast %14 : vector<8x32xbf16> to vector<8x4x8xbf16>
    %16 = tpu.transpose %15, [1, 0, 2] : vector<8x4x8xbf16> -> vector<4x8x8xbf16>
    %c0_8 = arith.constant 0 : index
    %c0_9 = arith.constant 0 : index
    %c0_10 = arith.constant 0 : index
    %17 = vector.load %arg22[%c0_8, %c0_9, %c0_10] : memref<4x8x8xbf16, #tpu.memory_space<vmem>>, vector<4x8x8xbf16>
    "tpu.trace_start"() <{level = 10 : i32, message = "hqd,hkd->hqk"}> : () -> ()
    %cst_11 = arith.constant dense<0.000000e+00> : vector<4x8x8xf32>
    %18 = tpu.matmul %16, %17, %cst_11 {dimension_numbers = #tpu.dot_dimension_numbers<[2], [2], [1], [1], [0, 0, 0, 1, 1, 1], [0], [0]>} : vector<4x8x8xbf16>, vector<4x8x8xbf16>, vector<4x8x8xf32> -> vector<4x8x8xf32>
    "tpu.trace_stop"() : () -> ()
    %cst_12 = arith.constant dense<0xFF800000> : vector<4x8xf32>
    %19 = vector.multi_reduction <maximumf>, %18, %cst_12 [2] : vector<4x8x8xf32> to vector<4x8xf32>
    %20 = vector.shape_cast %19 : vector<4x8xf32> to vector<4x8x1xf32>
    %21 = vector.broadcast %20 : vector<4x8x1xf32> to vector<4x8x8xf32>
    %22 = arith.subf %18, %21 : vector<4x8x8xf32>
    %23 = math.exp %22 : vector<4x8x8xf32>
    %cst_13 = arith.constant dense<0.000000e+00> : vector<4x8xf32>
    %24 = vector.multi_reduction <add>, %23, %cst_13 [2] : vector<4x8x8xf32> to vector<4x8xf32>
    %25 = vector.shape_cast %24 : vector<4x8xf32> to vector<4x8x1xf32>
    %26 = tpu.reciprocal %25 {approx = true} : vector<4x8x1xf32> -> vector<4x8x1xf32>
    %27 = vector.broadcast %26 : vector<4x8x1xf32> to vector<4x8x8xf32>
    %28 = arith.mulf %23, %27 : vector<4x8x8xf32>
    %29 = arith.truncf %28 : vector<4x8x8xf32> to vector<4x8x8xbf16>
    %c0_14 = arith.constant 0 : index
    %c0_15 = arith.constant 0 : index
    %c0_16 = arith.constant 0 : index
    %c0_17 = arith.constant 0 : index
    %30 = vector.load %arg21[%c0_14, %c0_15, %c0_16, %c0_17] : memref<1x4x8x8xbf16, #tpu.memory_space<vmem>>, vector<1x4x8x8xbf16>
    %31 = vector.shape_cast %30 : vector<1x4x8x8xbf16> to vector<4x8x8xbf16>
    %32 = vector.shape_cast %29 : vector<4x8x8xbf16> to vector<1x4x8x8xbf16>
    tpu.vector_store %arg21[%c0_14, %c0_15, %c0_16, %c0_17], %32 {strides = array<i32>} : memref<1x4x8x8xbf16, #tpu.memory_space<vmem>>, vector<1x4x8x8xbf16>,
    %33 = arith.truncf %28 : vector<4x8x8xf32> to vector<4x8x8xbf16>
    %c0_18 = arith.constant 0 : index
    %c0_19 = arith.constant 0 : index
    %c0_20 = arith.constant 0 : index
    %34 = vector.load %arg23[%c0_18, %c0_19, %c0_20] : memref<4x8x8xbf16, #tpu.memory_space<vmem>>, vector<4x8x8xbf16>
    "tpu.trace_start"() <{level = 10 : i32, message = "hqk,hkd->hqd"}> : () -> ()
    %cst_21 = arith.constant dense<0.000000e+00> : vector<4x8x8xf32>
    %35 = tpu.matmul %33, %34, %cst_21 {dimension_numbers = #tpu.dot_dimension_numbers<[2], [1], [1], [2], [0, 0, 0, 1, 1, 2], [0], [0]>} : vector<4x8x8xbf16>, vector<4x8x8xbf16>, vector<4x8x8xf32> -> vector<4x8x8xf32>
    "tpu.trace_stop"() : () -> ()
    %36 = arith.truncf %35 : vector<4x8x8xf32> to vector<4x8x8xbf16>
    %37 = tpu.transpose %36, [1, 0, 2] : vector<4x8x8xbf16> -> vector<8x4x8xbf16>
    %38 = vector.shape_cast %37 : vector<8x4x8xbf16> to vector<8x32xbf16>
    %c0_22 = arith.constant 0 : index
    %c0_23 = arith.constant 0 : index
    %39 = vector.load %arg10[%c0_22, %c0_23] : memref<32x32xbf16, #tpu.memory_space<vmem>>, vector<32x32xbf16>
    %cst_24 = arith.constant dense<0.000000e+00> : vector<8x32xf32>
    %40 = tpu.matmul %38, %39, %cst_24 {dimension_numbers = #tpu.dot_dimension_numbers<[1], [0], [0], [1], [0, 0, 1, 1], [], []>} : vector<8x32xbf16>, vector<32x32xbf16>, vector<8x32xf32> -> vector<8x32xf32>
    %c0_25 = arith.constant 0 : index
    %c0_26 = arith.constant 0 : index
    %41 = vector.load %arg11[%c0_25, %c0_26] : memref<1x32xbf16, #tpu.memory_space<vmem>>, vector<1x32xbf16>
    %42 = arith.extf %41 : vector<1x32xbf16> to vector<1x32xf32>
    %43 = vector.broadcast %42 : vector<1x32xf32> to vector<8x32xf32>
    %44 = arith.addf %40, %43 : vector<8x32xf32>
    %45 = arith.addf %5, %44 : vector<8x32xf32>
    %cst_27 = arith.constant dense<0.000000e+00> : vector<8xf32>
    %46 = vector.multi_reduction <add>, %45, %cst_27 [1] : vector<8x32xf32> to vector<8xf32>
    %47 = vector.shape_cast %46 : vector<8xf32> to vector<8x1xf32>
    %cst_28 = arith.constant 3.200000e+01 : f32
    %48 = vector.broadcast %cst_28 : f32 to vector<8x1xf32>
    %49 = arith.divf %47, %48 : vector<8x1xf32>
    %50 = vector.broadcast %49 : vector<8x1xf32> to vector<8x32xf32>
    %51 = arith.subf %45, %50 : vector<8x32xf32>
    %52 = arith.mulf %51, %51 : vector<8x32xf32>
    %cst_29 = arith.constant dense<0.000000e+00> : vector<8xf32>
    %53 = vector.multi_reduction <add>, %52, %cst_29 [1] : vector<8x32xf32> to vector<8xf32>
    %54 = vector.shape_cast %53 : vector<8xf32> to vector<8x1xf32>
    %cst_30 = arith.constant 3.200000e+01 : f32
    %55 = vector.broadcast %cst_30 : f32 to vector<8x1xf32>
    %56 = arith.divf %54, %55 : vector<8x1xf32>
    %cst_31 = arith.constant 9.99999997E-7 : f32
    %57 = vector.broadcast %cst_31 : f32 to vector<8x1xf32>
    %58 = arith.addf %56, %57 : vector<8x1xf32>
    %59 = math.rsqrt %58 : vector<8x1xf32>
    %60 = vector.broadcast %59 : vector<8x1xf32> to vector<8x32xf32>
    %61 = arith.mulf %51, %60 : vector<8x32xf32>
    %c0_32 = arith.constant 0 : index
    %c0_33 = arith.constant 0 : index
    %62 = vector.load %arg12[%c0_32, %c0_33] : memref<1x32xf32, #tpu.memory_space<vmem>>, vector<1x32xf32>
    %63 = vector.broadcast %62 : vector<1x32xf32> to vector<8x32xf32>
    %64 = arith.mulf %61, %63 : vector<8x32xf32>
    %c0_34 = arith.constant 0 : index
    %c0_35 = arith.constant 0 : index
    %65 = vector.load %arg13[%c0_34, %c0_35] : memref<1x32xf32, #tpu.memory_space<vmem>>, vector<1x32xf32>
    %66 = vector.broadcast %65 : vector<1x32xf32> to vector<8x32xf32>
    %67 = arith.addf %64, %66 : vector<8x32xf32>
    %68 = arith.truncf %67 : vector<8x32xf32> to vector<8x32xbf16>
    %c0_36 = arith.constant 0 : index
    %c0_37 = arith.constant 0 : index
    %69 = vector.load %arg14[%c0_36, %c0_37] : memref<32x128xbf16, #tpu.memory_space<vmem>>, vector<32x128xbf16>
    %cst_38 = arith.constant dense<0.000000e+00> : vector<8x128xf32>
    %70 = tpu.matmul %68, %69, %cst_38 {dimension_numbers = #tpu.dot_dimension_numbers<[1], [0], [0], [1], [0, 0, 1, 1], [], []>} : vector<8x32xbf16>, vector<32x128xbf16>, vector<8x128xf32> -> vector<8x128xf32>
    %c0_39 = arith.constant 0 : index
    %c0_40 = arith.constant 0 : index
    %71 = vector.load %arg15[%c0_39, %c0_40] : memref<1x128xbf16, #tpu.memory_space<vmem>>, vector<1x128xbf16>
    %72 = arith.extf %71 : vector<1x128xbf16> to vector<1x128xf32>
    %73 = vector.broadcast %72 : vector<1x128xf32> to vector<8x128xf32>
    %74 = arith.addf %70, %73 : vector<8x128xf32>
    %75 = arith.mulf %74, %74 : vector<8x128xf32>
    %76 = arith.mulf %74, %75 : vector<8x128xf32>
    %cst_41 = arith.constant 4.471500e-02 : f32
    %77 = vector.broadcast %cst_41 : f32 to vector<8x128xf32>
    %78 = arith.mulf %77, %76 : vector<8x128xf32>
    %79 = arith.addf %74, %78 : vector<8x128xf32>
    %cst_42 = arith.constant 0.797884583 : f32
    %80 = vector.broadcast %cst_42 : f32 to vector<8x128xf32>
    %81 = arith.mulf %80, %79 : vector<8x128xf32>
    %82 = math.tanh %81 : vector<8x128xf32>
    %cst_43 = arith.constant 1.000000e+00 : f32
    %83 = vector.broadcast %cst_43 : f32 to vector<8x128xf32>
    %84 = arith.addf %83, %82 : vector<8x128xf32>
    %cst_44 = arith.constant 5.000000e-01 : f32
    %85 = vector.broadcast %cst_44 : f32 to vector<8x128xf32>
    %86 = arith.mulf %85, %84 : vector<8x128xf32>
    %87 = arith.mulf %74, %86 : vector<8x128xf32>
    %88 = arith.truncf %87 : vector<8x128xf32> to vector<8x128xbf16>
    %c0_45 = arith.constant 0 : index
    %c0_46 = arith.constant 0 : index
    %89 = vector.load %arg16[%c0_45, %c0_46] : memref<128x32xbf16, #tpu.memory_space<vmem>>, vector<128x32xbf16>
    %cst_47 = arith.constant dense<0.000000e+00> : vector<8x32xf32>
    %90 = tpu.matmul %88, %89, %cst_47 {dimension_numbers = #tpu.dot_dimension_numbers<[1], [0], [0], [1], [0, 0, 1, 1], [], []>} : vector<8x128xbf16>, vector<128x32xbf16>, vector<8x32xf32> -> vector<8x32xf32>
    %c0_48 = arith.constant 0 : index
    %c0_49 = arith.constant 0 : index
    %91 = vector.load %arg17[%c0_48, %c0_49] : memref<1x32xbf16, #tpu.memory_space<vmem>>, vector<1x32xbf16>
    %92 = arith.extf %91 : vector<1x32xbf16> to vector<1x32xf32>
    %93 = vector.broadcast %92 : vector<1x32xf32> to vector<8x32xf32>
    %94 = arith.addf %90, %93 : vector<8x32xf32>
    %95 = arith.addf %67, %94 : vector<8x32xf32>
    %cst_50 = arith.constant dense<0.000000e+00> : vector<8xf32>
    %96 = vector.multi_reduction <add>, %95, %cst_50 [1] : vector<8x32xf32> to vector<8xf32>
    %97 = vector.shape_cast %96 : vector<8xf32> to vector<8x1xf32>
    %cst_51 = arith.constant 3.200000e+01 : f32
    %98 = vector.broadcast %cst_51 : f32 to vector<8x1xf32>
    %99 = arith.divf %97, %98 : vector<8x1xf32>
    %100 = vector.broadcast %99 : vector<8x1xf32> to vector<8x32xf32>
    %101 = arith.subf %95, %100 : vector<8x32xf32>
    %102 = arith.mulf %101, %101 : vector<8x32xf32>
    %cst_52 = arith.constant dense<0.000000e+00> : vector<8xf32>
    %103 = vector.multi_reduction <add>, %102, %cst_52 [1] : vector<8x32xf32> to vector<8xf32>
    %104 = vector.shape_cast %103 : vector<8xf32> to vector<8x1xf32>
    %cst_53 = arith.constant 3.200000e+01 : f32
    %105 = vector.broadcast %cst_53 : f32 to vector<8x1xf32>
    %106 = arith.divf %104, %105 : vector<8x1xf32>
    %cst_54 = arith.constant 9.99999997E-7 : f32
    %107 = vector.broadcast %cst_54 : f32 to vector<8x1xf32>
    %108 = arith.addf %106, %107 : vector<8x1xf32>
    %109 = math.rsqrt %108 : vector<8x1xf32>
    %110 = vector.broadcast %109 : vector<8x1xf32> to vector<8x32xf32>
    %111 = arith.mulf %101, %110 : vector<8x32xf32>
    %c0_55 = arith.constant 0 : index
    %c0_56 = arith.constant 0 : index
    %112 = vector.load %arg18[%c0_55, %c0_56] : memref<1x32xf32, #tpu.memory_space<vmem>>, vector<1x32xf32>
    %113 = vector.broadcast %112 : vector<1x32xf32> to vector<8x32xf32>
    %114 = arith.mulf %111, %113 : vector<8x32xf32>
    %c0_57 = arith.constant 0 : index
    %c0_58 = arith.constant 0 : index
    %115 = vector.load %arg19[%c0_57, %c0_58] : memref<1x32xf32, #tpu.memory_space<vmem>>, vector<1x32xf32>
    %116 = vector.broadcast %115 : vector<1x32xf32> to vector<8x32xf32>
    %117 = arith.addf %114, %116 : vector<8x32xf32>
    %118 = arith.truncf %117 : vector<8x32xf32> to vector<8x32xbf16>
    %c0_59 = arith.constant 0 : index
    %c0_60 = arith.constant 0 : index
    %c0_61 = arith.constant 0 : index
    %119 = vector.load %arg20[%c0_59, %c0_60, %c0_61] : memref<1x8x32xbf16, #tpu.memory_space<vmem>>, vector<1x8x32xbf16>
    %120 = vector.shape_cast %119 : vector<1x8x32xbf16> to vector<8x32xbf16>
    %121 = vector.shape_cast %118 : vector<8x32xbf16> to vector<1x8x32xbf16>
    tpu.vector_store %arg20[%c0_59, %c0_60, %c0_61], %121 {strides = array<i32>} : memref<1x8x32xbf16, #tpu.memory_space<vmem>>, vector<1x8x32xbf16>,
    return
  }
  func.func @transform_0(%arg0: i32, %arg1: i32) -> (i32, i32, i32) {
    %c0_i32 = arith.constant 0 : i32
    %c0_i32_0 = arith.constant 0 : i32
    return %arg0, %arg1, %c0_i32 : i32, i32, i32
  }
  func.func @transform_1(%arg0: i32, %arg1: i32) -> (i32, i32, i32) {
    %c0_i32 = arith.constant 0 : i32
    %c0_i32_0 = arith.constant 0 : i32
    %c0_i32_1 = arith.constant 0 : i32
    return %arg0, %c0_i32, %c0_i32_0 : i32, i32, i32
  }
  func.func @transform_2(%arg0: i32, %arg1: i32) -> (i32, i32) {
    %c0_i32 = arith.constant 0 : i32
    %c0_i32_0 = arith.constant 0 : i32
    %c0_i32_1 = arith.constant 0 : i32
    return %c0_i32, %c0_i32_0 : i32, i32
  }
  func.func @transform_3(%arg0: i32, %arg1: i32) -> (i32, i32) {
    %c0_i32 = arith.constant 0 : i32
    %c0_i32_0 = arith.constant 0 : i32
    %c0_i32_1 = arith.constant 0 : i32
    return %c0_i32, %c0_i32_0 : i32, i32
  }
  func.func @transform_4(%arg0: i32, %arg1: i32) -> (i32, i32) {
    %c0_i32 = arith.constant 0 : i32
    %c0_i32_0 = arith.constant 0 : i32
    %c0_i32_1 = arith.constant 0 : i32
    return %c0_i32, %c0_i32_0 : i32, i32
  }
  func.func @transform_5(%arg0: i32, %arg1: i32) -> (i32, i32) {
    %c0_i32 = arith.constant 0 : i32
    %c0_i32_0 = arith.constant 0 : i32
    %c0_i32_1 = arith.constant 0 : i32
    return %c0_i32, %c0_i32_0 : i32, i32
  }
  func.func @transform_6(%arg0: i32, %arg1: i32) -> (i32, i32) {
    %c0_i32 = arith.constant 0 : i32
    %c0_i32_0 = arith.constant 0 : i32
    %c0_i32_1 = arith.constant 0 : i32
    return %c0_i32, %c0_i32_0 : i32, i32
  }
  func.func @transform_7(%arg0: i32, %arg1: i32) -> (i32, i32) {
    %c0_i32 = arith.constant 0 : i32
    %c0_i32_0 = arith.constant 0 : i32
    %c0_i32_1 = arith.constant 0 : i32
    return %c0_i32, %c0_i32_0 : i32, i32
  }
  func.func @transform_8(%arg0: i32, %arg1: i32) -> (i32, i32) {
    %c0_i32 = arith.constant 0 : i32
    %c0_i32_0 = arith.constant 0 : i32
    %c0_i32_1 = arith.constant 0 : i32
    return %c0_i32, %c0_i32_0 : i32, i32
  }
  func.func @transform_9(%arg0: i32, %arg1: i32) -> (i32, i32) {
    %c0_i32 = arith.constant 0 : i32
    %c0_i32_0 = arith.constant 0 : i32
    %c0_i32_1 = arith.constant 0 : i32
    return %c0_i32, %c0_i32_0 : i32, i32
  }
  func.func @transform_10(%arg0: i32, %arg1: i32) -> (i32, i32) {
    %c0_i32 = arith.constant 0 : i32
    %c0_i32_0 = arith.constant 0 : i32
    %c0_i32_1 = arith.constant 0 : i32
    return %c0_i32, %c0_i32_0 : i32, i32
  }
  func.func @transform_11(%arg0: i32, %arg1: i32) -> (i32, i32) {
    %c0_i32 = arith.constant 0 : i32
    %c0_i32_0 = arith.constant 0 : i32
    %c0_i32_1 = arith.constant 0 : i32
    return %c0_i32, %c0_i32_0 : i32, i32
  }
  func.func @transform_12(%arg0: i32, %arg1: i32) -> (i32, i32) {
    %c0_i32 = arith.constant 0 : i32
    %c0_i32_0 = arith.constant 0 : i32
    %c0_i32_1 = arith.constant 0 : i32
    return %c0_i32, %c0_i32_0 : i32, i32
  }
  func.func @transform_13(%arg0: i32, %arg1: i32) -> (i32, i32) {
    %c0_i32 = arith.constant 0 : i32
    %c0_i32_0 = arith.constant 0 : i32
    %c0_i32_1 = arith.constant 0 : i32
    return %c0_i32, %c0_i32_0 : i32, i32
  }
  func.func @transform_14(%arg0: i32, %arg1: i32) -> (i32, i32) {
    %c0_i32 = arith.constant 0 : i32
    %c0_i32_0 = arith.constant 0 : i32
    %c0_i32_1 = arith.constant 0 : i32
    return %c0_i32, %c0_i32_0 : i32, i32
  }
  func.func @transform_15(%arg0: i32, %arg1: i32) -> (i32, i32) {
    %c0_i32 = arith.constant 0 : i32
    %c0_i32_0 = arith.constant 0 : i32
    %c0_i32_1 = arith.constant 0 : i32
    return %c0_i32, %c0_i32_0 : i32, i32
  }
  func.func @transform_16(%arg0: i32, %arg1: i32) -> (i32, i32) {
    %c0_i32 = arith.constant 0 : i32
    %c0_i32_0 = arith.constant 0 : i32
    %c0_i32_1 = arith.constant 0 : i32
    return %c0_i32, %c0_i32_0 : i32, i32
  }
  func.func @transform_17(%arg0: i32, %arg1: i32) -> (i32, i32) {
    %c0_i32 = arith.constant 0 : i32
    %c0_i32_0 = arith.constant 0 : i32
    %c0_i32_1 = arith.constant 0 : i32
    return %c0_i32, %c0_i32_0 : i32, i32
  }
  func.func @transform_18(%arg0: i32, %arg1: i32) -> (i32, i32, i32) {
    %c0_i32 = arith.constant 0 : i32
    %c0_i32_0 = arith.constant 0 : i32
    return %arg0, %arg1, %c0_i32 : i32, i32, i32
  }
  func.func @transform_19(%arg0: i32, %arg1: i32) -> (i32, i32, i32, i32) {
    %c0_i32 = arith.constant 0 : i32
    %c0_i32_0 = arith.constant 0 : i32
    %c0_i32_1 = arith.constant 0 : i32
    return %arg0, %c0_i32, %arg1, %c0_i32_0 : i32, i32, i32, i32
  }
}

</mosaic_0001>

<bundles_post_ra>
// kernel: tpu_custom_call.1
= control target key start
LH: loop header
LB: loop body
LE: loop exit
PB: predicated region body
PF: predicated region fallthrough
CT: control target
= control target key end

     0   :  { %s3641_s0 = inlined_call_operand.hbm [shape: bf16[2,8,32], index: 0, kind: input, shape index: {}]   ;;  %s3642_s1 = inlined_call_operand.hbm [shape: bf16[2,8,32], index: 1, kind: input, shape index: {}]   ;;  %s3643_s2 = inlined_call_operand.vmem [shape: bf16[32,32], index: 2, kind: input, shape index: {}]   ;;  %s3644_s3 = inlined_call_operand.vmem [shape: bf16[1,32], index: 3, kind: input, shape index: {}]   ;;  %s3645_s4 = inlined_call_operand.vmem [shape: bf16[32,32], index: 4, kind: input, shape index: {}]   ;;  %s3646_s5 = inlined_call_operand.vmem [shape: bf16[1,32], index: 5, kind: input, shape index: {}]   ;;  %s3647_s6 = inlined_call_operand.vmem [shape: bf16[32,32], index: 6, kind: input, shape index: {}]   ;;  %s3648_s7 = inlined_call_operand.vmem [shape: bf16[1,32], index: 7, kind: input, shape index: {}]   ;;  %s3649_s8 = inlined_call_operand.vmem [shape: bf16[32,32], index: 8, kind: input, shape index: {}]   ;;  %s3650_s9 = inlined_call_operand.vmem [shape: bf16[1,32], index: 9, kind: input, shape index: {}]   ;;  %s3651_s10 = inlined_call_operand.vmem [shape: f32[1,32], index: 10, kind: input, shape index: {}]   ;;  %s3652_s11 = inlined_call_operand.vmem [shape: f32[1,32], index: 11, kind: input, shape index: {}]   ;;  %s3653_s12 = inlined_call_operand.vmem [shape: bf16[32,128], index: 12, kind: input, shape index: {}]   ;;  %s3654_s13 = inlined_call_operand.vmem [shape: bf16[1,128], index: 13, kind: input, shape index: {}]   ;;  %s3655_s14 = inlined_call_operand.vmem [shape: bf16[128,32], index: 14, kind: input, shape index: {}]   ;;  %s3656_s15 = inlined_call_operand.vmem [shape: bf16[1,32], index: 15, kind: input, shape index: {}]   ;;  %s3657_s16 = inlined_call_operand.vmem [shape: f32[1,32], index: 16, kind: input, shape index: {}]   ;;  %s3658_s17 = inlined_call_operand.vmem [shape: f32[1,32], index: 17, kind: input, shape index: {}]   ;;  %s3659_s18 = inlined_call_operand.hbm [shape: bf16[2,8,32], index: 18, kind: output, shape index: {0}]   ;;  %s3660_s19 = inlined_call_operand.hbm [shape: bf16[2,4,8,8], index: 19, kind: output, shape index: {1}]  }
   0x1   :  { %3673 = sst [smem:[#allocation24_spill]] %s3641_s0 }
   0x2   :  { %3674 = sst [smem:[#allocation25_spill]] %s3642_s1 }
   0x3   :  { %3675 = sst [smem:[#allocation26_spill]] %s3643_s2 }
   0x4   :  { %3676 = sst [smem:[#allocation27_spill]] %s3644_s3 }
   0x5   :  { %3677 = sst [smem:[#allocation28_spill]] %s3645_s4 }
   0x6   :  { %3678 = sst [smem:[#allocation29_spill]] %s3646_s5 }
   0x7   :  { %3679 = sst [smem:[#allocation30_spill]] %s3657_s16 }
   0x8   :  { %3680 = sst [smem:[#allocation31_spill]] %s3658_s17 }
   0x9   :  { %3681 = sst [smem:[#allocation32_spill]] %s3659_s18 }
   0xa   :  { %3682 = sst [smem:[#allocation33_spill]] %s3660_s19 }
   0xb   :  { %25 = vsyncpa [#allocation5], 0 }
   0xc   :  { %27 = vsyncpa [#allocation5 + $0x1], 0 }
   0xd   :  { %28 = vsyncpa [#allocation8], 0 }
   0xe   :  { %30 = vsyncpa [#allocation8 + $0x1], 0 }
   0xf   :  { %31 = vsyncpa [#allocation6], 0 }
  0x10   :  { %33 = vsyncpa [#allocation6 + $0x1], 0 }
  0x11   :  { %34 = vsyncpa [#allocation11], 0 }
  0x12   :  { %36 = vsyncpa [#allocation11 + $0x1], 0  ;;  %s3126_s0 = smov 0   ;;  %s3128_s30 = smov 0  }
  0x13   :  { %s3130_s20 = smov 0   ;;  %s3132_s21 = smov 0  }
  0x14   :  { %s3134_s1 = smov 0   ;;  %s3136_s22 = smov 0  }
  0x15 LB: > { %3683 = sst [smem:[#allocation16_spill]] %s2987_s0  ;;  %s2508_s2 = sadd.s32 4294967295, %s3007_s22   ;;  %s3007_s22 = sphi %s3136_s22, %s42_s22   ;;  %s3003_s1 = sphi %s3134_s1, %s3718_s1   ;;  %s2999_s21 = sphi %s3132_s21, %s3717_s21   ;;  %s2995_s20 = sphi %s3130_s20, %s3716_s20   ;;  %s2991_s30 = sphi %s3128_s30, %s3720_s30   ;;  %s2987_s0 = sphi %s3126_s0, %s3719_s0  }
  0x16   : > { %3684 = sst [smem:[#allocation17_spill]] %s2995_s20  ;;  %s2509_s23 = sadd.s32 4294967294, %s3007_s22  }
  0x17   : > { %3685 = sst [smem:[#allocation18_spill]] %s2999_s21  ;;  %s54_s24 = sadd.s32 1, %s3003_s1 }
  0x18   : > { %3686 = sst [smem:[#allocation19_spill]] %s3003_s1  ;;  %s63_s25 = sadd.s32 1, %s2995_s20 }
  0x19   : > { %p56_p0 = scmp.ge.s32.totalorder %s54_s24, 2  ;;  %p70_p1 = scmp.ne.s32.totalorder %s2995_s20, %s2991_s30 }
  0x1a   : > { %p71_p2 = scmp.eq.s32.totalorder %s3007_s22, 0  ;;  %p76_p3 = scmp.ne.s32.totalorder %s2991_s30, %s2987_s0 }
  0x1b   : > { %s3722_s24 = smov (%p56_p0, %s54_s24), 0  ;;  %p77_p5 = scmp.eq.s32.totalorder %s2508_s2, 0 }
  0x1c   : > { %3687 = sst [smem:[#allocation20_spill]] %s3722_s24  ;;  %p3167_p4 = por %p71_p2, %p70_p1 }
  0x1d   : > { %s58_s26 = ssub.s32 %s3003_s1, %s3722_s24  ;;  %p464_p6 = scmp.eq.s32.totalorder %s2508_s2, 1 }
  0x1e   : > { %p61_p7 = scmp.eq.s32.totalorder %s58_s26, 0  ;;  %p3173_p8 = por %p77_p5, %p76_p3 }
  0x1f   : > { %p3177_p9 = por %p464_p6, %p70_p1  ;;  %p470_p10 = scmp.eq.s32.totalorder %s2509_s23, 1 }
  0x20   : > { %s3182_s29 = scalar_select %p61_p7, %s2995_s20, %s63_s25  }
  0x21   : > { %s3690_s28 = scalar_select %p3177_p9, 1, 0 }
  0x22   : > { %3692 = sst [smem:[#allocation22_spill]] %s3182_s29  ;;  %p3184_p11 = por %p470_p10, %p76_p3 }
  0x23   : > { %3691 = sst [smem:[#allocation21_spill]] %s3690_s28  ;;  %p2734_p13 = scmp.lt.s32.totalorder %s3007_s22, 2 }
  0x24   : > { %s3693_s0 = scalar_select %p3184_p11, 1, 0 }
  0x25   : > { %s3191_s2 = sand.u32 1, %s2995_s20   ;;  %s2513_s24 = sshll.u32 %s3003_s1, 6 }
  0x26   : > { %3694 = sst [smem:[#allocation23_spill]] %s3693_s0  ;;  %s2512_s26 = sshll.u32 %s3191_s2, 2 }
  0x27   : > { %s3695_s16 = sld [smem:[#allocation24_spill]]  ;;  %s570_s28 = scalar_lea.vmem [#allocation4], %s2512_s26 }
  0x28   : > { %s578_s23 = sshll.u32 %s570_s28, 4  ;;  %p3200_p0 = pnand %p2734_p13, %p3167_p4  ;;  %s579_s23 = int_to_ptr.vmem [resolvable:$true] %s578_s23 }
  0x29   : > { %p2516_p1 = scmp.ge.s32.totalorder %s3007_s22, 1  ;;  %p601_p2 = scmp.lt.s32.totalorder %s3007_s22, 3 }
  0x2a   : > { %s567_s29 = scalar_lea.sflag [#allocation5], %s3191_s2  ;;  %p2839_p3 = pneg %p3200_p0 }
  0x2b   : > { %s2850_s1 = scalar_lea.vmem %s579_s23, 64 }
  0x2c   : > { %p2851_p5 = scmp.ne.s32.totalorder %s579_s23, %s2850_s1 }
  0x2d   : > { %s576_s19 = scalar_lea.hbm %s3695_s16, %s2513_s24  ;;  %s3009_s16 = smov [#allocation4]  }
  0x2e   : > { %p2853_p6 = pnand %p2851_p5, %p2839_p3  ;;  %s2855_s17 = sshll.u32 %s3009_s16, 4  ;;  %s2856_s17 = int_to_ptr.vmem [resolvable:$false] %s2855_s17 }
  0x2f   : > { %s2857_s18 = scalar_lea.vmem %s2856_s17, 128  ;;  %p2858_p4 = scmp.lt.s32.totalorder %s579_s23, %s2856_s17 }
  0x30   : > { %p2854_p7 = pneg %p2853_p6  ;;  %p2859_p10 = scmp.lt.s32.totalorder %s2857_s18, %s2850_s1 }
  0x32   : > { %p2860_p13 = por %p2859_p10, %p2858_p4 }
  0x34   : > { %p2861_p12 = pnand %p2860_p13, %p2854_p7 }
  0x36   : > { %2864 = shalt.err (!%p2861_p12)
}
  0x37   : > { %2723 = dma.hbm_to_vmem [thread:$0]  (!%p3200_p0), %s576_s19, 64, %s579_s23, %s567_s29  }
  0x38   : > { %p3218_p5 = pnand %p2516_p1, %p601_p2  ;;  %s3698_s17 = sld [smem:[#allocation25_spill]] }
  0x39   : > { %s589_s18 = scalar_lea.vmem [#allocation7], %s2512_s26  ;;  %s586_s0 = scalar_lea.sflag [#allocation8], %s3191_s2 }
  0x3a   : > { %s596_s20 = sshll.u32 %s589_s18, 4  ;;  %s3010_s19 = smov [#allocation7]   ;;  %s597_s20 = int_to_ptr.vmem [resolvable:$true] %s596_s20 }
  0x3b   : > { %s2878_s21 = scalar_lea.vmem %s597_s20, 64  ;;  %s2883_s29 = sshll.u32 %s3010_s19, 4  ;;  %s2884_s29 = int_to_ptr.vmem [resolvable:$false] %s2883_s29 }
  0x3c   : > { %p2879_p12 = scmp.ne.s32.totalorder %s597_s20, %s2878_s21  ;;  %s2885_s23 = scalar_lea.vmem %s2884_s29, 128 }
  0x3d   : > { %p2886_p1 = scmp.lt.s32.totalorder %s597_s20, %s2884_s29  ;;  %p2887_p2 = scmp.lt.s32.totalorder %s2885_s23, %s2878_s21 }
  0x3e   : > { %s594_s1 = scalar_lea.hbm %s3698_s17, %s2513_s24  ;;  %p2881_p6 = pnand %p2879_p12, %p2839_p3 }
  0x3f   : > { %p2888_p4 = por %p2887_p2, %p2886_p1 }
  0x40   : > { %p2882_p7 = pneg %p2881_p6 }
  0x42   : > { %p2889_p10 = pnand %p2888_p4, %p2882_p7 }
  0x44   : > { %2892 = shalt.err (!%p2889_p10)
}
  0x45   : > { %2726 = dma.hbm_to_vmem [thread:$0]  (!%p3200_p0), %s594_s1, 64, %s597_s20, %s586_s0  }
  0x46   : > { %605 = sbr.rel (%p3218_p5) target bundleno = 2562 (0xa02), region = 92  ;;  %s3234_s24 = sand.u32 (!%p3218_p5), 1, %s2991_s30  }
  0x47   : > { %s3237_s2 = sshll.u32 (!%p3218_p5), %s3234_s24, 2  ;;  %s608_s26 = scalar_lea.sflag (!%p3218_p5), [#allocation5], %s3234_s24 }
  0x48   : > { %s611_s21 = scalar_lea.vmem (!%p3218_p5), [#allocation4], %s3237_s2 }
  0x4b   : > { %2970 = dma.done.wait (%p3173_p8), %s608_s26, 64  }
  0x4c   : > { %2972 = vsyncadd (%p3173_p8), %s608_s26, 4294967232  ;;  %s617_s0 = scalar_lea.sflag [#allocation8], %s3234_s24  ;;  %s620_s20 = scalar_lea.vmem [#allocation7], %s3237_s2 }
  0x4d   : > { %2974 = dma.done.wait (%p3173_p8), %s617_s0, 64  }
  0x4e   : > { %2976 = vsyncadd (%p3173_p8), %s617_s0, 4294967232  ;;  %v3011_v0 = vmov 0.0   ;;  %vm3012_vm0 = vmmov 0   ;;  %s3699_s4 = sld [smem:[#allocation28_spill]]  ;;  %v690_v3 = vld [vmem:[%s620_s20] sm:$0xf]  ;;  %v697_v9 = vlaneseq }
  0x4f   : > { %2604 = vmatprep.subr.bf16.mxu0 %v3011_v0  ;;  %2608 = vmatprep.mubr.msk.bf16.mxu0 %vm3012_vm0, %v3011_v0  ;;  %vm713_vm1 = vcmask 261120   ;;  %v2799_v4 = vld [vmem:[%s3647_s6 + $0x8] sm:$0xff]   ;;  %v2800_v5 = vld [vmem:[%s3647_s6] sm:$0xff]   ;;  %s3700_s23 = sld [smem:[#allocation26_spill]]  ;;  %s3014_s3 = smov 104   ;;  %v3018_v56 = vmov 0  }
  0x50   : > { %2628 = vmatprep.subr.bf16.mxu1 %v3011_v0  ;;  %2630 = vmatprep.mubr.msk.bf16.mxu1 %vm3012_vm0, %v3011_v0  ;;  %v3288_v8 = vld [vmem:[%s611_s21] sm:$0xf]  ;;  %v698_v10 = vshrl.u32 %v697_v9, 7  ;;  %s3701_s5 = sld [smem:[#allocation29_spill]]  ;;  %s3013_s21 = smov 120   ;;  %vm993_vm2 = vcmask 60416  }
  0x51   : > { %s3702_s16 = sld [smem:[#allocation27_spill]]  ;;  %s3015_s17 = smov 112   ;;  %v3016_v35 = vmov 1983009808   ;;  %v3017_v37 = vmov 1934713408  }
  0x52   : > { %v3298_v13 = vsub.s32 0, %v698_v10  ;;  %v829_v36 = vunpack.c.l.s4 %v3016_v35  ;;  %v846_v38 = vunpack.c.l.s4 %v3017_v37  ;;  %vm1416_vm3 = vcmask 64512   ;;  %s2520_s19 = sshll.u32 %s3234_s24, 4  ;;  %s3021_s28 = smov 24  }
  0x53   : > { %vm1661_vm4 = vcmask 1043456   ;;  %s3440_s29 = scalar_lea.vmem [#allocation10], %s2520_s19  ;;  %vm2014_vm5 = vcmask 130048   ;;  %vm2017_vm6 = vcmask 195584   ;;  %s3703_s18 = sld [smem:[#allocation18_spill]] }
  0x54   : > { %v2797_v1 = vld [vmem:[%s3699_s4 + $0x8] sm:$0xff]   ;;  %v2798_v2 = vld [vmem:[%s3699_s4] sm:$0xff]   ;;  %v830_v39 = vunpack.c.0.s8 %v829_v36  ;;  %v847_v40 = vunpack.c.0.s8 %v846_v38  ;;  %s2368_s0 = sshll.u32 %s3440_s29, 4  ;;  %s3569_s0 = int_to_ptr.vmem [resolvable:$true] %s2368_s0 }
  0x55   : > { %2605 = vmatpush3.bf16.msra.mxu0 %v2797_v1  ;;  %v2801_v6 = vld [vmem:[%s3700_s23 + $0x8] sm:$0xff]   ;;  %v2802_v7 = vld [vmem:[%s3700_s23] sm:$0xff]  }
  0x56   : > { %2606 = vmatprep.subr.bf16.mxu0 %v3011_v0  ;;  %v695_v11 = vld [vmem:[%s3701_s5] sm:$0x1]  ;;  %v3313_v41 = vsub.s32 %v830_v39, %v698_v10  ;;  %v3315_v44 = vsub.s32 %v847_v40, %v698_v10 }
  0x57   : > { %v696_v12 = vunpack.c.l.bf16 %v695_v11  ;;  %v1180_v21 = vld [vmem:[%s3702_s16] sm:$0x1]  ;;  %s2893_s16 = scalar_lea.vmem %s3569_s0, 256 }
  0x58   : > { %v1181_v23 = vunpack.c.l.bf16 %v1180_v21  ;;  %p2894_p8 = scmp.ne.s32.totalorder %s3569_s0, %s2893_s16 }
  0x59   : > { %2607 = vmatpush3.bf16.msra.mxu0 %v2798_v2  ;;  %v700_v14 = vrot.slane %v696_v12, %v3298_v13  ;;  %s2563_s26 = sshll.u32 %s3703_s18, 8 }
  0x5a   : > { %2612 = vmatprep.subr.bf16.mxu0 %v3011_v0  ;;  %v1185_v26 = vrot.slane %v1181_v23, %v3298_v13  ;;  %p2895_p0 = pnand %p2894_p8, %p3177_p9 }
  0x5c   : > { %2609 = vmatmul.mubr.msk.bf16.vlgmr.msra.gmra.mxu0 %vm713_vm1, %v690_v3  ;;  %p2896_p3 = pneg %p2895_p0 }
  0x5d   : > { %2613 = vmatpush3.bf16.msra.mxu0 %v2799_v4  ;;  %2616 = vmatprep.mubr.msk.bf16.mxu0 %vm3012_vm0, %v3011_v0 }
  0x5e   : > { %2614 = vmatprep.subr.bf16.mxu0 %v3011_v0 }
  0x61   : > { %2615 = vmatpush3.bf16.msra.mxu0 %v2800_v5 }
  0x62   : > { %2620 = vmatprep.subr.bf16.mxu0 %v3011_v0 }
  0x64   : > { %2617 = vmatmul.mubr.msk.bf16.vlgmr.msra.gmra.mxu0 %vm713_vm1, %v690_v3 }
  0x65   : > { %2621 = vmatpush3.bf16.msra.mxu0 %v2801_v6  ;;  %2624 = vmatprep.mubr.msk.bf16.mxu0 %vm3012_vm0, %v3011_v0 }
  0x66   : > { %2622 = vmatprep.subr.bf16.mxu0 %v3011_v0 }
  0x69   : > { %2623 = vmatpush3.bf16.msra.mxu0 %v2802_v7 }
  0x6a   : > { %2634 = vmatprep.subr.bf16.mxu0 %v3011_v0 }
  0x6c   : > { %2625 = vmatmul.mubr.msk.bf16.vlgmr.msra.gmra.mxu0 %vm713_vm1, %v3288_v8 }
  0x6d   : > { %2636 = vmatprep.mubr.msk.bf16.mxu0 %vm3012_vm0, %v3011_v0 }
 0x11c   : > { %v751_v15 = vpop.f32.mrf.mxu0 }
 0x11d   : > { %v752_v16 = vadd.f32 %v751_v15, %v700_v14 }
 0x11e   : > { %v2610_v17 = vpop.f32.mrf.mxu0 }
 0x11f   : > { %v757_v18 = vpack.c.bf16 %v752_v16, %v752_v16 }
 0x120   : > { %v754_v19 = vpop.f32.mrf.mxu0 }
 0x121   : > { %822 = vrot.lane.b32.xlu0 %v757_v18, %s3013_s21  ;;  %826 = vrot.lane.b32.xlu1 %v757_v18, %s3014_s3  ;;  %v834_v52 = vrot.slane %v757_v18, %v3313_v41 }
 0x122   : > { %v2611_v20 = vpop.f32.mrf.mxu0 }
 0x124   : > { %v3306_v22 = vpop.f32.mrf.mxu0 }
 0x125   : > { %824 = vrot.lane.b32.xlu0 %v757_v18, %s3015_s17 }
 0x126   : > { %v2618_v24 = vpop.f32.mrf.mxu0 }
 0x128   : > { %v817_v25 = vpop.f32.mrf.mxu0 }
 0x12a   : > { %v2619_v27 = vpop.f32.mrf.mxu0 }
 0x12c   : > { %v1236_v28 = vpop.f32.mrf.mxu0 }
 0x12d   : > { %v1237_v29 = vadd.f32 %v1236_v28, %v1185_v26 }
 0x12e   : > { %v2626_v30 = vpop.f32.mrf.mxu0 }
 0x12f   : > { %v1242_v31 = vmul.f32 0.35355338, %v1237_v29 }
 0x130   : > { %v1239_v32 = vpop.f32.mrf.mxu0 }
 0x131   : > { %v1243_v33 = vpack.c.bf16 %v1242_v31, %v1242_v31 }
 0x132   : > { %v2627_v34 = vpop.f32.mrf.mxu0 }
 0x133   : > { %1247 = vrot.lane.b32.xlu0 %v1243_v33, %s3015_s17  ;;  %1245 = vrot.lane.b32.xlu1 %v1243_v33, %s3013_s21  ;;  %v1257_v27 = vrot.slane %v1243_v33, %v3313_v41 }
 0x137   : > { %1249 = vrot.lane.b32.xlu1 %v1243_v33, %s3014_s3 }
 0x193   : > { %v823_v42 = vpop.permute.xlu0 %822  ;;  %v827_v43 = vpop.permute.xlu1 %826 }
 0x194   : > { %v868_v45 = vrot.slane %v823_v42, %v3313_v41  ;;  %v876_v46 = vrot.slane %v827_v43, %v3313_v41 }
 0x196   : > { %v877_v47 = vcombine.low %v868_v45, %v876_v46  ;;  %v878_v48 = vcombine.high %v868_v45, %v876_v46 }
 0x197   : > { %v825_v49 = vpop.permute.xlu0 %824 }
 0x198   : > { %v885_v50 = vrot.slane %v877_v47, %v3315_v44  ;;  %v842_v51 = vrot.slane %v825_v49, %v3313_v41  ;;  %v892_v53 = vrot.slane %v878_v48, %v3315_v44 }
 0x19a   : > { %v843_v54 = vcombine.low %v834_v52, %v842_v51  ;;  %v844_v55 = vcombine.high %v834_v52, %v842_v51  ;;  %v893_v57 = vcombine.high %v885_v50, %v3018_v56  ;;  %v894_v60 = vcombine.high %v892_v53, %v3018_v56 }
 0x19b   : > { %v900_v61 = vshrl.u32 %v885_v50, 16  ;;  %v916_v4 = vshrl.u32 %v892_v53, 16 }
 0x19c   : > { %v851_v58 = vrot.slane %v843_v54, %v3315_v44  ;;  %v858_v59 = vrot.slane %v844_v55, %v3315_v44  ;;  %v908_v3 = vshrl.u32 %v893_v57, 16  ;;  %v924_v12 = vshrl.u32 %v894_v60, 16 }
 0x19e   : > { %v859_v62 = vcombine.high %v851_v58, %v3018_v56  ;;  %v860_v63 = vcombine.high %v858_v59, %v3018_v56  ;;  %v897_v1 = vpack.i.b16 %v885_v50, %v851_v58  ;;  %v899_v2 = vshrl.u32 %v851_v58, 16 }
 0x19f   : > { %v913_v5 = vpack.i.b16 %v892_v53, %v858_v59  ;;  %v915_v6 = vshrl.u32 %v858_v59, 16 }
 0x1a0   : > { %v901_v7 = vpack.i.b16 %v900_v61, %v899_v2  ;;  %v905_v9 = vpack.i.b16 %v893_v57, %v859_v62  ;;  %v907_v10 = vshrl.u32 %v859_v62, 16  ;;  %v921_v11 = vpack.i.b16 %v894_v60, %v860_v63 }
 0x1a1   : > { %v917_v14 = vpack.i.b16 %v916_v4, %v915_v6  ;;  %v923_v15 = vshrl.u32 %v860_v63, 16  ;;  %v927_v16 = vcombine.low %v897_v1, %v913_v5 }
 0x1a2   : > { %v909_v17 = vpack.i.b16 %v908_v3, %v907_v10  ;;  %v935_v18 = vcombine.low %v905_v9, %v921_v11 }
 0x1a3   : > { %v925_v19 = vpack.i.b16 %v924_v12, %v923_v15  ;;  %v952_v20 = vcombine.low %v901_v7, %v917_v14  ;;  %v934_v21 = vrot.slane %v927_v16, %v3313_v41 }
 0x1a4   : > { %v942_v23 = vrot.slane %v935_v18, %v3313_v41 }
 0x1a5   : > { %v1248_v24 = vpop.permute.xlu0 %1247  ;;  %v1246_v25 = vpop.permute.xlu1 %1245  ;;  %v960_v26 = vcombine.low %v909_v17, %v925_v19  ;;  %v959_v30 = vrot.slane %v952_v20, %v3313_v41 }
 0x1a6   : > { %v1265_v28 = vrot.slane %v1248_v24, %v3313_v41  ;;  %v943_v29 = vcombine.low %v934_v21, %v942_v23  ;;  %v1291_v42 = vrot.slane %v1246_v25, %v3313_v41 }
 0x1a7   : > { %v967_v31 = vrot.slane %v960_v26, %v3313_v41 }
 0x1a8   : > { %v1266_v32 = vcombine.low %v1257_v27, %v1265_v28  ;;  %v1267_v34 = vcombine.high %v1257_v27, %v1265_v28  ;;  %v950_v35 = vrot.slane %v943_v29, %v3315_v44 }
 0x1a9   : > { %v1250_v36 = vpop.permute.xlu1 %1249  ;;  %v968_v37 = vcombine.low %v959_v30, %v967_v31 }
 0x1aa   : > { %v1274_v38 = vrot.slane %v1266_v32, %v3315_v44  ;;  %v1281_v39 = vrot.slane %v1267_v34, %v3315_v44  ;;  %v1299_v40 = vrot.slane %v1250_v36, %v3313_v41  ;;  %v951_v33 = vcombine.high %v950_v35, %v3018_v56 }
 0x1ab   : > { %v975_v43 = vrot.slane %v968_v37, %v3315_v44  ;;  %v981_v45 = vshrl.u32 %v950_v35, 16 }
 0x1ac   : > { %v1282_v46 = vcombine.high %v1274_v38, %v3018_v56  ;;  %v1300_v47 = vcombine.low %v1291_v42, %v1299_v40  ;;  %v1301_v48 = vcombine.high %v1291_v42, %v1299_v40  ;;  %v1283_v52 = vcombine.high %v1281_v39, %v3018_v56 }
 0x1ad   : > { %v976_v49 = vcombine.high %v975_v43, %v3018_v56  ;;  %v979_v50 = vpack.i.b16 %v975_v43, %v950_v35  ;;  %v982_v51 = vshrl.u32 %v975_v43, 16  ;;  %v989_v53 = vshrl.u32 %v951_v33, 16 }
 0x1ae   : > { %v1322_v54 = vshrl.u32 %v1274_v38, 16  ;;  %v1308_v55 = vrot.slane %v1300_v47, %v3315_v44  ;;  %v1315_v57 = vrot.slane %v1301_v48, %v3315_v44  ;;  %v1338_v61 = vshrl.u32 %v1281_v39, 16 }
 0x1af   : > { %v983_v58 = vpack.i.b16 %v982_v51, %v981_v45  ;;  %v987_v59 = vpack.i.b16 %v976_v49, %v951_v33  ;;  %v990_v60 = vshrl.u32 %v976_v49, 16  ;;  %994 = vst.msk [vmem:[#allocation2] sm:$0xf] %vm993_vm2, %v979_v50  ;;  %v1330_v4 = vshrl.u32 %v1282_v46, 16 }
 0x1b0   : > { %v1316_v62 = vcombine.high %v1308_v55, %v3018_v56  ;;  %v1317_v63 = vcombine.high %v1315_v57, %v3018_v56  ;;  %v1320_v1 = vpack.i.b16 %v1308_v55, %v1274_v38  ;;  %v1323_v2 = vshrl.u32 %v1308_v55, 16 }
 0x1b1   : > { %v991_v3 = vpack.i.b16 %v990_v60, %v989_v53  ;;  %995 = vst.msk [vmem:[#allocation2 + $0x4] sm:$0xf] %vm993_vm2, %v983_v58  ;;  %996 = vst.msk [vmem:[#allocation2 + $0x8] sm:$0xf] %vm993_vm2, %v987_v59  ;;  %v1336_v5 = vpack.i.b16 %v1315_v57, %v1281_v39  ;;  %v1339_v6 = vshrl.u32 %v1315_v57, 16  ;;  %v1346_v12 = vshrl.u32 %v1283_v52, 16 }
 0x1b2   : > { %v1324_v7 = vpack.i.b16 %v1323_v2, %v1322_v54  ;;  %v1328_v9 = vpack.i.b16 %v1316_v62, %v1282_v46  ;;  %v1331_v10 = vshrl.u32 %v1316_v62, 16  ;;  %v1344_v11 = vpack.i.b16 %v1317_v63, %v1283_v52  ;;  %v762_v57 = vld [vmem:[%s3648_s7] sm:$0x1] }
 0x1b3   : > { %997 = vst.msk [vmem:[#allocation2 + $0xc] sm:$0xf] %vm993_vm2, %v991_v3  ;;  %v1340_v14 = vpack.i.b16 %v1339_v6, %v1338_v61  ;;  %v1347_v15 = vshrl.u32 %v1317_v63, 16  ;;  %v1350_v16 = vcombine.low %v1320_v1, %v1336_v5  ;;  %v763_v62 = vunpack.c.l.bf16 %v762_v57 }
 0x1b4   : > { %v1332_v17 = vpack.i.b16 %v1331_v10, %v1330_v4  ;;  %v1358_v18 = vcombine.low %v1328_v9, %v1344_v11 }
 0x1b5   : > { %v1348_v19 = vpack.i.b16 %v1347_v15, %v1346_v12  ;;  %v1375_v20 = vcombine.low %v1324_v7, %v1340_v14  ;;  %v1357_v21 = vrot.slane %v1350_v16, %v3313_v41  ;;  %v767_v5 = vrot.slane %v763_v62, %v3298_v13 }
 0x1b6   : > { %v1365_v23 = vrot.slane %v1358_v18, %v3313_v41  ;;  %v1412_v24 = vld [vmem:[#allocation2] sm:$0xf] }
 0x1b7   : > { %v1383_v25 = vcombine.low %v1332_v17, %v1348_v19  ;;  %v1421_v26 = vsel %vm1416_vm3, %v1412_v24, 0  ;;  %v1382_v29 = vrot.slane %v1375_v20, %v3313_v41  ;;  %v815_v12 = vadd.f32 %v3306_v22, %v767_v5 }
 0x1b8   : > { %2629 = vmatpush3.bf16.xpose.msra.mxu1 %v1421_v26  ;;  %v1413_v27 = vld [vmem:[#allocation2 + $0x4] sm:$0xf]  ;;  %v1366_v28 = vcombine.low %v1357_v21, %v1365_v23  ;;  %v1414_v36 = vld [vmem:[#allocation2 + $0x8] sm:$0xf] }
 0x1b9   : > { %v1467_v30 = vsel %vm1416_vm3, %v1413_v27, 0  ;;  %2640 = vmatprep.subr.bf16.mxu1 %v3011_v0  ;;  %v1390_v31 = vrot.slane %v1383_v25, %v3313_v41  ;;  %v1513_v33 = vsel %vm1416_vm3, %v1414_v36, 0  ;;  %v820_v15 = vpack.c.bf16 %v815_v12, %v815_v12 }
 0x1ba   : > { %2635 = vmatpush3.bf16.xpose.msra.mxu0 %v1467_v30  ;;  %v1373_v32 = vrot.slane %v1366_v28, %v3315_v44  ;;  %v1415_v40 = vld [vmem:[#allocation2 + $0xc] sm:$0xf] }
 0x1bb   : > { %v1391_v34 = vcombine.low %v1382_v29, %v1390_v31  ;;  %2646 = vmatprep.subr.bf16.mxu0 %v3011_v0  ;;  %v1559_v45 = vsel %vm1416_vm3, %v1415_v40, 0 }
 0x1bc   : > { %v1403_v38 = vshrl.u32 %v1373_v32, 16  ;;  %v1374_v46 = vcombine.high %v1373_v32, %v3018_v56 }
 0x1bd   : > { %v1398_v35 = vrot.slane %v1391_v34, %v3315_v44 }
 0x1be   : > { %v1409_v49 = vshrl.u32 %v1374_v46, 16 }
 0x1bf   : > { %v1402_v37 = vpack.i.b16 %v1398_v35, %v1373_v32  ;;  %v1404_v39 = vshrl.u32 %v1398_v35, 16  ;;  %v1399_v43 = vcombine.high %v1398_v35, %v3018_v56 }
 0x1c1   : > { %2631 = vmatmul.mubr.msk.bf16.vlgmr.msra.gmra.mxu1 %vm1416_vm3, %v1402_v37  ;;  %v1405_v42 = vpack.i.b16 %v1404_v39, %v1403_v38  ;;  %v1410_v47 = vshrl.u32 %v1399_v43, 16  ;;  %v1408_v48 = vpack.i.b16 %v1399_v43, %v1374_v46  ;;  %v1011_v39 = vrot.slane %v820_v15, %v3313_v41 }
 0x1c2   : > { %2641 = vmatpush3.bf16.xpose.msra.mxu1 %v1513_v33  ;;  %2642 = vmatprep.mubr.msk.bf16.mxu1 %vm3012_vm0, %v3011_v0 }
 0x1c3   : > { %2637 = vmatmul.mubr.msk.bf16.vlgmr.msra.gmra.mxu0 %vm1416_vm3, %v1405_v42  ;;  %2652 = vmatprep.subr.bf16.mxu1 %v3011_v0  ;;  %v1411_v50 = vpack.i.b16 %v1410_v47, %v1409_v49 }
 0x1c4   : > { %2647 = vmatpush3.bf16.xpose.msra.mxu0 %v1559_v45  ;;  %2648 = vmatprep.mubr.msk.bf16.mxu0 %vm3012_vm0, %v3011_v0 }
 0x1c5   : > { %2658 = vmatprep.subr.bf16.mxu0 %v3011_v0 }
 0x1c9   : > { %2643 = vmatmul.mubr.msk.bf16.vlgmr.msra.gmra.mxu1 %vm1416_vm3, %v1408_v48 }
 0x1ca   : > { %2654 = vmatprep.mubr.msk.bf16.mxu1 %vm3012_vm0, %v3011_v0 }
 0x1cb   : > { %2649 = vmatmul.mubr.msk.bf16.vlgmr.msra.gmra.mxu0 %vm1416_vm3, %v1411_v50 }
 0x1cc   : > { %2660 = vmatprep.mubr.msk.bf16.mxu0 %vm3012_vm0, %v3011_v0 }
 0x281   : > { %v1457_v51 = vpop.f32.mrf.mxu1 }
 0x282   : > { %v1601_v52 = vsel %vm1416_vm3, %v1457_v51, -inf }
 0x283   : > { %1602 = vmax.xlane.f32.xlu0 %v1601_v52  ;;  %v2632_v53 = vpop.f32.mrf.mxu1  ;;  %v1503_v54 = vpop.f32.mrf.mxu0 }
 0x284   : > { %v1604_v55 = vsel %vm1416_vm3, %v1503_v54, -inf }
 0x285   : > { %v1460_v58 = vpop.f32.mrf.mxu1  ;;  %1605 = vmax.xlane.f32.xlu1 %v1604_v55  ;;  %v2638_v59 = vpop.f32.mrf.mxu0 }
 0x287   : > { %v2633_v60 = vpop.f32.mrf.mxu1  ;;  %v1506_v61 = vpop.f32.mrf.mxu0 }
 0x289   : > { %v2639_v63 = vpop.f32.mrf.mxu0  ;;  %v1549_v1 = vpop.f32.mrf.mxu1 }
 0x28a   : > { %v1607_v2 = vsel %vm1416_vm3, %v1549_v1, -inf }
 0x28b   : > { %1608 = vmax.xlane.f32.xlu0 %v1607_v2  ;;  %v2644_v3 = vpop.f32.mrf.mxu1  ;;  %v1595_v4 = vpop.f32.mrf.mxu0 }
 0x28c   : > { %v1610_v9 = vsel %vm1416_vm3, %v1595_v4, -inf }
 0x28d   : > { %v1552_v6 = vpop.f32.mrf.mxu1  ;;  %v2650_v7 = vpop.f32.mrf.mxu0 }
 0x28f   : > { %v2645_v10 = vpop.f32.mrf.mxu1  ;;  %1611 = vmax.xlane.f32.xlu0 %v1610_v9  ;;  %v1598_v11 = vpop.f32.mrf.mxu0 }
 0x291   : > { %v2651_v14 = vpop.f32.mrf.mxu0 }
 0x296   : > { %999 = vrot.lane.b32.xlu1 %v820_v15, %s3013_s21  ;;  %s3019_s21 = smov 8  }
 0x29a   : > { %1003 = vrot.lane.b32.xlu1 %v820_v15, %s3014_s3  ;;  %s3020_s3 = smov 16  }
 0x2a5   : > { %1001 = vrot.lane.b32.xlu0 %v820_v15, %s3015_s17  ;;  %s3022_s17 = smov [#allocation10]  }
 0x2a6   : > { %s2897_s1 = sshll.u32 %s3022_s17, 4  ;;  %s2898_s1 = int_to_ptr.vmem [resolvable:$false] %s2897_s1 }
 0x2a7   : > { %p2900_p13 = scmp.lt.s32.totalorder %s3569_s0, %s2898_s1 }
 0x30c   : > { %v1603_v16 = vpop.xlane.xlu0 %1602 }
 0x30d   : > { %v1613_v17 = vsub.f32 %v1457_v51, %v1603_v16 }
 0x30e   : > { %v1606_v18 = vpop.xlane.xlu1 %1605 }
 0x30f   : > { %v1617_v19 = vmul.f32 1.442695, %v1613_v17  ;;  %v1614_v20 = vsub.f32 %v1503_v54, %v1606_v18 }
 0x311   : > { %2815 = vpow2.f32 %v1617_v19  ;;  %v1619_v21 = vmul.f32 1.442695, %v1614_v20 }
 0x312   : > { %v1000_v23 = vpop.permute.xlu1 %999 }
 0x313   : > { %2817 = vpow2.f32 %v1619_v21  ;;  %v1045_v26 = vrot.slane %v1000_v23, %v3313_v41 }
 0x314   : > { %v1609_v24 = vpop.xlane.xlu0 %1608 }
 0x315   : > { %v1615_v25 = vsub.f32 %v1549_v1, %v1609_v24 }
 0x316   : > { %v1004_v22 = vpop.permute.xlu1 %1003 }
 0x317   : > { %v1621_v27 = vmul.f32 1.442695, %v1615_v25  ;;  %v1053_v28 = vrot.slane %v1004_v22, %v3313_v41 }
 0x318   : > { %v1612_v29 = vpop.xlane.xlu0 %1611 }
 0x319   : > { %2819 = vpow2.f32 %v1621_v27  ;;  %v1054_v30 = vcombine.low %v1045_v26, %v1053_v28  ;;  %v1055_v31 = vcombine.high %v1045_v26, %v1053_v28  ;;  %v1616_v32 = vsub.f32 %v1595_v4, %v1612_v29 }
 0x31b   : > { %v1623_v34 = vmul.f32 1.442695, %v1616_v32  ;;  %v1062_v36 = vrot.slane %v1054_v30, %v3315_v44  ;;  %v1069_v37 = vrot.slane %v1055_v31, %v3315_v44 }
 0x31c   : > { %v1002_v35 = vpop.permute.xlu0 %1001 }
 0x31d   : > { %2821 = vpow2.f32 %v1623_v34  ;;  %v1019_v40 = vrot.slane %v1002_v35, %v3313_v41  ;;  %v1070_v46 = vcombine.high %v1062_v36, %v3018_v56  ;;  %v1071_v47 = vcombine.high %v1069_v37, %v3018_v56 }
 0x31e   : > { %v3397_v38 = vpop.eup %2815  ;;  %v1077_v51 = vshrl.u32 %v1062_v36, 16  ;;  %v1093_v52 = vshrl.u32 %v1069_v37, 16 }
 0x31f   : > { %v1625_v33 = vsel %vm1416_vm3, %v3397_v38, 0.0  ;;  %v1020_v43 = vcombine.low %v1011_v39, %v1019_v40  ;;  %v1021_v45 = vcombine.high %v1011_v39, %v1019_v40  ;;  %v1085_v58 = vshrl.u32 %v1070_v46, 16 }
 0x320   : > { %v3403_v42 = vpop.eup %2817  ;;  %1626 = vadd.xlane.f32.xlu1 %v1625_v33  ;;  %v1101_v59 = vshrl.u32 %v1071_v47, 16 }
 0x321   : > { %v1628_v48 = vsel %vm1416_vm3, %v3403_v42, 0.0  ;;  %v1028_v49 = vrot.slane %v1020_v43, %v3315_v44  ;;  %v1035_v50 = vrot.slane %v1021_v45, %v3315_v44 }
 0x322   : > { %1629 = vadd.xlane.f32.xlu0 %v1628_v48 }
 0x323   : > { %v1036_v53 = vcombine.high %v1028_v49, %v3018_v56  ;;  %v1037_v54 = vcombine.high %v1035_v50, %v3018_v56  ;;  %v1074_v55 = vpack.i.b16 %v1062_v36, %v1028_v49  ;;  %v1076_v57 = vshrl.u32 %v1028_v49, 16 }
 0x324   : > { %v1090_v60 = vpack.i.b16 %v1069_v37, %v1035_v50  ;;  %v1092_v61 = vshrl.u32 %v1035_v50, 16 }
 0x325   : > { %v1078_v63 = vpack.i.b16 %v1077_v51, %v1076_v57  ;;  %v1082_v1 = vpack.i.b16 %v1070_v46, %v1036_v53  ;;  %v1084_v2 = vshrl.u32 %v1036_v53, 16  ;;  %v1098_v3 = vpack.i.b16 %v1071_v47, %v1037_v54 }
 0x326   : > { %v3413_v62 = vpop.eup %2819  ;;  %v1094_v4 = vpack.i.b16 %v1093_v52, %v1092_v61  ;;  %v1100_v5 = vshrl.u32 %v1037_v54, 16  ;;  %v1104_v6 = vcombine.low %v1074_v55, %v1090_v60 }
 0x327   : > { %v1631_v7 = vsel %vm1416_vm3, %v3413_v62, 0.0  ;;  %v1086_v9 = vpack.i.b16 %v1085_v58, %v1084_v2  ;;  %v1112_v10 = vcombine.low %v1082_v1, %v1098_v3 }
 0x328   : > { %1632 = vadd.xlane.f32.xlu0 %v1631_v7  ;;  %v1102_v11 = vpack.i.b16 %v1101_v59, %v1100_v5  ;;  %v1129_v12 = vcombine.low %v1078_v63, %v1094_v4  ;;  %v1111_v14 = vrot.slane %v1104_v6, %v3313_v41 }
 0x329   : > { %v1119_v15 = vrot.slane %v1112_v10, %v3313_v41 }
 0x32a   : > { %v3419_v16 = vpop.eup %2821  ;;  %v1137_v17 = vcombine.low %v1086_v9, %v1102_v11  ;;  %v1136_v20 = vrot.slane %v1129_v12, %v3313_v41 }
 0x32b   : > { %v1120_v18 = vcombine.low %v1111_v14, %v1119_v15  ;;  %v1634_v19 = vsel %vm1416_vm3, %v3419_v16, 0.0 }
 0x32c   : > { %v1144_v21 = vrot.slane %v1137_v17, %v3313_v41  ;;  %1635 = vadd.xlane.f32.xlu1 %v1634_v19 }
 0x32d   : > { %v1127_v23 = vrot.slane %v1120_v18, %v3315_v44 }
 0x32e   : > { %v1145_v24 = vcombine.low %v1136_v20, %v1144_v21 }
 0x32f   : > { %v1128_v25 = vcombine.high %v1127_v23, %v3018_v56  ;;  %v1158_v28 = vshrl.u32 %v1127_v23, 16 }
 0x330   : > { %v1152_v22 = vrot.slane %v1145_v24, %v3315_v44 }
 0x331   : > { %v1166_v32 = vshrl.u32 %v1128_v25, 16 }
 0x332   : > { %v1153_v26 = vcombine.high %v1152_v22, %v3018_v56  ;;  %v1156_v27 = vpack.i.b16 %v1152_v22, %v1127_v23  ;;  %v1159_v29 = vshrl.u32 %v1152_v22, 16 }
 0x334   : > { %v1160_v30 = vpack.i.b16 %v1159_v29, %v1158_v28  ;;  %v1164_v31 = vpack.i.b16 %v1153_v26, %v1128_v25  ;;  %v1167_v34 = vshrl.u32 %v1153_v26, 16  ;;  %1170 = vst.msk [vmem:[#allocation3] sm:$0xf] %vm993_vm2, %v1156_v27 }
 0x336   : > { %v1168_v35 = vpack.i.b16 %v1167_v34, %v1166_v32  ;;  %1171 = vst.msk [vmem:[#allocation3 + $0x4] sm:$0xf] %vm993_vm2, %v1160_v30  ;;  %1172 = vst.msk [vmem:[#allocation3 + $0x8] sm:$0xf] %vm993_vm2, %v1164_v31 }
 0x338   : > { %1173 = vst.msk [vmem:[#allocation3 + $0xc] sm:$0xf] %vm993_vm2, %v1168_v35 }
 0x33b   : > { %v1654_v36 = vld [vmem:[#allocation3] sm:$0xf] }
 0x33c   : > { %v1663_v37 = vsel %vm1661_vm4, %v1654_v36, 0 }
 0x33d   : > { %2653 = vmatpush3.bf16.msra.mxu1 %v1663_v37  ;;  %v1655_v39 = vld [vmem:[#allocation3 + $0x4] sm:$0xf]  ;;  %v1656_v50 = vld [vmem:[#allocation3 + $0x8] sm:$0xf] }
 0x33e   : > { %v1709_v40 = vsel %vm1661_vm4, %v1655_v39, 0  ;;  %2664 = vmatprep.subr.bf16.mxu1 %v3011_v0  ;;  %v1755_v54 = vsel %vm1661_vm4, %v1656_v50, 0 }
 0x33f   : > { %2659 = vmatpush3.bf16.msra.mxu0 %v1709_v40  ;;  %v1657_v53 = vld [vmem:[#allocation3 + $0xc] sm:$0xf] }
 0x340   : > { %2670 = vmatprep.subr.bf16.mxu0 %v3011_v0 }
 0x3a9   : > { %v1627_v33 = vpop.xlane.xlu1 %1626 }
 0x3aa   : > { %2823 = vrcp.f32 %v1627_v33 }
 0x3ab   : > { %v1630_v43 = vpop.xlane.xlu0 %1629 }
 0x3ac   : > { %2825 = vrcp.f32 %v1630_v43 }
 0x3b1   : > { %v1633_v45 = vpop.xlane.xlu0 %1632 }
 0x3b2   : > { %2827 = vrcp.f32 %v1633_v45 }
 0x3b5   : > { %v1636_v46 = vpop.xlane.xlu1 %1635 }
 0x3b6   : > { %2829 = vrcp.f32 %v1636_v46 }
 0x3b7   : > { %v2824_v47 = vpop.eup %2823 }
 0x3b8   : > { %v1641_v48 = vmul.f32 %v2824_v47, %v3397_v38  ;;  %v1801_v38 = vsel %vm1661_vm4, %v1657_v53, 0 }
 0x3b9   : > { %v2826_v49 = vpop.eup %2825 }
 0x3ba   : > { %v1645_v51 = vpack.c.bf16 %v1641_v48, %v1641_v48  ;;  %v1642_v52 = vmul.f32 %v2826_v49, %v3403_v42 }
 0x3bc   : > { %1650 = vst.msk [vmem:[%s3440_s29] sm:$0xf] %vm993_vm2, %v1645_v51  ;;  %2655 = vmatmul.mubr.msk.bf16.vlgmr.msra.gmra.mxu1 %vm1416_vm3, %v1645_v51  ;;  %v1646_v55 = vpack.c.bf16 %v1642_v52, %v1642_v52 }
 0x3bd   : > { %2665 = vmatpush3.bf16.msra.mxu1 %v1755_v54  ;;  %2666 = vmatprep.mubr.msk.bf16.mxu1 %vm3012_vm0, %v3011_v0 }
 0x3be   : > { %1651 = vst.msk [vmem:[%s3440_s29 + $0x4] sm:$0xf] %vm993_vm2, %v1646_v55  ;;  %2661 = vmatmul.mubr.msk.bf16.vlgmr.msra.gmra.mxu0 %vm1416_vm3, %v1646_v55  ;;  %2676 = vmatprep.subr.bf16.mxu1 %v3011_v0 }
 0x3bf   : > { %v2828_v42 = vpop.eup %2827  ;;  %2671 = vmatpush3.bf16.msra.mxu0 %v1801_v38  ;;  %2672 = vmatprep.mubr.msk.bf16.mxu0 %vm3012_vm0, %v3011_v0 }
 0x3c0   : > { %v1643_v57 = vmul.f32 %v2828_v42, %v3413_v62  ;;  %2684 = vmatprep.subr.bf16.mxu0 %v3011_v0  ;;  %v2803_v62 = vld [vmem:[%s3649_s8 + $0x8] sm:$0xff]  }
 0x3c2   : > { %v1647_v58 = vpack.c.bf16 %v1643_v57, %v1643_v57 }
 0x3c3   : > { %v2830_v59 = vpop.eup %2829 }
 0x3c4   : > { %1652 = vst.msk [vmem:[%s3440_s29 + $0x8] sm:$0xf] %vm993_vm2, %v1647_v58  ;;  %2667 = vmatmul.mubr.msk.bf16.vlgmr.msra.gmra.mxu1 %vm1416_vm3, %v1647_v58  ;;  %v1644_v60 = vmul.f32 %v2830_v59, %v3419_v16 }
 0x3c5   : > { %2680 = vmatprep.mubr.msk.bf16.mxu1 %vm3012_vm0, %v3011_v0  ;;  %2677 = vmatpush3.bf16.msra.mxu1 %v2803_v62  ;;  %v2804_v62 = vld [vmem:[%s3649_s8] sm:$0xff]  }
 0x3c6   : > { %v1648_v61 = vpack.c.bf16 %v1644_v60, %v1644_v60  ;;  %2678 = vmatprep.subr.bf16.mxu1 %v3011_v0 }
 0x3c8   : > { %1653 = vst.msk [vmem:[%s3440_s29 + $0xc] sm:$0xf] %vm993_vm2, %v1648_v61  ;;  %2673 = vmatmul.mubr.msk.bf16.vlgmr.msra.gmra.mxu0 %vm1416_vm3, %v1648_v61  ;;  %s2899_s29 = scalar_lea.vmem %s2898_s1, 512 }
 0x3c9   : > { %2688 = vmatprep.mubr.msk.bf16.mxu0 %vm3012_vm0, %v3011_v0  ;;  %2679 = vmatpush3.bf16.msra.mxu1 %v2804_v62  ;;  %p2901_p5 = scmp.lt.s32.totalorder %s2899_s29, %s2893_s16 }
 0x3ca   : > { %2692 = vmatprep.subr.bf16.mxu1 %v3011_v0 }
 0x3cb   : > { %p2902_p12 = por %p2901_p5, %p2900_p13 }
 0x3cd   : > { %p2903_p6 = pnand %p2902_p12, %p2896_p3 }
 0x47c   : > { %v1699_v63 = vpop.f32.mrf.mxu1 }
 0x47d   : > { %v1843_v7 = vpack.c.bf16 %v1699_v63, %v1699_v63 }
 0x47e   : > { %v2656_v1 = vpop.f32.mrf.mxu1  ;;  %v1745_v2 = vpop.f32.mrf.mxu0 }
 0x47f   : > { %v1850_v14 = vrot.slane %v1843_v7, %v3313_v41  ;;  %v1877_v16 = vpack.c.bf16 %v1745_v2, %v1745_v2 }
 0x480   : > { %v1702_v3 = vpop.f32.mrf.mxu1  ;;  %v2662_v4 = vpop.f32.mrf.mxu0 }
 0x481   : > { %v1884_v22 = vrot.slane %v1877_v16, %v3313_v41 }
 0x482   : > { %v2657_v5 = vpop.f32.mrf.mxu1  ;;  %v1748_v6 = vpop.f32.mrf.mxu0 }
 0x484   : > { %v2663_v9 = vpop.f32.mrf.mxu0  ;;  %v1791_v10 = vpop.f32.mrf.mxu1 }
 0x485   : > { %v1851_v11 = vpack.c.bf16 %v1791_v10, %v1791_v10 }
 0x486   : > { %v2668_v12 = vpop.f32.mrf.mxu1 }
 0x487   : > { %v1858_v15 = vrot.slane %v1851_v11, %v3313_v41 }
 0x488   : > { %v1794_v17 = vpop.f32.mrf.mxu1  ;;  %v1837_v20 = vpop.f32.mrf.mxu0 }
 0x489   : > { %v1859_v18 = vcombine.low %v1850_v14, %v1858_v15  ;;  %v1860_v19 = vcombine.high %v1850_v14, %v1858_v15  ;;  %v1885_v21 = vpack.c.bf16 %v1837_v20, %v1837_v20 }
 0x48a   : > { %v2669_v23 = vpop.f32.mrf.mxu1  ;;  %v2674_v25 = vpop.f32.mrf.mxu0 }
 0x48b   : > { %v1867_v24 = vrot.slane %v1859_v18, %v3315_v44  ;;  %v1892_v26 = vrot.slane %v1885_v21, %v3313_v41  ;;  %v1874_v27 = vrot.slane %v1860_v19, %v3315_v44  ;;  %v2024_v23 = vld [vmem:[%s3650_s9] sm:$0x1] }
 0x48c   : > { %v1840_v28 = vpop.f32.mrf.mxu0 }
 0x48d   : > { %v1893_v29 = vcombine.low %v1884_v22, %v1892_v26  ;;  %v1894_v30 = vcombine.high %v1884_v22, %v1892_v26  ;;  %v1875_v31 = vcombine.high %v1867_v24, %v3018_v56  ;;  %v1876_v36 = vcombine.high %v1874_v27, %v3018_v56 }
 0x48e   : > { %v2675_v32 = vpop.f32.mrf.mxu0  ;;  %v1915_v37 = vshrl.u32 %v1867_v24, 16  ;;  %v1931_v46 = vshrl.u32 %v1874_v27, 16  ;;  %v1175_v22 = vunpack.c.l.bf16 %v3288_v8  ;;  %v2805_v8 = vld [vmem:[%s3653_s12 + $0x8] sm:$0xff]  }
 0x48f   : > { %v1901_v34 = vrot.slane %v1893_v29, %v3315_v44  ;;  %v1908_v35 = vrot.slane %v1894_v30, %v3315_v44  ;;  %v1923_v45 = vshrl.u32 %v1875_v31, 16  ;;  %v1939_v53 = vshrl.u32 %v1876_v36, 16  ;;  %2685 = vmatpush3.bf16.msra.mxu0 %v2805_v8 }
 0x490   : > { %2686 = vmatprep.subr.bf16.mxu0 %v3011_v0 }
 0x491   : > { %v1909_v39 = vcombine.high %v1901_v34, %v3018_v56  ;;  %v1910_v40 = vcombine.high %v1908_v35, %v3018_v56  ;;  %v1913_v33 = vpack.i.b16 %v1901_v34, %v1867_v24  ;;  %v1916_v43 = vshrl.u32 %v1901_v34, 16 }
 0x492   : > { %v1929_v47 = vpack.i.b16 %v1908_v35, %v1874_v27  ;;  %v1932_v48 = vshrl.u32 %v1908_v35, 16  ;;  %v2025_v24 = vunpack.c.l.bf16 %v2024_v23 }
 0x493   : > { %v1917_v49 = vpack.i.b16 %v1916_v43, %v1915_v37  ;;  %v1921_v50 = vpack.i.b16 %v1909_v39, %v1875_v31  ;;  %v1924_v51 = vshrl.u32 %v1909_v39, 16  ;;  %v1937_v52 = vpack.i.b16 %v1910_v40, %v1876_v36 }
 0x494   : > { %v1933_v54 = vpack.i.b16 %v1932_v48, %v1931_v46  ;;  %v1940_v55 = vshrl.u32 %v1910_v40, 16  ;;  %v1943_v38 = vcombine.low %v1913_v33, %v1929_v47  ;;  %v2029_v25 = vrot.slane %v2025_v24, %v3298_v13  ;;  %v2806_v40 = vld [vmem:[%s3653_s12] sm:$0xff]  }
 0x495   : > { %v1925_v42 = vpack.i.b16 %v1924_v51, %v1923_v45  ;;  %v1951_v57 = vcombine.low %v1921_v50, %v1937_v52  ;;  %2687 = vmatpush3.bf16.msra.mxu0 %v2806_v40  ;;  %v2541_v47 = vld [vmem:[%s3651_s10] ss:$0 sm:$0xff] }
 0x496   : > { %v1941_v58 = vpack.i.b16 %v1940_v55, %v1939_v53  ;;  %v1968_v59 = vcombine.low %v1917_v49, %v1933_v54  ;;  %v1950_v60 = vrot.slane %v1943_v38, %v3313_v41  ;;  %v2542_v49 = vld [vmem:[%s3652_s11] ss:$0 sm:$0xff]  ;;  %v2807_v53 = vld [vmem:[%s3655_s14 + $0x38] sm:$0xff]   ;;  %v2808_v54 = vld [vmem:[%s3655_s14 + $0x30] sm:$0xff]  }
 0x497   : > { %v1958_v61 = vrot.slane %v1951_v57, %v3313_v41  ;;  %v2809_v55 = vld [vmem:[%s3655_s14 + $0x28] sm:$0xff]   ;;  %v2810_v38 = vld [vmem:[%s3655_s14 + $0x20] sm:$0xff]   ;;  %v2812_v57 = vld [vmem:[%s3655_s14 + $0x10] sm:$0xff]  }
 0x498   : > { %v1976_v63 = vcombine.low %v1925_v42, %v1941_v58  ;;  %v1975_v2 = vrot.slane %v1968_v59, %v3313_v41  ;;  %v2811_v42 = vld [vmem:[%s3655_s14 + $0x18] sm:$0xff]   ;;  %v2813_v58 = vld [vmem:[%s3655_s14 + $0x8] sm:$0xff]   ;;  %v2814_v59 = vld [vmem:[%s3655_s14] sm:$0xff]  }
 0x499   : > { %v1959_v1 = vcombine.low %v1950_v60, %v1958_v61  ;;  %v2120_v60 = vld [vmem:[%s3654_s13] sm:$0x1] }
 0x49a   : > { %v1983_v3 = vrot.slane %v1976_v63, %v3313_v41  ;;  %v2121_v61 = vunpack.c.l.bf16 %v2120_v60 }
 0x49b   : > { %v1966_v4 = vrot.slane %v1959_v1, %v3315_v44 }
 0x49c   : > { %v1984_v5 = vcombine.low %v1975_v2, %v1983_v3  ;;  %v2125_v62 = vrot.slane %v2121_v61, %v3298_v13 }
 0x49d   : > { %v1996_v7 = vshrl.u32 %v1966_v4, 16  ;;  %v1967_v10 = vcombine.high %v1966_v4, %v3018_v56 }
 0x49e   : > { %v1991_v6 = vrot.slane %v1984_v5, %v3315_v44 }
 0x49f   : > { %v2002_v41 = vshrl.u32 %v1967_v10, 16 }
 0x4a0   : > { %v1997_v9 = vshrl.u32 %v1991_v6, 16  ;;  %v1992_v11 = vcombine.high %v1991_v6, %v3018_v56  ;;  %v1995_v12 = vpack.i.b16 %v1991_v6, %v1966_v4 }
 0x4a2   : > { %v1998_v14 = vpack.i.b16 %v1997_v9, %v1996_v7  ;;  %v2001_v15 = vpack.i.b16 %v1992_v11, %v1967_v10  ;;  %v2003_v16 = vshrl.u32 %v1992_v11, 16 }
 0x4a4   : > { %2005 = vrot.lane.b32.xlu0 %v1998_v14, %s3019_s21  ;;  %2007 = vrot.lane.b32.xlu1 %v2001_v15, %s3020_s3  ;;  %v2004_v17 = vpack.i.b16 %v2003_v16, %v2002_v41  ;;  %v2207_v16 = vld [vmem:[%s3656_s15] sm:$0x1]  ;;  %s3705_s21 = sld [smem:[#allocation33_spill]] }
 0x4a5   : > { %v2208_v41 = vunpack.c.l.bf16 %v2207_v16 }
 0x4a8   : > { %2009 = vrot.lane.b32.xlu1 %v2004_v17, %s3021_s28  ;;  %v2212_v17 = vrot.slane %v2208_v41, %v3298_v13 }
 0x4aa   : > { %s3706_s3 = smov %s3705_s21  ;;  %s3567_s28 = scalar_lea.hbm %s3705_s21, %s2563_s26 }
 0x516   : > { %v2006_v18 = vpop.permute.xlu0 %2005  ;;  %v2008_v44 = vpop.permute.xlu1 %2007 }
 0x517   : > { %v2013_v19 = vsel %vm1416_vm3, %v1995_v12, %v2006_v18 }
 0x518   : > { %v2016_v20 = vsel %vm2014_vm5, %v2013_v19, %v2008_v44 }
 0x51a   : > { %v2010_v56 = vpop.permute.xlu1 %2009 }
 0x51b   : > { %v2019_v21 = vsel %vm2017_vm6, %v2016_v20, %v2010_v56 }
 0x51c   : > { %2681 = vmatmul.mubr.msk.bf16.vlgmr.msra.gmra.mxu1 %vm713_vm1, %v2019_v21 }
 0x51d   : > { %2708 = vmatprep.mubr.msk.bf16.mxu1 %vm3012_vm0, %v3011_v0  ;;  %2693 = vmatpush3.bf16.msra.mxu1 %v2807_v53 }
 0x51e   : > { %2694 = vmatprep.subr.bf16.mxu1 %v3011_v0 }
 0x521   : > { %2695 = vmatpush3.bf16.msra.mxu1 %v2808_v54 }
 0x522   : > { %2696 = vmatprep.subr.bf16.mxu1 %v3011_v0 }
 0x525   : > { %2697 = vmatpush3.bf16.msra.mxu1 %v2809_v55 }
 0x526   : > { %2698 = vmatprep.subr.bf16.mxu1 %v3011_v0 }
 0x529   : > { %2699 = vmatpush3.bf16.msra.mxu1 %v2810_v38 }
 0x52a   : > { %2700 = vmatprep.subr.bf16.mxu1 %v3011_v0 }
 0x52d   : > { %2701 = vmatpush3.bf16.msra.mxu1 %v2811_v42 }
 0x52e   : > { %2702 = vmatprep.subr.bf16.mxu1 %v3011_v0 }
 0x531   : > { %2703 = vmatpush3.bf16.msra.mxu1 %v2812_v57 }
 0x532   : > { %2704 = vmatprep.subr.bf16.mxu1 %v3011_v0 }
 0x535   : > { %2705 = vmatpush3.bf16.msra.mxu1 %v2813_v58 }
 0x536   : > { %2706 = vmatprep.subr.bf16.mxu1 %v3011_v0 }
 0x539   : > { %2707 = vmatpush3.bf16.msra.mxu1 %v2814_v59 }
 0x5dc   : > { %v2078_v26 = vpop.f32.mrf.mxu1 }
 0x5dd   : > { %v2079_v27 = vadd.f32 %v2078_v26, %v2029_v25 }
 0x5de   : > { %v2682_v28 = vpop.f32.mrf.mxu1 }
 0x5df   : > { %v2084_v29 = vadd.f32 %v2079_v27, %v1175_v22 }
 0x5e0   : > { %v2081_v30 = vpop.f32.mrf.mxu1 }
 0x5e1   : > { %v2085_v31 = vsel %vm713_vm1, %v2084_v29, 0.0 }
 0x5e2   : > { %2086 = vadd.xlane.f32.xlu0 %v2085_v31  ;;  %v2683_v32 = vpop.f32.mrf.mxu1 }
 0x66b   : > { %v2087_v34 = vpop.xlane.xlu0 %2086 }
 0x66c   : > { %v2089_v35 = vmul.f32 0.03125, %v2087_v34 }
 0x66e   : > { %v2090_v36 = vsub.f32 %v2084_v29, %v2089_v35 }
 0x670   : > { %v2091_v37 = vmul.f32 %v2090_v36, %v2090_v36 }
 0x672   : > { %v2092_v39 = vsel %vm713_vm1, %v2091_v37, 0.0 }
 0x673   : > { %2093 = vadd.xlane.f32.xlu1 %v2092_v39 }
 0x6fc   : > { %v2094_v33 = vpop.xlane.xlu1 %2093 }
 0x6fd   : > { %v2095_v43 = vmul.f32 0.03125, %v2094_v33 }
 0x6ff   : > { %v2096_v45 = vadd.f32 1e-06, %v2095_v43 }
 0x701   : > { %2831 = vrsqrt.f32 %v2096_v45 }
 0x70e   : > { %v2832_v46 = vpop.eup %2831 }
 0x70f   : > { %v2098_v48 = vmul.f32 %v2832_v46, %v2090_v36 }
 0x711   : > { %v2106_v50 = vmul.f32 %v2541_v47, %v2098_v48 }
 0x713   : > { %v2114_v51 = vadd.f32 %v2542_v49, %v2106_v50 }
 0x715   : > { %v2115_v52 = vpack.c.bf16 %v2114_v51, %v2114_v51 }
 0x717   : > { %2689 = vmatmul.mubr.msk.bf16.vlgmr.msra.gmra.mxu0 %vm713_vm1, %v2115_v52 }
 0x7d7   : > { %v2175_v63 = vpop.f32.mrf.mxu0 }
 0x7d8   : > { %v2176_v1 = vadd.f32 %v2175_v63, %v2125_v62 }
 0x7d9   : > { %v2690_v2 = vpop.f32.mrf.mxu0 }
 0x7da   : > { %v2181_v3 = vmul.f32 %v2176_v1, %v2176_v1 }
 0x7db   : > { %v2178_v4 = vpop.f32.mrf.mxu0 }
 0x7dc   : > { %v2182_v5 = vmul.f32 %v2181_v3, %v2176_v1 }
 0x7dd   : > { %v2691_v6 = vpop.f32.mrf.mxu0 }
 0x7de   : > { %v2183_v7 = vmul.f32 0.044715, %v2182_v5 }
 0x7e0   : > { %v2184_v9 = vadd.f32 %v2183_v7, %v2176_v1 }
 0x7e2   : > { %v2185_v10 = vmul.f32 0.7978846, %v2184_v9 }
 0x7e4   : > { %2833 = vtanh.f32 %v2185_v10 }
 0x7f1   : > { %v2834_v0 = vpop.eup %2833 }
 0x7f2   : > { %v2187_v11 = vadd.f32 1.0, %v2834_v0 }
 0x7f4   : > { %v2188_v12 = vmul.f32 0.5, %v2187_v11 }
 0x7f6   : > { %v2189_v14 = vmul.f32 %v2188_v12, %v2176_v1 }
 0x7f8   : > { %v2190_v15 = vpack.c.bf16 %v2189_v14, %v2189_v14 }
 0x7fa   : > { %2709 = vmatmul.mubr.bf16.vlgmr.msra.gmra.mxu1 %v2190_v15 }
 0x8ba   : > { %v2295_v18 = vpop.f32.mrf.mxu1 }
 0x8bb   : > { %v2296_v44 = vadd.f32 %v2295_v18, %v2212_v17 }
 0x8bc   : > { %v2710_v19 = vpop.f32.mrf.mxu1 }
 0x8bd   : > { %v2301_v20 = vadd.f32 %v2296_v44, %v2114_v51 }
 0x8be   : > { %v2298_v56 = vpop.f32.mrf.mxu1 }
 0x8bf   : > { %v2302_v21 = vsel %vm713_vm1, %v2301_v20, 0.0 }
 0x8c0   : > { %2303 = vadd.xlane.f32.xlu0 %v2302_v21  ;;  %v2711_v23 = vpop.f32.mrf.mxu1 }
 0x949   : > { %v2304_v24 = vpop.xlane.xlu0 %2303 }
 0x94a   : > { %v2305_v25 = vmul.f32 0.03125, %v2304_v24 }
 0x94c   : > { %v2306_v22 = vsub.f32 %v2301_v20, %v2305_v25 }
 0x94e   : > { %v2307_v26 = vmul.f32 %v2306_v22, %v2306_v22 }
 0x950   : > { %v2308_v27 = vsel %vm713_vm1, %v2307_v26, 0.0 }
 0x951   : > { %2309 = vadd.xlane.f32.xlu0 %v2308_v27 }
 0x952   : > { %2906 = shalt.err (!%p2903_p6)
}
 0x953   : > { %s2907_s26 = scalar_lea.hbm %s3567_s28, 256  ;;  %s2911_s21 = scalar_lea.hbm %s3706_s3, 512 }
 0x954   : > { %p2908_p7 = scmp.ne.s32.totalorder %s3567_s28, %s2907_s26  ;;  %p2912_p4 = scmp.lt.s32.totalorder %s3567_s28, %s3706_s3 }
 0x955   : > { %p2913_p10 = scmp.lt.s32.totalorder %s2911_s21, %s2907_s26 }
 0x956   : > { %p2909_p1 = pnand %p2908_p7, %p3177_p9 }
 0x957   : > { %p2914_p8 = por %p2913_p10, %p2912_p4 }
 0x958   : > { %p2910_p2 = pneg %p2909_p1 }
 0x95a   : > { %p2915_p0 = pnand %p2914_p8, %p2910_p2 }
 0x95c   : > { %2918 = shalt.err (!%p2915_p0)
}
 0x95d   : > { %s3023_s16 = smov 64   ;;  %s3024_s1 = smov 4   ;;  %vm2332_vm7 = vcmask 257024  }
 0x95e   : > { %s3707_s29 = scalar_lea.sflag [#allocation11], %s3234_s24  ;;  %s3708_s20 = sld [smem:[#allocation30_spill]] }
 0x95f   : > { %2717 = dma.vmem_to_hbm [thread:$0]  (%p3177_p9), %s3569_s0, 256, %s3567_s28, %s3707_s29, %s3023_s16, %s3023_s16, %s3024_s1  }
 0x960   : > { %s3709_s17 = sld [smem:[#allocation31_spill]]  ;;  %s2558_s3 = sshll.u32 %s3703_s18, 6 }
 0x961   : > { %s677_s4 = scalar_lea.vmem [#allocation9], %s3237_s2  ;;  %s3710_s1 = sld [smem:[#allocation32_spill]] }
 0x962   : > { %s2354_s0 = sshll.u32 %s677_s4, 4  ;;  %s2335_s27 = scalar_lea.sflag [#allocation6], %s3234_s24  ;;  %s2355_s0 = int_to_ptr.vmem [resolvable:$true] %s2354_s0 }
 0x963   : > { %s2919_s26 = scalar_lea.vmem %s2355_s0, 64 }
 0x964   : > { %v2554_v31 = vld [vmem:[%s3708_s20] ss:$0 sm:$0xff]  ;;  %p2920_p3 = scmp.ne.s32.totalorder %s2355_s0, %s2919_s26  ;;  %s3025_s20 = smov [#allocation9]  }
 0x965   : > { %s2923_s25 = sshll.u32 %s3025_s20, 4  ;;  %s2924_s25 = int_to_ptr.vmem [resolvable:$false] %s2923_s25 }
 0x966   : > { %v2555_v34 = vld [vmem:[%s3709_s17] ss:$0 sm:$0xff]  ;;  %p2921_p13 = pnand %p2920_p3, %p3177_p9  ;;  %s2925_s2 = scalar_lea.vmem %s2924_s25, 128 }
 0x967   : > { %s3711_s29 = smov %s3710_s1  ;;  %s2352_s5 = scalar_lea.hbm %s3710_s1, %s2558_s3 }
 0x968   : > { %p2922_p5 = pneg %p2921_p13  ;;  %p2926_p12 = scmp.lt.s32.totalorder %s2355_s0, %s2924_s25 }
 0x969   : > { %p2927_p6 = scmp.lt.s32.totalorder %s2925_s2, %s2919_s26 }
 0x96b   : > { %p2928_p7 = por %p2927_p6, %p2926_p12 }
 0x96d   : > { %p2929_p1 = pnand %p2928_p7, %p2922_p5 }
 0x9da   : > { %v2310_v13 = vpop.xlane.xlu0 %2309 }
 0x9db   : > { %v2311_v28 = vmul.f32 0.03125, %v2310_v13 }
 0x9dd   : > { %v2312_v29 = vadd.f32 1e-06, %v2311_v28 }
 0x9df   : > { %2835 = vrsqrt.f32 %v2312_v29 }
 0x9ec   : > { %v2836_v30 = vpop.eup %2835 }
 0x9ed   : > { %v2314_v32 = vmul.f32 %v2836_v30, %v2306_v22 }
 0x9ef   : > { %v2322_v35 = vmul.f32 %v2554_v31, %v2314_v32 }
 0x9f1   : > { %v2330_v36 = vadd.f32 %v2555_v34, %v2322_v35 }
 0x9f3   : > { %v2331_v37 = vpack.c.bf16 %v2330_v36, %v2330_v36 }
 0x9f5   : > { %2333 = vst.msk [vmem:[%s677_s4] sm:$0xf] %vm2332_vm7, %v2331_v37 }
 0x9f6   : > { %2932 = shalt.err (!%p2929_p1)
}
 0x9f7   : > { %s2933_s18 = scalar_lea.hbm %s2352_s5, 64  ;;  %s2937_s3 = scalar_lea.hbm %s3711_s29, 128 }
 0x9f8   : > { %p2934_p2 = scmp.ne.s32.totalorder %s2352_s5, %s2933_s18  ;;  %p2938_p8 = scmp.lt.s32.totalorder %s2352_s5, %s3711_s29 }
 0x9f9   : > { %p2939_p0 = scmp.lt.s32.totalorder %s2937_s3, %s2933_s18 }
 0x9fa   : > { %p2935_p4 = pnand %p2934_p2, %p3177_p9 }
 0x9fb   : > { %p2940_p3 = por %p2939_p0, %p2938_p8 }
 0x9fc   : > { %p2936_p10 = pneg %p2935_p4 }
 0x9fe   : > { %p2941_p13 = pnand %p2940_p3, %p2936_p10 }
 0xa00   : > { %2944 = shalt.err (!%p2941_p13)
}
 0xa01   : > { %2716 = dma.vmem_to_hbm [thread:$0]  (%p3177_p9), %s2355_s0, 64, %s2352_s5, %s2335_s27  }
 0xa02 PF: > { %s3712_s28 = sld [smem:[#allocation16_spill]]  ;;  %p3714_p5 = scmp.ge.s32.totalorder %s3007_s22, 2 }
 0xa04   : > { %p2728_p12 = pnand %p3714_p5, %p3184_p11 }
 0xa06   : > { %p2729_p6 = pneg %p2728_p12 }
 0xa08   : > { %s2383_s1 = sand.u32 1, %s3712_s28  }
 0xa09   : > { %s2384_s26 = scalar_lea.sflag [#allocation6], %s2383_s1 }
 0xa0a   : > { %2978 = dma.done.wait (%p2729_p6), %s2384_s26, 64  }
 0xa0b   : > { %2980 = vsyncadd (%p2729_p6), %s2384_s26, 4294967232  ;;  %s2393_s20 = scalar_lea.sflag [#allocation11], %s2383_s1 }
 0xa0c   : > { %2982 = dma.done.wait (%p2729_p6), %s2393_s20, 256  }
 0xa0d   : > { %2984 = vsyncadd (%p2729_p6), %s2393_s20, 4294967040  ;;  %s42_s22 = sadd.s32 1, %s3007_s22   ;;  %s3715_s5 = sld [smem:[#allocation17_spill]] }
 0xa0e   : > { %p39_p7 = scmp.ge.s32.totalorder %s42_s22, 4   ;;  %s3716_s20 = sld [smem:[#allocation22_spill]] }
 0xa0f   : > { %s3717_s21 = sld [smem:[#allocation19_spill]]  ;;  %s3719_s0 = smov %s2991_s30 }
 0xa10   : > { %s3718_s1 = sld [smem:[#allocation20_spill]]  ;;  %41 = sbr.rel (!%p39_p7) target bundleno = 21 (0x15), region = 171 }
 0xa13   : > { %s3720_s30 = smov %s3715_s5 }
 0xa15   :  { %2398 = vsyncpa [#allocation5], 1 }
 0xa16   :  { %2400 = vsyncpa [#allocation5 + $0x1], 1 }
 0xa17   :  { %2401 = vsyncpa [#allocation8], 1 }
 0xa18   :  { %2403 = vsyncpa [#allocation8 + $0x1], 1 }
 0xa19   :  { %2404 = vsyncpa [#allocation6], 1 }
 0xa1a   :  { %2406 = vsyncpa [#allocation6 + $0x1], 1 }
 0xa1b   :  { %2407 = vsyncpa [#allocation11], 1 }
 0xa1c   :  { %2409 = vsyncpa [#allocation11 + $0x1], 1 }

// kernel: tpu_custom_call.1
= control target key start
LH: loop header
LB: loop body
LE: loop exit
PB: predicated region body
PF: predicated region fallthrough
CT: control target
= control target key end

     0   :  { %s3641_s0 = inlined_call_operand.hbm [shape: bf16[2,8,32], index: 0, kind: input, shape index: {}]   ;;  %s3642_s1 = inlined_call_operand.hbm [shape: bf16[2,8,32], index: 1, kind: input, shape index: {}]   ;;  %s3643_s2 = inlined_call_operand.vmem [shape: bf16[32,32], index: 2, kind: input, shape index: {}]   ;;  %s3644_s3 = inlined_call_operand.vmem [shape: bf16[1,32], index: 3, kind: input, shape index: {}]   ;;  %s3645_s4 = inlined_call_operand.vmem [shape: bf16[32,32], index: 4, kind: input, shape index: {}]   ;;  %s3646_s5 = inlined_call_operand.vmem [shape: bf16[1,32], index: 5, kind: input, shape index: {}]   ;;  %s3647_s6 = inlined_call_operand.vmem [shape: bf16[32,32], index: 6, kind: input, shape index: {}]   ;;  %s3648_s7 = inlined_call_operand.vmem [shape: bf16[1,32], index: 7, kind: input, shape index: {}]   ;;  %s3649_s8 = inlined_call_operand.vmem [shape: bf16[32,32], index: 8, kind: input, shape index: {}]   ;;  %s3650_s9 = inlined_call_operand.vmem [shape: bf16[1,32], index: 9, kind: input, shape index: {}]   ;;  %s3651_s10 = inlined_call_operand.vmem [shape: f32[1,32], index: 10, kind: input, shape index: {}]   ;;  %s3652_s11 = inlined_call_operand.vmem [shape: f32[1,32], index: 11, kind: input, shape index: {}]   ;;  %s3653_s12 = inlined_call_operand.vmem [shape: bf16[32,128], index: 12, kind: input, shape index: {}]   ;;  %s3654_s13 = inlined_call_operand.vmem [shape: bf16[1,128], index: 13, kind: input, shape index: {}]   ;;  %s3655_s14 = inlined_call_operand.vmem [shape: bf16[128,32], index: 14, kind: input, shape index: {}]   ;;  %s3656_s15 = inlined_call_operand.vmem [shape: bf16[1,32], index: 15, kind: input, shape index: {}]   ;;  %s3657_s16 = inlined_call_operand.vmem [shape: f32[1,32], index: 16, kind: input, shape index: {}]   ;;  %s3658_s17 = inlined_call_operand.vmem [shape: f32[1,32], index: 17, kind: input, shape index: {}]   ;;  %s3659_s18 = inlined_call_operand.hbm [shape: bf16[2,8,32], index: 18, kind: output, shape index: {0}]   ;;  %s3660_s19 = inlined_call_operand.hbm [shape: bf16[2,4,8,8], index: 19, kind: output, shape index: {1}]  }
   0x1   :  { %3673 = sst [smem:[#allocation24_spill]] %s3641_s0 }
   0x2   :  { %3674 = sst [smem:[#allocation25_spill]] %s3642_s1 }
   0x3   :  { %3675 = sst [smem:[#allocation26_spill]] %s3643_s2 }
   0x4   :  { %3676 = sst [smem:[#allocation27_spill]] %s3644_s3 }
   0x5   :  { %3677 = sst [smem:[#allocation28_spill]] %s3645_s4 }
   0x6   :  { %3678 = sst [smem:[#allocation29_spill]] %s3646_s5 }
   0x7   :  { %3679 = sst [smem:[#allocation30_spill]] %s3657_s16 }
   0x8   :  { %3680 = sst [smem:[#allocation31_spill]] %s3658_s17 }
   0x9   :  { %3681 = sst [smem:[#allocation32_spill]] %s3659_s18 }
   0xa   :  { %3682 = sst [smem:[#allocation33_spill]] %s3660_s19 }
   0xb   :  { %25 = vsyncpa [#allocation5], 0 }
   0xc   :  { %27 = vsyncpa [#allocation5 + $0x1], 0 }
   0xd   :  { %28 = vsyncpa [#allocation8], 0 }
   0xe   :  { %30 = vsyncpa [#allocation8 + $0x1], 0 }
   0xf   :  { %31 = vsyncpa [#allocation6], 0 }
  0x10   :  { %33 = vsyncpa [#allocation6 + $0x1], 0 }
  0x11   :  { %34 = vsyncpa [#allocation11], 0 }
  0x12   :  { %36 = vsyncpa [#allocation11 + $0x1], 0  ;;  %s3126_s0 = smov 0   ;;  %s3128_s30 = smov 0  }
  0x13   :  { %s3130_s20 = smov 0   ;;  %s3132_s21 = smov 0  }
  0x14   :  { %s3134_s1 = smov 0   ;;  %s3136_s22 = smov 0  }
  0x15 LB: > { %3683 = sst [smem:[#allocation16_spill]] %s2987_s0  ;;  %s2508_s2 = sadd.s32 4294967295, %s3007_s22   ;;  %s3007_s22 = sphi %s3136_s22, %s42_s22   ;;  %s3003_s1 = sphi %s3134_s1, %s3718_s1   ;;  %s2999_s21 = sphi %s3132_s21, %s3717_s21   ;;  %s2995_s20 = sphi %s3130_s20, %s3716_s20   ;;  %s2991_s30 = sphi %s3128_s30, %s3720_s30   ;;  %s2987_s0 = sphi %s3126_s0, %s3719_s0  }
  0x16   : > { %3684 = sst [smem:[#allocation17_spill]] %s2995_s20  ;;  %s2509_s23 = sadd.s32 4294967294, %s3007_s22  }
  0x17   : > { %3685 = sst [smem:[#allocation18_spill]] %s2999_s21  ;;  %s54_s24 = sadd.s32 1, %s3003_s1 }
  0x18   : > { %3686 = sst [smem:[#allocation19_spill]] %s3003_s1  ;;  %s63_s25 = sadd.s32 1, %s2995_s20 }
  0x19   : > { %p56_p0 = scmp.ge.s32.totalorder %s54_s24, 2  ;;  %p70_p1 = scmp.ne.s32.totalorder %s2995_s20, %s2991_s30 }
  0x1a   : > { %p71_p2 = scmp.eq.s32.totalorder %s3007_s22, 0  ;;  %p76_p3 = scmp.ne.s32.totalorder %s2991_s30, %s2987_s0 }
  0x1b   : > { %s3722_s24 = smov (%p56_p0, %s54_s24), 0  ;;  %p77_p5 = scmp.eq.s32.totalorder %s2508_s2, 0 }
  0x1c   : > { %3687 = sst [smem:[#allocation20_spill]] %s3722_s24  ;;  %p3167_p4 = por %p71_p2, %p70_p1 }
  0x1d   : > { %s58_s26 = ssub.s32 %s3003_s1, %s3722_s24  ;;  %p464_p6 = scmp.eq.s32.totalorder %s2508_s2, 1 }
  0x1e   : > { %p61_p7 = scmp.eq.s32.totalorder %s58_s26, 0  ;;  %p3173_p8 = por %p77_p5, %p76_p3 }
  0x1f   : > { %p3177_p9 = por %p464_p6, %p70_p1  ;;  %p470_p10 = scmp.eq.s32.totalorder %s2509_s23, 1 }
  0x20   : > { %s3182_s29 = scalar_select %p61_p7, %s2995_s20, %s63_s25  }
  0x21   : > { %s3690_s28 = scalar_select %p3177_p9, 1, 0 }
  0x22   : > { %3692 = sst [smem:[#allocation22_spill]] %s3182_s29  ;;  %p3184_p11 = por %p470_p10, %p76_p3 }
  0x23   : > { %3691 = sst [smem:[#allocation21_spill]] %s3690_s28  ;;  %p2734_p13 = scmp.lt.s32.totalorder %s3007_s22, 2 }
  0x24   : > { %s3693_s0 = scalar_select %p3184_p11, 1, 0 }
  0x25   : > { %s3191_s2 = sand.u32 1, %s2995_s20   ;;  %s2513_s24 = sshll.u32 %s3003_s1, 6 }
  0x26   : > { %3694 = sst [smem:[#allocation23_spill]] %s3693_s0  ;;  %s2512_s26 = sshll.u32 %s3191_s2, 2 }
  0x27   : > { %s3695_s16 = sld [smem:[#allocation24_spill]]  ;;  %s570_s28 = scalar_lea.vmem [#allocation4], %s2512_s26 }
  0x28   : > { %s578_s23 = sshll.u32 %s570_s28, 4  ;;  %p3200_p0 = pnand %p2734_p13, %p3167_p4  ;;  %s579_s23 = int_to_ptr.vmem [resolvable:$true] %s578_s23 }
  0x29   : > { %p2516_p1 = scmp.ge.s32.totalorder %s3007_s22, 1  ;;  %p601_p2 = scmp.lt.s32.totalorder %s3007_s22, 3 }
  0x2a   : > { %s567_s29 = scalar_lea.sflag [#allocation5], %s3191_s2  ;;  %p2839_p3 = pneg %p3200_p0 }
  0x2b   : > { %s2850_s1 = scalar_lea.vmem %s579_s23, 64 }
  0x2c   : > { %p2851_p5 = scmp.ne.s32.totalorder %s579_s23, %s2850_s1 }
  0x2d   : > { %s576_s19 = scalar_lea.hbm %s3695_s16, %s2513_s24  ;;  %s3009_s16 = smov [#allocation4]  }
  0x2e   : > { %p2853_p6 = pnand %p2851_p5, %p2839_p3  ;;  %s2855_s17 = sshll.u32 %s3009_s16, 4  ;;  %s2856_s17 = int_to_ptr.vmem [resolvable:$false] %s2855_s17 }
  0x2f   : > { %s2857_s18 = scalar_lea.vmem %s2856_s17, 128  ;;  %p2858_p4 = scmp.lt.s32.totalorder %s579_s23, %s2856_s17 }
  0x30   : > { %p2854_p7 = pneg %p2853_p6  ;;  %p2859_p10 = scmp.lt.s32.totalorder %s2857_s18, %s2850_s1 }
  0x32   : > { %p2860_p13 = por %p2859_p10, %p2858_p4 }
  0x34   : > { %p2861_p12 = pnand %p2860_p13, %p2854_p7 }
  0x36   : > { %2864 = shalt.err (!%p2861_p12)
}
  0x37   : > { %2723 = dma.hbm_to_vmem [thread:$0]  (!%p3200_p0), %s576_s19, 64, %s579_s23, %s567_s29  }
  0x38   : > { %p3218_p5 = pnand %p2516_p1, %p601_p2  ;;  %s3698_s17 = sld [smem:[#allocation25_spill]] }
  0x39   : > { %s589_s18 = scalar_lea.vmem [#allocation7], %s2512_s26  ;;  %s586_s0 = scalar_lea.sflag [#allocation8], %s3191_s2 }
  0x3a   : > { %s596_s20 = sshll.u32 %s589_s18, 4  ;;  %s3010_s19 = smov [#allocation7]   ;;  %s597_s20 = int_to_ptr.vmem [resolvable:$true] %s596_s20 }
  0x3b   : > { %s2878_s21 = scalar_lea.vmem %s597_s20, 64  ;;  %s2883_s29 = sshll.u32 %s3010_s19, 4  ;;  %s2884_s29 = int_to_ptr.vmem [resolvable:$false] %s2883_s29 }
  0x3c   : > { %p2879_p12 = scmp.ne.s32.totalorder %s597_s20, %s2878_s21  ;;  %s2885_s23 = scalar_lea.vmem %s2884_s29, 128 }
  0x3d   : > { %p2886_p1 = scmp.lt.s32.totalorder %s597_s20, %s2884_s29  ;;  %p2887_p2 = scmp.lt.s32.totalorder %s2885_s23, %s2878_s21 }
  0x3e   : > { %s594_s1 = scalar_lea.hbm %s3698_s17, %s2513_s24  ;;  %p2881_p6 = pnand %p2879_p12, %p2839_p3 }
  0x3f   : > { %p2888_p4 = por %p2887_p2, %p2886_p1 }
  0x40   : > { %p2882_p7 = pneg %p2881_p6 }
  0x42   : > { %p2889_p10 = pnand %p2888_p4, %p2882_p7 }
  0x44   : > { %2892 = shalt.err (!%p2889_p10)
}
  0x45   : > { %2726 = dma.hbm_to_vmem [thread:$0]  (!%p3200_p0), %s594_s1, 64, %s597_s20, %s586_s0  }
  0x46   : > { %605 = sbr.rel (%p3218_p5) target bundleno = 2562 (0xa02), region = 92  ;;  %s3234_s24 = sand.u32 (!%p3218_p5), 1, %s2991_s30  }
  0x47   : > { %s3237_s2 = sshll.u32 (!%p3218_p5), %s3234_s24, 2  ;;  %s608_s26 = scalar_lea.sflag (!%p3218_p5), [#allocation5], %s3234_s24 }
  0x48   : > { %s611_s21 = scalar_lea.vmem (!%p3218_p5), [#allocation4], %s3237_s2 }
  0x4b   : > { %2970 = dma.done.wait (%p3173_p8), %s608_s26, 64  }
  0x4c   : > { %2972 = vsyncadd (%p3173_p8), %s608_s26, 4294967232  ;;  %s617_s0 = scalar_lea.sflag [#allocation8], %s3234_s24  ;;  %s620_s20 = scalar_lea.vmem [#allocation7], %s3237_s2 }
  0x4d   : > { %2974 = dma.done.wait (%p3173_p8), %s617_s0, 64  }
  0x4e   : > { %2976 = vsyncadd (%p3173_p8), %s617_s0, 4294967232  ;;  %v3011_v0 = vmov 0.0   ;;  %vm3012_vm0 = vmmov 0   ;;  %s3699_s4 = sld [smem:[#allocation28_spill]]  ;;  %v690_v3 = vld [vmem:[%s620_s20] sm:$0xf]  ;;  %v697_v9 = vlaneseq }
  0x4f   : > { %2604 = vmatprep.subr.bf16.mxu0 %v3011_v0  ;;  %2608 = vmatprep.mubr.msk.bf16.mxu0 %vm3012_vm0, %v3011_v0  ;;  %vm713_vm1 = vcmask 261120   ;;  %v2799_v4 = vld [vmem:[%s3647_s6 + $0x8] sm:$0xff]   ;;  %v2800_v5 = vld [vmem:[%s3647_s6] sm:$0xff]   ;;  %s3700_s23 = sld [smem:[#allocation26_spill]]  ;;  %s3014_s3 = smov 104   ;;  %v3018_v56 = vmov 0  }
  0x50   : > { %2628 = vmatprep.subr.bf16.mxu1 %v3011_v0  ;;  %2630 = vmatprep.mubr.msk.bf16.mxu1 %vm3012_vm0, %v3011_v0  ;;  %v3288_v8 = vld [vmem:[%s611_s21] sm:$0xf]  ;;  %v698_v10 = vshrl.u32 %v697_v9, 7  ;;  %s3701_s5 = sld [smem:[#allocation29_spill]]  ;;  %s3013_s21 = smov 120   ;;  %vm993_vm2 = vcmask 60416  }
  0x51   : > { %s3702_s16 = sld [smem:[#allocation27_spill]]  ;;  %s3015_s17 = smov 112   ;;  %v3016_v35 = vmov 1983009808   ;;  %v3017_v37 = vmov 1934713408  }
  0x52   : > { %v3298_v13 = vsub.s32 0, %v698_v10  ;;  %v829_v36 = vunpack.c.l.s4 %v3016_v35  ;;  %v846_v38 = vunpack.c.l.s4 %v3017_v37  ;;  %vm1416_vm3 = vcmask 64512   ;;  %s2520_s19 = sshll.u32 %s3234_s24, 4  ;;  %s3021_s28 = smov 24  }
  0x53   : > { %vm1661_vm4 = vcmask 1043456   ;;  %s3440_s29 = scalar_lea.vmem [#allocation10], %s2520_s19  ;;  %vm2014_vm5 = vcmask 130048   ;;  %vm2017_vm6 = vcmask 195584   ;;  %s3703_s18 = sld [smem:[#allocation18_spill]] }
  0x54   : > { %v2797_v1 = vld [vmem:[%s3699_s4 + $0x8] sm:$0xff]   ;;  %v2798_v2 = vld [vmem:[%s3699_s4] sm:$0xff]   ;;  %v830_v39 = vunpack.c.0.s8 %v829_v36  ;;  %v847_v40 = vunpack.c.0.s8 %v846_v38  ;;  %s2368_s0 = sshll.u32 %s3440_s29, 4  ;;  %s3569_s0 = int_to_ptr.vmem [resolvable:$true] %s2368_s0 }
  0x55   : > { %2605 = vmatpush3.bf16.msra.mxu0 %v2797_v1  ;;  %v2801_v6 = vld [vmem:[%s3700_s23 + $0x8] sm:$0xff]   ;;  %v2802_v7 = vld [vmem:[%s3700_s23] sm:$0xff]  }
  0x56   : > { %2606 = vmatprep.subr.bf16.mxu0 %v3011_v0  ;;  %v695_v11 = vld [vmem:[%s3701_s5] sm:$0x1]  ;;  %v3313_v41 = vsub.s32 %v830_v39, %v698_v10  ;;  %v3315_v44 = vsub.s32 %v847_v40, %v698_v10 }
  0x57   : > { %v696_v12 = vunpack.c.l.bf16 %v695_v11  ;;  %v1180_v21 = vld [vmem:[%s3702_s16] sm:$0x1]  ;;  %s2893_s16 = scalar_lea.vmem %s3569_s0, 256 }
  0x58   : > { %v1181_v23 = vunpack.c.l.bf16 %v1180_v21  ;;  %p2894_p8 = scmp.ne.s32.totalorder %s3569_s0, %s2893_s16 }
  0x59   : > { %2607 = vmatpush3.bf16.msra.mxu0 %v2798_v2  ;;  %v700_v14 = vrot.slane %v696_v12, %v3298_v13  ;;  %s2563_s26 = sshll.u32 %s3703_s18, 8 }
  0x5a   : > { %2612 = vmatprep.subr.bf16.mxu0 %v3011_v0  ;;  %v1185_v26 = vrot.slane %v1181_v23, %v3298_v13  ;;  %p2895_p0 = pnand %p2894_p8, %p3177_p9 }
  0x5c   : > { %2609 = vmatmul.mubr.msk.bf16.vlgmr.msra.gmra.mxu0 %vm713_vm1, %v690_v3  ;;  %p2896_p3 = pneg %p2895_p0 }
  0x5d   : > { %2613 = vmatpush3.bf16.msra.mxu0 %v2799_v4  ;;  %2616 = vmatprep.mubr.msk.bf16.mxu0 %vm3012_vm0, %v3011_v0 }
  0x5e   : > { %2614 = vmatprep.subr.bf16.mxu0 %v3011_v0 }
  0x61   : > { %2615 = vmatpush3.bf16.msra.mxu0 %v2800_v5 }
  0x62   : > { %2620 = vmatprep.subr.bf16.mxu0 %v3011_v0 }
  0x64   : > { %2617 = vmatmul.mubr.msk.bf16.vlgmr.msra.gmra.mxu0 %vm713_vm1, %v690_v3 }
  0x65   : > { %2621 = vmatpush3.bf16.msra.mxu0 %v2801_v6  ;;  %2624 = vmatprep.mubr.msk.bf16.mxu0 %vm3012_vm0, %v3011_v0 }
  0x66   : > { %2622 = vmatprep.subr.bf16.mxu0 %v3011_v0 }
  0x69   : > { %2623 = vmatpush3.bf16.msra.mxu0 %v2802_v7 }
  0x6a   : > { %2634 = vmatprep.subr.bf16.mxu0 %v3011_v0 }
  0x6c   : > { %2625 = vmatmul.mubr.msk.bf16.vlgmr.msra.gmra.mxu0 %vm713_vm1, %v3288_v8 }
  0x6d   : > { %2636 = vmatprep.mubr.msk.bf16.mxu0 %vm3012_vm0, %v3011_v0 }
 0x11c   : > { %v751_v15 = vpop.f32.mrf.mxu0 }
 0x11d   : > { %v752_v16 = vadd.f32 %v751_v15, %v700_v14 }
 0x11e   : > { %v2610_v17 = vpop.f32.mrf.mxu0 }
 0x11f   : > { %v757_v18 = vpack.c.bf16 %v752_v16, %v752_v16 }
 0x120   : > { %v754_v19 = vpop.f32.mrf.mxu0 }
 0x121   : > { %822 = vrot.lane.b32.xlu0 %v757_v18, %s3013_s21  ;;  %826 = vrot.lane.b32.xlu1 %v757_v18, %s3014_s3  ;;  %v834_v52 = vrot.slane %v757_v18, %v3313_v41 }
 0x122   : > { %v2611_v20 = vpop.f32.mrf.mxu0 }
 0x124   : > { %v3306_v22 = vpop.f32.mrf.mxu0 }
 0x125   : > { %824 = vrot.lane.b32.xlu0 %v757_v18, %s3015_s17 }
 0x126   : > { %v2618_v24 = vpop.f32.mrf.mxu0 }
 0x128   : > { %v817_v25 = vpop.f32.mrf.mxu0 }
 0x12a   : > { %v2619_v27 = vpop.f32.mrf.mxu0 }
 0x12c   : > { %v1236_v28 = vpop.f32.mrf.mxu0 }
 0x12d   : > { %v1237_v29 = vadd.f32 %v1236_v28, %v1185_v26 }
 0x12e   : > { %v2626_v30 = vpop.f32.mrf.mxu0 }
 0x12f   : > { %v1242_v31 = vmul.f32 0.35355338, %v1237_v29 }
 0x130   : > { %v1239_v32 = vpop.f32.mrf.mxu0 }
 0x131   : > { %v1243_v33 = vpack.c.bf16 %v1242_v31, %v1242_v31 }
 0x132   : > { %v2627_v34 = vpop.f32.mrf.mxu0 }
 0x133   : > { %1247 = vrot.lane.b32.xlu0 %v1243_v33, %s3015_s17  ;;  %1245 = vrot.lane.b32.xlu1 %v1243_v33, %s3013_s21  ;;  %v1257_v27 = vrot.slane %v1243_v33, %v3313_v41 }
 0x137   : > { %1249 = vrot.lane.b32.xlu1 %v1243_v33, %s3014_s3 }
 0x193   : > { %v823_v42 = vpop.permute.xlu0 %822  ;;  %v827_v43 = vpop.permute.xlu1 %826 }
 0x194   : > { %v868_v45 = vrot.slane %v823_v42, %v3313_v41  ;;  %v876_v46 = vrot.slane %v827_v43, %v3313_v41 }
 0x196   : > { %v877_v47 = vcombine.low %v868_v45, %v876_v46  ;;  %v878_v48 = vcombine.high %v868_v45, %v876_v46 }
 0x197   : > { %v825_v49 = vpop.permute.xlu0 %824 }
 0x198   : > { %v885_v50 = vrot.slane %v877_v47, %v3315_v44  ;;  %v842_v51 = vrot.slane %v825_v49, %v3313_v41  ;;  %v892_v53 = vrot.slane %v878_v48, %v3315_v44 }
 0x19a   : > { %v843_v54 = vcombine.low %v834_v52, %v842_v51  ;;  %v844_v55 = vcombine.high %v834_v52, %v842_v51  ;;  %v893_v57 = vcombine.high %v885_v50, %v3018_v56  ;;  %v894_v60 = vcombine.high %v892_v53, %v3018_v56 }
 0x19b   : > { %v900_v61 = vshrl.u32 %v885_v50, 16  ;;  %v916_v4 = vshrl.u32 %v892_v53, 16 }
 0x19c   : > { %v851_v58 = vrot.slane %v843_v54, %v3315_v44  ;;  %v858_v59 = vrot.slane %v844_v55, %v3315_v44  ;;  %v908_v3 = vshrl.u32 %v893_v57, 16  ;;  %v924_v12 = vshrl.u32 %v894_v60, 16 }
 0x19e   : > { %v859_v62 = vcombine.high %v851_v58, %v3018_v56  ;;  %v860_v63 = vcombine.high %v858_v59, %v3018_v56  ;;  %v897_v1 = vpack.i.b16 %v885_v50, %v851_v58  ;;  %v899_v2 = vshrl.u32 %v851_v58, 16 }
 0x19f   : > { %v913_v5 = vpack.i.b16 %v892_v53, %v858_v59  ;;  %v915_v6 = vshrl.u32 %v858_v59, 16 }
 0x1a0   : > { %v901_v7 = vpack.i.b16 %v900_v61, %v899_v2  ;;  %v905_v9 = vpack.i.b16 %v893_v57, %v859_v62  ;;  %v907_v10 = vshrl.u32 %v859_v62, 16  ;;  %v921_v11 = vpack.i.b16 %v894_v60, %v860_v63 }
 0x1a1   : > { %v917_v14 = vpack.i.b16 %v916_v4, %v915_v6  ;;  %v923_v15 = vshrl.u32 %v860_v63, 16  ;;  %v927_v16 = vcombine.low %v897_v1, %v913_v5 }
 0x1a2   : > { %v909_v17 = vpack.i.b16 %v908_v3, %v907_v10  ;;  %v935_v18 = vcombine.low %v905_v9, %v921_v11 }
 0x1a3   : > { %v925_v19 = vpack.i.b16 %v924_v12, %v923_v15  ;;  %v952_v20 = vcombine.low %v901_v7, %v917_v14  ;;  %v934_v21 = vrot.slane %v927_v16, %v3313_v41 }
 0x1a4   : > { %v942_v23 = vrot.slane %v935_v18, %v3313_v41 }
 0x1a5   : > { %v1248_v24 = vpop.permute.xlu0 %1247  ;;  %v1246_v25 = vpop.permute.xlu1 %1245  ;;  %v960_v26 = vcombine.low %v909_v17, %v925_v19  ;;  %v959_v30 = vrot.slane %v952_v20, %v3313_v41 }
 0x1a6   : > { %v1265_v28 = vrot.slane %v1248_v24, %v3313_v41  ;;  %v943_v29 = vcombine.low %v934_v21, %v942_v23  ;;  %v1291_v42 = vrot.slane %v1246_v25, %v3313_v41 }
 0x1a7   : > { %v967_v31 = vrot.slane %v960_v26, %v3313_v41 }
 0x1a8   : > { %v1266_v32 = vcombine.low %v1257_v27, %v1265_v28  ;;  %v1267_v34 = vcombine.high %v1257_v27, %v1265_v28  ;;  %v950_v35 = vrot.slane %v943_v29, %v3315_v44 }
 0x1a9   : > { %v1250_v36 = vpop.permute.xlu1 %1249  ;;  %v968_v37 = vcombine.low %v959_v30, %v967_v31 }
 0x1aa   : > { %v1274_v38 = vrot.slane %v1266_v32, %v3315_v44  ;;  %v1281_v39 = vrot.slane %v1267_v34, %v3315_v44  ;;  %v1299_v40 = vrot.slane %v1250_v36, %v3313_v41  ;;  %v951_v33 = vcombine.high %v950_v35, %v3018_v56 }
 0x1ab   : > { %v975_v43 = vrot.slane %v968_v37, %v3315_v44  ;;  %v981_v45 = vshrl.u32 %v950_v35, 16 }
 0x1ac   : > { %v1282_v46 = vcombine.high %v1274_v38, %v3018_v56  ;;  %v1300_v47 = vcombine.low %v1291_v42, %v1299_v40  ;;  %v1301_v48 = vcombine.high %v1291_v42, %v1299_v40  ;;  %v1283_v52 = vcombine.high %v1281_v39, %v3018_v56 }
 0x1ad   : > { %v976_v49 = vcombine.high %v975_v43, %v3018_v56  ;;  %v979_v50 = vpack.i.b16 %v975_v43, %v950_v35  ;;  %v982_v51 = vshrl.u32 %v975_v43, 16  ;;  %v989_v53 = vshrl.u32 %v951_v33, 16 }
 0x1ae   : > { %v1322_v54 = vshrl.u32 %v1274_v38, 16  ;;  %v1308_v55 = vrot.slane %v1300_v47, %v3315_v44  ;;  %v1315_v57 = vrot.slane %v1301_v48, %v3315_v44  ;;  %v1338_v61 = vshrl.u32 %v1281_v39, 16 }
 0x1af   : > { %v983_v58 = vpack.i.b16 %v982_v51, %v981_v45  ;;  %v987_v59 = vpack.i.b16 %v976_v49, %v951_v33  ;;  %v990_v60 = vshrl.u32 %v976_v49, 16  ;;  %994 = vst.msk [vmem:[#allocation2] sm:$0xf] %vm993_vm2, %v979_v50  ;;  %v1330_v4 = vshrl.u32 %v1282_v46, 16 }
 0x1b0   : > { %v1316_v62 = vcombine.high %v1308_v55, %v3018_v56  ;;  %v1317_v63 = vcombine.high %v1315_v57, %v3018_v56  ;;  %v1320_v1 = vpack.i.b16 %v1308_v55, %v1274_v38  ;;  %v1323_v2 = vshrl.u32 %v1308_v55, 16 }
 0x1b1   : > { %v991_v3 = vpack.i.b16 %v990_v60, %v989_v53  ;;  %995 = vst.msk [vmem:[#allocation2 + $0x4] sm:$0xf] %vm993_vm2, %v983_v58  ;;  %996 = vst.msk [vmem:[#allocation2 + $0x8] sm:$0xf] %vm993_vm2, %v987_v59  ;;  %v1336_v5 = vpack.i.b16 %v1315_v57, %v1281_v39  ;;  %v1339_v6 = vshrl.u32 %v1315_v57, 16  ;;  %v1346_v12 = vshrl.u32 %v1283_v52, 16 }
 0x1b2   : > { %v1324_v7 = vpack.i.b16 %v1323_v2, %v1322_v54  ;;  %v1328_v9 = vpack.i.b16 %v1316_v62, %v1282_v46  ;;  %v1331_v10 = vshrl.u32 %v1316_v62, 16  ;;  %v1344_v11 = vpack.i.b16 %v1317_v63, %v1283_v52  ;;  %v762_v57 = vld [vmem:[%s3648_s7] sm:$0x1] }
 0x1b3   : > { %997 = vst.msk [vmem:[#allocation2 + $0xc] sm:$0xf] %vm993_vm2, %v991_v3  ;;  %v1340_v14 = vpack.i.b16 %v1339_v6, %v1338_v61  ;;  %v1347_v15 = vshrl.u32 %v1317_v63, 16  ;;  %v1350_v16 = vcombine.low %v1320_v1, %v1336_v5  ;;  %v763_v62 = vunpack.c.l.bf16 %v762_v57 }
 0x1b4   : > { %v1332_v17 = vpack.i.b16 %v1331_v10, %v1330_v4  ;;  %v1358_v18 = vcombine.low %v1328_v9, %v1344_v11 }
 0x1b5   : > { %v1348_v19 = vpack.i.b16 %v1347_v15, %v1346_v12  ;;  %v1375_v20 = vcombine.low %v1324_v7, %v1340_v14  ;;  %v1357_v21 = vrot.slane %v1350_v16, %v3313_v41  ;;  %v767_v5 = vrot.slane %v763_v62, %v3298_v13 }
 0x1b6   : > { %v1365_v23 = vrot.slane %v1358_v18, %v3313_v41  ;;  %v1412_v24 = vld [vmem:[#allocation2] sm:$0xf] }
 0x1b7   : > { %v1383_v25 = vcombine.low %v1332_v17, %v1348_v19  ;;  %v1421_v26 = vsel %vm1416_vm3, %v1412_v24, 0  ;;  %v1382_v29 = vrot.slane %v1375_v20, %v3313_v41  ;;  %v815_v12 = vadd.f32 %v3306_v22, %v767_v5 }
 0x1b8   : > { %2629 = vmatpush3.bf16.xpose.msra.mxu1 %v1421_v26  ;;  %v1413_v27 = vld [vmem:[#allocation2 + $0x4] sm:$0xf]  ;;  %v1366_v28 = vcombine.low %v1357_v21, %v1365_v23  ;;  %v1414_v36 = vld [vmem:[#allocation2 + $0x8] sm:$0xf] }
 0x1b9   : > { %v1467_v30 = vsel %vm1416_vm3, %v1413_v27, 0  ;;  %2640 = vmatprep.subr.bf16.mxu1 %v3011_v0  ;;  %v1390_v31 = vrot.slane %v1383_v25, %v3313_v41  ;;  %v1513_v33 = vsel %vm1416_vm3, %v1414_v36, 0  ;;  %v820_v15 = vpack.c.bf16 %v815_v12, %v815_v12 }
 0x1ba   : > { %2635 = vmatpush3.bf16.xpose.msra.mxu0 %v1467_v30  ;;  %v1373_v32 = vrot.slane %v1366_v28, %v3315_v44  ;;  %v1415_v40 = vld [vmem:[#allocation2 + $0xc] sm:$0xf] }
 0x1bb   : > { %v1391_v34 = vcombine.low %v1382_v29, %v1390_v31  ;;  %2646 = vmatprep.subr.bf16.mxu0 %v3011_v0  ;;  %v1559_v45 = vsel %vm1416_vm3, %v1415_v40, 0 }
 0x1bc   : > { %v1403_v38 = vshrl.u32 %v1373_v32, 16  ;;  %v1374_v46 = vcombine.high %v1373_v32, %v3018_v56 }
 0x1bd   : > { %v1398_v35 = vrot.slane %v1391_v34, %v3315_v44 }
 0x1be   : > { %v1409_v49 = vshrl.u32 %v1374_v46, 16 }
 0x1bf   : > { %v1402_v37 = vpack.i.b16 %v1398_v35, %v1373_v32  ;;  %v1404_v39 = vshrl.u32 %v1398_v35, 16  ;;  %v1399_v43 = vcombine.high %v1398_v35, %v3018_v56 }
 0x1c1   : > { %2631 = vmatmul.mubr.msk.bf16.vlgmr.msra.gmra.mxu1 %vm1416_vm3, %v1402_v37  ;;  %v1405_v42 = vpack.i.b16 %v1404_v39, %v1403_v38  ;;  %v1410_v47 = vshrl.u32 %v1399_v43, 16  ;;  %v1408_v48 = vpack.i.b16 %v1399_v43, %v1374_v46  ;;  %v1011_v39 = vrot.slane %v820_v15, %v3313_v41 }
 0x1c2   : > { %2641 = vmatpush3.bf16.xpose.msra.mxu1 %v1513_v33  ;;  %2642 = vmatprep.mubr.msk.bf16.mxu1 %vm3012_vm0, %v3011_v0 }
 0x1c3   : > { %2637 = vmatmul.mubr.msk.bf16.vlgmr.msra.gmra.mxu0 %vm1416_vm3, %v1405_v42  ;;  %2652 = vmatprep.subr.bf16.mxu1 %v3011_v0  ;;  %v1411_v50 = vpack.i.b16 %v1410_v47, %v1409_v49 }
 0x1c4   : > { %2647 = vmatpush3.bf16.xpose.msra.mxu0 %v1559_v45  ;;  %2648 = vmatprep.mubr.msk.bf16.mxu0 %vm3012_vm0, %v3011_v0 }
 0x1c5   : > { %2658 = vmatprep.subr.bf16.mxu0 %v3011_v0 }
 0x1c9   : > { %2643 = vmatmul.mubr.msk.bf16.vlgmr.msra.gmra.mxu1 %vm1416_vm3, %v1408_v48 }
 0x1ca   : > { %2654 = vmatprep.mubr.msk.bf16.mxu1 %vm3012_vm0, %v3011_v0 }
 0x1cb   : > { %2649 = vmatmul.mubr.msk.bf16.vlgmr.msra.gmra.mxu0 %vm1416_vm3, %v1411_v50 }
 0x1cc   : > { %2660 = vmatprep.mubr.msk.bf16.mxu0 %vm3012_vm0, %v3011_v0 }
 0x281   : > { %v1457_v51 = vpop.f32.mrf.mxu1 }
 0x282   : > { %v1601_v52 = vsel %vm1416_vm3, %v1457_v51, -inf }
 0x283   : > { %1602 = vmax.xlane.f32.xlu0 %v1601_v52  ;;  %v2632_v53 = vpop.f32.mrf.mxu1  ;;  %v1503_v54 = vpop.f32.mrf.mxu0 }
 0x284   : > { %v1604_v55 = vsel %vm1416_vm3, %v1503_v54, -inf }
 0x285   : > { %v1460_v58 = vpop.f32.mrf.mxu1  ;;  %1605 = vmax.xlane.f32.xlu1 %v1604_v55  ;;  %v2638_v59 = vpop.f32.mrf.mxu0 }
 0x287   : > { %v2633_v60 = vpop.f32.mrf.mxu1  ;;  %v1506_v61 = vpop.f32.mrf.mxu0 }
 0x289   : > { %v2639_v63 = vpop.f32.mrf.mxu0  ;;  %v1549_v1 = vpop.f32.mrf.mxu1 }
 0x28a   : > { %v1607_v2 = vsel %vm1416_vm3, %v1549_v1, -inf }
 0x28b   : > { %1608 = vmax.xlane.f32.xlu0 %v1607_v2  ;;  %v2644_v3 = vpop.f32.mrf.mxu1  ;;  %v1595_v4 = vpop.f32.mrf.mxu0 }
 0x28c   : > { %v1610_v9 = vsel %vm1416_vm3, %v1595_v4, -inf }
 0x28d   : > { %v1552_v6 = vpop.f32.mrf.mxu1  ;;  %v2650_v7 = vpop.f32.mrf.mxu0 }
 0x28f   : > { %v2645_v10 = vpop.f32.mrf.mxu1  ;;  %1611 = vmax.xlane.f32.xlu0 %v1610_v9  ;;  %v1598_v11 = vpop.f32.mrf.mxu0 }
 0x291   : > { %v2651_v14 = vpop.f32.mrf.mxu0 }
 0x296   : > { %999 = vrot.lane.b32.xlu1 %v820_v15, %s3013_s21  ;;  %s3019_s21 = smov 8  }
 0x29a   : > { %1003 = vrot.lane.b32.xlu1 %v820_v15, %s3014_s3  ;;  %s3020_s3 = smov 16  }
 0x2a5   : > { %1001 = vrot.lane.b32.xlu0 %v820_v15, %s3015_s17  ;;  %s3022_s17 = smov [#allocation10]  }
 0x2a6   : > { %s2897_s1 = sshll.u32 %s3022_s17, 4  ;;  %s2898_s1 = int_to_ptr.vmem [resolvable:$false] %s2897_s1 }
 0x2a7   : > { %p2900_p13 = scmp.lt.s32.totalorder %s3569_s0, %s2898_s1 }
 0x30c   : > { %v1603_v16 = vpop.xlane.xlu0 %1602 }
 0x30d   : > { %v1613_v17 = vsub.f32 %v1457_v51, %v1603_v16 }
 0x30e   : > { %v1606_v18 = vpop.xlane.xlu1 %1605 }
 0x30f   : > { %v1617_v19 = vmul.f32 1.442695, %v1613_v17  ;;  %v1614_v20 = vsub.f32 %v1503_v54, %v1606_v18 }
 0x311   : > { %2815 = vpow2.f32 %v1617_v19  ;;  %v1619_v21 = vmul.f32 1.442695, %v1614_v20 }
 0x312   : > { %v1000_v23 = vpop.permute.xlu1 %999 }
 0x313   : > { %2817 = vpow2.f32 %v1619_v21  ;;  %v1045_v26 = vrot.slane %v1000_v23, %v3313_v41 }
 0x314   : > { %v1609_v24 = vpop.xlane.xlu0 %1608 }
 0x315   : > { %v1615_v25 = vsub.f32 %v1549_v1, %v1609_v24 }
 0x316   : > { %v1004_v22 = vpop.permute.xlu1 %1003 }
 0x317   : > { %v1621_v27 = vmul.f32 1.442695, %v1615_v25  ;;  %v1053_v28 = vrot.slane %v1004_v22, %v3313_v41 }
 0x318   : > { %v1612_v29 = vpop.xlane.xlu0 %1611 }
 0x319   : > { %2819 = vpow2.f32 %v1621_v27  ;;  %v1054_v30 = vcombine.low %v1045_v26, %v1053_v28  ;;  %v1055_v31 = vcombine.high %v1045_v26, %v1053_v28  ;;  %v1616_v32 = vsub.f32 %v1595_v4, %v1612_v29 }
 0x31b   : > { %v1623_v34 = vmul.f32 1.442695, %v1616_v32  ;;  %v1062_v36 = vrot.slane %v1054_v30, %v3315_v44  ;;  %v1069_v37 = vrot.slane %v1055_v31, %v3315_v44 }
 0x31c   : > { %v1002_v35 = vpop.permute.xlu0 %1001 }
 0x31d   : > { %2821 = vpow2.f32 %v1623_v34  ;;  %v1019_v40 = vrot.slane %v1002_v35, %v3313_v41  ;;  %v1070_v46 = vcombine.high %v1062_v36, %v3018_v56  ;;  %v1071_v47 = vcombine.high %v1069_v37, %v3018_v56 }
 0x31e   : > { %v3397_v38 = vpop.eup %2815  ;;  %v1077_v51 = vshrl.u32 %v1062_v36, 16  ;;  %v1093_v52 = vshrl.u32 %v1069_v37, 16 }
 0x31f   : > { %v1625_v33 = vsel %vm1416_vm3, %v3397_v38, 0.0  ;;  %v1020_v43 = vcombine.low %v1011_v39, %v1019_v40  ;;  %v1021_v45 = vcombine.high %v1011_v39, %v1019_v40  ;;  %v1085_v58 = vshrl.u32 %v1070_v46, 16 }
 0x320   : > { %v3403_v42 = vpop.eup %2817  ;;  %1626 = vadd.xlane.f32.xlu1 %v1625_v33  ;;  %v1101_v59 = vshrl.u32 %v1071_v47, 16 }
 0x321   : > { %v1628_v48 = vsel %vm1416_vm3, %v3403_v42, 0.0  ;;  %v1028_v49 = vrot.slane %v1020_v43, %v3315_v44  ;;  %v1035_v50 = vrot.slane %v1021_v45, %v3315_v44 }
 0x322   : > { %1629 = vadd.xlane.f32.xlu0 %v1628_v48 }
 0x323   : > { %v1036_v53 = vcombine.high %v1028_v49, %v3018_v56  ;;  %v1037_v54 = vcombine.high %v1035_v50, %v3018_v56  ;;  %v1074_v55 = vpack.i.b16 %v1062_v36, %v1028_v49  ;;  %v1076_v57 = vshrl.u32 %v1028_v49, 16 }
 0x324   : > { %v1090_v60 = vpack.i.b16 %v1069_v37, %v1035_v50  ;;  %v1092_v61 = vshrl.u32 %v1035_v50, 16 }
 0x325   : > { %v1078_v63 = vpack.i.b16 %v1077_v51, %v1076_v57  ;;  %v1082_v1 = vpack.i.b16 %v1070_v46, %v1036_v53  ;;  %v1084_v2 = vshrl.u32 %v1036_v53, 16  ;;  %v1098_v3 = vpack.i.b16 %v1071_v47, %v1037_v54 }
 0x326   : > { %v3413_v62 = vpop.eup %2819  ;;  %v1094_v4 = vpack.i.b16 %v1093_v52, %v1092_v61  ;;  %v1100_v5 = vshrl.u32 %v1037_v54, 16  ;;  %v1104_v6 = vcombine.low %v1074_v55, %v1090_v60 }
 0x327   : > { %v1631_v7 = vsel %vm1416_vm3, %v3413_v62, 0.0  ;;  %v1086_v9 = vpack.i.b16 %v1085_v58, %v1084_v2  ;;  %v1112_v10 = vcombine.low %v1082_v1, %v1098_v3 }
 0x328   : > { %1632 = vadd.xlane.f32.xlu0 %v1631_v7  ;;  %v1102_v11 = vpack.i.b16 %v1101_v59, %v1100_v5  ;;  %v1129_v12 = vcombine.low %v1078_v63, %v1094_v4  ;;  %v1111_v14 = vrot.slane %v1104_v6, %v3313_v41 }
 0x329   : > { %v1119_v15 = vrot.slane %v1112_v10, %v3313_v41 }
 0x32a   : > { %v3419_v16 = vpop.eup %2821  ;;  %v1137_v17 = vcombine.low %v1086_v9, %v1102_v11  ;;  %v1136_v20 = vrot.slane %v1129_v12, %v3313_v41 }
 0x32b   : > { %v1120_v18 = vcombine.low %v1111_v14, %v1119_v15  ;;  %v1634_v19 = vsel %vm1416_vm3, %v3419_v16, 0.0 }
 0x32c   : > { %v1144_v21 = vrot.slane %v1137_v17, %v3313_v41  ;;  %1635 = vadd.xlane.f32.xlu1 %v1634_v19 }
 0x32d   : > { %v1127_v23 = vrot.slane %v1120_v18, %v3315_v44 }
 0x32e   : > { %v1145_v24 = vcombine.low %v1136_v20, %v1144_v21 }
 0x32f   : > { %v1128_v25 = vcombine.high %v1127_v23, %v3018_v56  ;;  %v1158_v28 = vshrl.u32 %v1127_v23, 16 }
 0x330   : > { %v1152_v22 = vrot.slane %v1145_v24, %v3315_v44 }
 0x331   : > { %v1166_v32 = vshrl.u32 %v1128_v25, 16 }
 0x332   : > { %v1153_v26 = vcombine.high %v1152_v22, %v3018_v56  ;;  %v1156_v27 = vpack.i.b16 %v1152_v22, %v1127_v23  ;;  %v1159_v29 = vshrl.u32 %v1152_v22, 16 }
 0x334   : > { %v1160_v30 = vpack.i.b16 %v1159_v29, %v1158_v28  ;;  %v1164_v31 = vpack.i.b16 %v1153_v26, %v1128_v25  ;;  %v1167_v34 = vshrl.u32 %v1153_v26, 16  ;;  %1170 = vst.msk [vmem:[#allocation3] sm:$0xf] %vm993_vm2, %v1156_v27 }
 0x336   : > { %v1168_v35 = vpack.i.b16 %v1167_v34, %v1166_v32  ;;  %1171 = vst.msk [vmem:[#allocation3 + $0x4] sm:$0xf] %vm993_vm2, %v1160_v30  ;;  %1172 = vst.msk [vmem:[#allocation3 + $0x8] sm:$0xf] %vm993_vm2, %v1164_v31 }
 0x338   : > { %1173 = vst.msk [vmem:[#allocation3 + $0xc] sm:$0xf] %vm993_vm2, %v1168_v35 }
 0x33b   : > { %v1654_v36 = vld [vmem:[#allocation3] sm:$0xf] }
 0x33c   : > { %v1663_v37 = vsel %vm1661_vm4, %v1654_v36, 0 }
 0x33d   : > { %2653 = vmatpush3.bf16.msra.mxu1 %v1663_v37  ;;  %v1655_v39 = vld [vmem:[#allocation3 + $0x4] sm:$0xf]  ;;  %v1656_v50 = vld [vmem:[#allocation3 + $0x8] sm:$0xf] }
 0x33e   : > { %v1709_v40 = vsel %vm1661_vm4, %v1655_v39, 0  ;;  %2664 = vmatprep.subr.bf16.mxu1 %v3011_v0  ;;  %v1755_v54 = vsel %vm1661_vm4, %v1656_v50, 0 }
 0x33f   : > { %2659 = vmatpush3.bf16.msra.mxu0 %v1709_v40  ;;  %v1657_v53 = vld [vmem:[#allocation3 + $0xc] sm:$0xf] }
 0x340   : > { %2670 = vmatprep.subr.bf16.mxu0 %v3011_v0 }
 0x3a9   : > { %v1627_v33 = vpop.xlane.xlu1 %1626 }
 0x3aa   : > { %2823 = vrcp.f32 %v1627_v33 }
 0x3ab   : > { %v1630_v43 = vpop.xlane.xlu0 %1629 }
 0x3ac   : > { %2825 = vrcp.f32 %v1630_v43 }
 0x3b1   : > { %v1633_v45 = vpop.xlane.xlu0 %1632 }
 0x3b2   : > { %2827 = vrcp.f32 %v1633_v45 }
 0x3b5   : > { %v1636_v46 = vpop.xlane.xlu1 %1635 }
 0x3b6   : > { %2829 = vrcp.f32 %v1636_v46 }
 0x3b7   : > { %v2824_v47 = vpop.eup %2823 }
 0x3b8   : > { %v1641_v48 = vmul.f32 %v2824_v47, %v3397_v38  ;;  %v1801_v38 = vsel %vm1661_vm4, %v1657_v53, 0 }
 0x3b9   : > { %v2826_v49 = vpop.eup %2825 }
 0x3ba   : > { %v1645_v51 = vpack.c.bf16 %v1641_v48, %v1641_v48  ;;  %v1642_v52 = vmul.f32 %v2826_v49, %v3403_v42 }
 0x3bc   : > { %1650 = vst.msk [vmem:[%s3440_s29] sm:$0xf] %vm993_vm2, %v1645_v51  ;;  %2655 = vmatmul.mubr.msk.bf16.vlgmr.msra.gmra.mxu1 %vm1416_vm3, %v1645_v51  ;;  %v1646_v55 = vpack.c.bf16 %v1642_v52, %v1642_v52 }
 0x3bd   : > { %2665 = vmatpush3.bf16.msra.mxu1 %v1755_v54  ;;  %2666 = vmatprep.mubr.msk.bf16.mxu1 %vm3012_vm0, %v3011_v0 }
 0x3be   : > { %1651 = vst.msk [vmem:[%s3440_s29 + $0x4] sm:$0xf] %vm993_vm2, %v1646_v55  ;;  %2661 = vmatmul.mubr.msk.bf16.vlgmr.msra.gmra.mxu0 %vm1416_vm3, %v1646_v55  ;;  %2676 = vmatprep.subr.bf16.mxu1 %v3011_v0 }
 0x3bf   : > { %v2828_v42 = vpop.eup %2827  ;;  %2671 = vmatpush3.bf16.msra.mxu0 %v1801_v38  ;;  %2672 = vmatprep.mubr.msk.bf16.mxu0 %vm3012_vm0, %v3011_v0 }
 0x3c0   : > { %v1643_v57 = vmul.f32 %v2828_v42, %v3413_v62  ;;  %2684 = vmatprep.subr.bf16.mxu0 %v3011_v0  ;;  %v2803_v62 = vld [vmem:[%s3649_s8 + $0x8] sm:$0xff]  }
 0x3c2   : > { %v1647_v58 = vpack.c.bf16 %v1643_v57, %v1643_v57 }
 0x3c3   : > { %v2830_v59 = vpop.eup %2829 }
 0x3c4   : > { %1652 = vst.msk [vmem:[%s3440_s29 + $0x8] sm:$0xf] %vm993_vm2, %v1647_v58  ;;  %2667 = vmatmul.mubr.msk.bf16.vlgmr.msra.gmra.mxu1 %vm1416_vm3, %v1647_v58  ;;  %v1644_v60 = vmul.f32 %v2830_v59, %v3419_v16 }
 0x3c5   : > { %2680 = vmatprep.mubr.msk.bf16.mxu1 %vm3012_vm0, %v3011_v0  ;;  %2677 = vmatpush3.bf16.msra.mxu1 %v2803_v62  ;;  %v2804_v62 = vld [vmem:[%s3649_s8] sm:$0xff]  }
 0x3c6   : > { %v1648_v61 = vpack.c.bf16 %v1644_v60, %v1644_v60  ;;  %2678 = vmatprep.subr.bf16.mxu1 %v3011_v0 }
 0x3c8   : > { %1653 = vst.msk [vmem:[%s3440_s29 + $0xc] sm:$0xf] %vm993_vm2, %v1648_v61  ;;  %2673 = vmatmul.mubr.msk.bf16.vlgmr.msra.gmra.mxu0 %vm1416_vm3, %v1648_v61  ;;  %s2899_s29 = scalar_lea.vmem %s2898_s1, 512 }
 0x3c9   : > { %2688 = vmatprep.mubr.msk.bf16.mxu0 %vm3012_vm0, %v3011_v0  ;;  %2679 = vmatpush3.bf16.msra.mxu1 %v2804_v62  ;;  %p2901_p5 = scmp.lt.s32.totalorder %s2899_s29, %s2893_s16 }
 0x3ca   : > { %2692 = vmatprep.subr.bf16.mxu1 %v3011_v0 }
 0x3cb   : > { %p2902_p12 = por %p2901_p5, %p2900_p13 }
 0x3cd   : > { %p2903_p6 = pnand %p2902_p12, %p2896_p3 }
 0x47c   : > { %v1699_v63 = vpop.f32.mrf.mxu1 }
 0x47d   : > { %v1843_v7 = vpack.c.bf16 %v1699_v63, %v1699_v63 }
 0x47e   : > { %v2656_v1 = vpop.f32.mrf.mxu1  ;;  %v1745_v2 = vpop.f32.mrf.mxu0 }
 0x47f   : > { %v1850_v14 = vrot.slane %v1843_v7, %v3313_v41  ;;  %v1877_v16 = vpack.c.bf16 %v1745_v2, %v1745_v2 }
 0x480   : > { %v1702_v3 = vpop.f32.mrf.mxu1  ;;  %v2662_v4 = vpop.f32.mrf.mxu0 }
 0x481   : > { %v1884_v22 = vrot.slane %v1877_v16, %v3313_v41 }
 0x482   : > { %v2657_v5 = vpop.f32.mrf.mxu1  ;;  %v1748_v6 = vpop.f32.mrf.mxu0 }
 0x484   : > { %v2663_v9 = vpop.f32.mrf.mxu0  ;;  %v1791_v10 = vpop.f32.mrf.mxu1 }
 0x485   : > { %v1851_v11 = vpack.c.bf16 %v1791_v10, %v1791_v10 }
 0x486   : > { %v2668_v12 = vpop.f32.mrf.mxu1 }
 0x487   : > { %v1858_v15 = vrot.slane %v1851_v11, %v3313_v41 }
 0x488   : > { %v1794_v17 = vpop.f32.mrf.mxu1  ;;  %v1837_v20 = vpop.f32.mrf.mxu0 }
 0x489   : > { %v1859_v18 = vcombine.low %v1850_v14, %v1858_v15  ;;  %v1860_v19 = vcombine.high %v1850_v14, %v1858_v15  ;;  %v1885_v21 = vpack.c.bf16 %v1837_v20, %v1837_v20 }
 0x48a   : > { %v2669_v23 = vpop.f32.mrf.mxu1  ;;  %v2674_v25 = vpop.f32.mrf.mxu0 }
 0x48b   : > { %v1867_v24 = vrot.slane %v1859_v18, %v3315_v44  ;;  %v1892_v26 = vrot.slane %v1885_v21, %v3313_v41  ;;  %v1874_v27 = vrot.slane %v1860_v19, %v3315_v44  ;;  %v2024_v23 = vld [vmem:[%s3650_s9] sm:$0x1] }
 0x48c   : > { %v1840_v28 = vpop.f32.mrf.mxu0 }
 0x48d   : > { %v1893_v29 = vcombine.low %v1884_v22, %v1892_v26  ;;  %v1894_v30 = vcombine.high %v1884_v22, %v1892_v26  ;;  %v1875_v31 = vcombine.high %v1867_v24, %v3018_v56  ;;  %v1876_v36 = vcombine.high %v1874_v27, %v3018_v56 }
 0x48e   : > { %v2675_v32 = vpop.f32.mrf.mxu0  ;;  %v1915_v37 = vshrl.u32 %v1867_v24, 16  ;;  %v1931_v46 = vshrl.u32 %v1874_v27, 16  ;;  %v1175_v22 = vunpack.c.l.bf16 %v3288_v8  ;;  %v2805_v8 = vld [vmem:[%s3653_s12 + $0x8] sm:$0xff]  }
 0x48f   : > { %v1901_v34 = vrot.slane %v1893_v29, %v3315_v44  ;;  %v1908_v35 = vrot.slane %v1894_v30, %v3315_v44  ;;  %v1923_v45 = vshrl.u32 %v1875_v31, 16  ;;  %v1939_v53 = vshrl.u32 %v1876_v36, 16  ;;  %2685 = vmatpush3.bf16.msra.mxu0 %v2805_v8 }
 0x490   : > { %2686 = vmatprep.subr.bf16.mxu0 %v3011_v0 }
 0x491   : > { %v1909_v39 = vcombine.high %v1901_v34, %v3018_v56  ;;  %v1910_v40 = vcombine.high %v1908_v35, %v3018_v56  ;;  %v1913_v33 = vpack.i.b16 %v1901_v34, %v1867_v24  ;;  %v1916_v43 = vshrl.u32 %v1901_v34, 16 }
 0x492   : > { %v1929_v47 = vpack.i.b16 %v1908_v35, %v1874_v27  ;;  %v1932_v48 = vshrl.u32 %v1908_v35, 16  ;;  %v2025_v24 = vunpack.c.l.bf16 %v2024_v23 }
 0x493   : > { %v1917_v49 = vpack.i.b16 %v1916_v43, %v1915_v37  ;;  %v1921_v50 = vpack.i.b16 %v1909_v39, %v1875_v31  ;;  %v1924_v51 = vshrl.u32 %v1909_v39, 16  ;;  %v1937_v52 = vpack.i.b16 %v1910_v40, %v1876_v36 }
 0x494   : > { %v1933_v54 = vpack.i.b16 %v1932_v48, %v1931_v46  ;;  %v1940_v55 = vshrl.u32 %v1910_v40, 16  ;;  %v1943_v38 = vcombine.low %v1913_v33, %v1929_v47  ;;  %v2029_v25 = vrot.slane %v2025_v24, %v3298_v13  ;;  %v2806_v40 = vld [vmem:[%s3653_s12] sm:$0xff]  }
 0x495   : > { %v1925_v42 = vpack.i.b16 %v1924_v51, %v1923_v45  ;;  %v1951_v57 = vcombine.low %v1921_v50, %v1937_v52  ;;  %2687 = vmatpush3.bf16.msra.mxu0 %v2806_v40  ;;  %v2541_v47 = vld [vmem:[%s3651_s10] ss:$0 sm:$0xff] }
 0x496   : > { %v1941_v58 = vpack.i.b16 %v1940_v55, %v1939_v53  ;;  %v1968_v59 = vcombine.low %v1917_v49, %v1933_v54  ;;  %v1950_v60 = vrot.slane %v1943_v38, %v3313_v41  ;;  %v2542_v49 = vld [vmem:[%s3652_s11] ss:$0 sm:$0xff]  ;;  %v2807_v53 = vld [vmem:[%s3655_s14 + $0x38] sm:$0xff]   ;;  %v2808_v54 = vld [vmem:[%s3655_s14 + $0x30] sm:$0xff]  }
 0x497   : > { %v1958_v61 = vrot.slane %v1951_v57, %v3313_v41  ;;  %v2809_v55 = vld [vmem:[%s3655_s14 + $0x28] sm:$0xff]   ;;  %v2810_v38 = vld [vmem:[%s3655_s14 + $0x20] sm:$0xff]   ;;  %v2812_v57 = vld [vmem:[%s3655_s14 + $0x10] sm:$0xff]  }
 0x498   : > { %v1976_v63 = vcombine.low %v1925_v42, %v1941_v58  ;;  %v1975_v2 = vrot.slane %v1968_v59, %v3313_v41  ;;  %v2811_v42 = vld [vmem:[%s3655_s14 + $0x18] sm:$0xff]   ;;  %v2813_v58 = vld [vmem:[%s3655_s14 + $0x8] sm:$0xff]   ;;  %v2814_v59 = vld [vmem:[%s3655_s14] sm:$0xff]  }
 0x499   : > { %v1959_v1 = vcombine.low %v1950_v60, %v1958_v61  ;;  %v2120_v60 = vld [vmem:[%s3654_s13] sm:$0x1] }
 0x49a   : > { %v1983_v3 = vrot.slane %v1976_v63, %v3313_v41  ;;  %v2121_v61 = vunpack.c.l.bf16 %v2120_v60 }
 0x49b   : > { %v1966_v4 = vrot.slane %v1959_v1, %v3315_v44 }
 0x49c   : > { %v1984_v5 = vcombine.low %v1975_v2, %v1983_v3  ;;  %v2125_v62 = vrot.slane %v2121_v61, %v3298_v13 }
 0x49d   : > { %v1996_v7 = vshrl.u32 %v1966_v4, 16  ;;  %v1967_v10 = vcombine.high %v1966_v4, %v3018_v56 }
 0x49e   : > { %v1991_v6 = vrot.slane %v1984_v5, %v3315_v44 }
 0x49f   : > { %v2002_v41 = vshrl.u32 %v1967_v10, 16 }
 0x4a0   : > { %v1997_v9 = vshrl.u32 %v1991_v6, 16  ;;  %v1992_v11 = vcombine.high %v1991_v6, %v3018_v56  ;;  %v1995_v12 = vpack.i.b16 %v1991_v6, %v1966_v4 }
 0x4a2   : > { %v1998_v14 = vpack.i.b16 %v1997_v9, %v1996_v7  ;;  %v2001_v15 = vpack.i.b16 %v1992_v11, %v1967_v10  ;;  %v2003_v16 = vshrl.u32 %v1992_v11, 16 }
 0x4a4   : > { %2005 = vrot.lane.b32.xlu0 %v1998_v14, %s3019_s21  ;;  %2007 = vrot.lane.b32.xlu1 %v2001_v15, %s3020_s3  ;;  %v2004_v17 = vpack.i.b16 %v2003_v16, %v2002_v41  ;;  %v2207_v16 = vld [vmem:[%s3656_s15] sm:$0x1]  ;;  %s3705_s21 = sld [smem:[#allocation33_spill]] }
 0x4a5   : > { %v2208_v41 = vunpack.c.l.bf16 %v2207_v16 }
 0x4a8   : > { %2009 = vrot.lane.b32.xlu1 %v2004_v17, %s3021_s28  ;;  %v2212_v17 = vrot.slane %v2208_v41, %v3298_v13 }
 0x4aa   : > { %s3706_s3 = smov %s3705_s21  ;;  %s3567_s28 = scalar_lea.hbm %s3705_s21, %s2563_s26 }
 0x516   : > { %v2006_v18 = vpop.permute.xlu0 %2005  ;;  %v2008_v44 = vpop.permute.xlu1 %2007 }
 0x517   : > { %v2013_v19 = vsel %vm1416_vm3, %v1995_v12, %v2006_v18 }
 0x518   : > { %v2016_v20 = vsel %vm2014_vm5, %v2013_v19, %v2008_v44 }
 0x51a   : > { %v2010_v56 = vpop.permute.xlu1 %2009 }
 0x51b   : > { %v2019_v21 = vsel %vm2017_vm6, %v2016_v20, %v2010_v56 }
 0x51c   : > { %2681 = vmatmul.mubr.msk.bf16.vlgmr.msra.gmra.mxu1 %vm713_vm1, %v2019_v21 }
 0x51d   : > { %2708 = vmatprep.mubr.msk.bf16.mxu1 %vm3012_vm0, %v3011_v0  ;;  %2693 = vmatpush3.bf16.msra.mxu1 %v2807_v53 }
 0x51e   : > { %2694 = vmatprep.subr.bf16.mxu1 %v3011_v0 }
 0x521   : > { %2695 = vmatpush3.bf16.msra.mxu1 %v2808_v54 }
 0x522   : > { %2696 = vmatprep.subr.bf16.mxu1 %v3011_v0 }
 0x525   : > { %2697 = vmatpush3.bf16.msra.mxu1 %v2809_v55 }
 0x526   : > { %2698 = vmatprep.subr.bf16.mxu1 %v3011_v0 }
 0x529   : > { %2699 = vmatpush3.bf16.msra.mxu1 %v2810_v38 }
 0x52a   : > { %2700 = vmatprep.subr.bf16.mxu1 %v3011_v0 }
 0x52d   : > { %2701 = vmatpush3.bf16.msra.mxu1 %v2811_v42 }
 0x52e   : > { %2702 = vmatprep.subr.bf16.mxu1 %v3011_v0 }
 0x531   : > { %2703 = vmatpush3.bf16.msra.mxu1 %v2812_v57 }
 0x532   : > { %2704 = vmatprep.subr.bf16.mxu1 %v3011_v0 }
 0x535   : > { %2705 = vmatpush3.bf16.msra.mxu1 %v2813_v58 }
 0x536   : > { %2706 = vmatprep.subr.bf16.mxu1 %v3011_v0 }
 0x539   : > { %2707 = vmatpush3.bf16.msra.mxu1 %v2814_v59 }
 0x5dc   : > { %v2078_v26 = vpop.f32.mrf.mxu1 }
 0x5dd   : > { %v2079_v27 = vadd.f32 %v2078_v26, %v2029_v25 }
 0x5de   : > { %v2682_v28 = vpop.f32.mrf.mxu1 }
 0x5df   : > { %v2084_v29 = vadd.f32 %v2079_v27, %v1175_v22 }
 0x5e0   : > { %v2081_v30 = vpop.f32.mrf.mxu1 }
 0x5e1   : > { %v2085_v31 = vsel %vm713_vm1, %v2084_v29, 0.0 }
 0x5e2   : > { %2086 = vadd.xlane.f32.xlu0 %v2085_v31  ;;  %v2683_v32 = vpop.f32.mrf.mxu1 }
 0x66b   : > { %v2087_v34 = vpop.xlane.xlu0 %2086 }
 0x66c   : > { %v2089_v35 = vmul.f32 0.03125, %v2087_v34 }
 0x66e   : > { %v2090_v36 = vsub.f32 %v2084_v29, %v2089_v35 }
 0x670   : > { %v2091_v37 = vmul.f32 %v2090_v36, %v2090_v36 }
 0x672   : > { %v2092_v39 = vsel %vm713_vm1, %v2091_v37, 0.0 }
 0x673   : > { %2093 = vadd.xlane.f32.xlu1 %v2092_v39 }
 0x6fc   : > { %v2094_v33 = vpop.xlane.xlu1 %2093 }
 0x6fd   : > { %v2095_v43 = vmul.f32 0.03125, %v2094_v33 }
 0x6ff   : > { %v2096_v45 = vadd.f32 1e-06, %v2095_v43 }
 0x701   : > { %2831 = vrsqrt.f32 %v2096_v45 }
 0x70e   : > { %v2832_v46 = vpop.eup %2831 }
 0x70f   : > { %v2098_v48 = vmul.f32 %v2832_v46, %v2090_v36 }
 0x711   : > { %v2106_v50 = vmul.f32 %v2541_v47, %v2098_v48 }
 0x713   : > { %v2114_v51 = vadd.f32 %v2542_v49, %v2106_v50 }
 0x715   : > { %v2115_v52 = vpack.c.bf16 %v2114_v51, %v2114_v51 }
 0x717   : > { %2689 = vmatmul.mubr.msk.bf16.vlgmr.msra.gmra.mxu0 %vm713_vm1, %v2115_v52 }
 0x7d7   : > { %v2175_v63 = vpop.f32.mrf.mxu0 }
 0x7d8   : > { %v2176_v1 = vadd.f32 %v2175_v63, %v2125_v62 }
 0x7d9   : > { %v2690_v2 = vpop.f32.mrf.mxu0 }
 0x7da   : > { %v2181_v3 = vmul.f32 %v2176_v1, %v2176_v1 }
 0x7db   : > { %v2178_v4 = vpop.f32.mrf.mxu0 }
 0x7dc   : > { %v2182_v5 = vmul.f32 %v2181_v3, %v2176_v1 }
 0x7dd   : > { %v2691_v6 = vpop.f32.mrf.mxu0 }
 0x7de   : > { %v2183_v7 = vmul.f32 0.044715, %v2182_v5 }
 0x7e0   : > { %v2184_v9 = vadd.f32 %v2183_v7, %v2176_v1 }
 0x7e2   : > { %v2185_v10 = vmul.f32 0.7978846, %v2184_v9 }
 0x7e4   : > { %2833 = vtanh.f32 %v2185_v10 }
 0x7f1   : > { %v2834_v0 = vpop.eup %2833 }
 0x7f2   : > { %v2187_v11 = vadd.f32 1.0, %v2834_v0 }
 0x7f4   : > { %v2188_v12 = vmul.f32 0.5, %v2187_v11 }
 0x7f6   : > { %v2189_v14 = vmul.f32 %v2188_v12, %v2176_v1 }
 0x7f8   : > { %v2190_v15 = vpack.c.bf16 %v2189_v14, %v2189_v14 }
 0x7fa   : > { %2709 = vmatmul.mubr.bf16.vlgmr.msra.gmra.mxu1 %v2190_v15 }
 0x8ba   : > { %v2295_v18 = vpop.f32.mrf.mxu1 }
 0x8bb   : > { %v2296_v44 = vadd.f32 %v2295_v18, %v2212_v17 }
 0x8bc   : > { %v2710_v19 = vpop.f32.mrf.mxu1 }
 0x8bd   : > { %v2301_v20 = vadd.f32 %v2296_v44, %v2114_v51 }
 0x8be   : > { %v2298_v56 = vpop.f32.mrf.mxu1 }
 0x8bf   : > { %v2302_v21 = vsel %vm713_vm1, %v2301_v20, 0.0 }
 0x8c0   : > { %2303 = vadd.xlane.f32.xlu0 %v2302_v21  ;;  %v2711_v23 = vpop.f32.mrf.mxu1 }
 0x949   : > { %v2304_v24 = vpop.xlane.xlu0 %2303 }
 0x94a   : > { %v2305_v25 = vmul.f32 0.03125, %v2304_v24 }
 0x94c   : > { %v2306_v22 = vsub.f32 %v2301_v20, %v2305_v25 }
 0x94e   : > { %v2307_v26 = vmul.f32 %v2306_v22, %v2306_v22 }
 0x950   : > { %v2308_v27 = vsel %vm713_vm1, %v2307_v26, 0.0 }
 0x951   : > { %2309 = vadd.xlane.f32.xlu0 %v2308_v27 }
 0x952   : > { %2906 = shalt.err (!%p2903_p6)
}
 0x953   : > { %s2907_s26 = scalar_lea.hbm %s3567_s28, 256  ;;  %s2911_s21 = scalar_lea.hbm %s3706_s3, 512 }
 0x954   : > { %p2908_p7 = scmp.ne.s32.totalorder %s3567_s28, %s2907_s26  ;;  %p2912_p4 = scmp.lt.s32.totalorder %s3567_s28, %s3706_s3 }
 0x955   : > { %p2913_p10 = scmp.lt.s32.totalorder %s2911_s21, %s2907_s26 }
 0x956   : > { %p2909_p1 = pnand %p2908_p7, %p3177_p9 }
 0x957   : > { %p2914_p8 = por %p2913_p10, %p2912_p4 }
 0x958   : > { %p2910_p2 = pneg %p2909_p1 }
 0x95a   : > { %p2915_p0 = pnand %p2914_p8, %p2910_p2 }
 0x95c   : > { %2918 = shalt.err (!%p2915_p0)
}
 0x95d   : > { %s3023_s16 = smov 64   ;;  %s3024_s1 = smov 4   ;;  %vm2332_vm7 = vcmask 257024  }
 0x95e   : > { %s3707_s29 = scalar_lea.sflag [#allocation11], %s3234_s24  ;;  %s3708_s20 = sld [smem:[#allocation30_spill]] }
 0x95f   : > { %2717 = dma.vmem_to_hbm [thread:$0]  (%p3177_p9), %s3569_s0, 256, %s3567_s28, %s3707_s29, %s3023_s16, %s3023_s16, %s3024_s1  }
 0x960   : > { %s3709_s17 = sld [smem:[#allocation31_spill]]  ;;  %s2558_s3 = sshll.u32 %s3703_s18, 6 }
 0x961   : > { %s677_s4 = scalar_lea.vmem [#allocation9], %s3237_s2  ;;  %s3710_s1 = sld [smem:[#allocation32_spill]] }
 0x962   : > { %s2354_s0 = sshll.u32 %s677_s4, 4  ;;  %s2335_s27 = scalar_lea.sflag [#allocation6], %s3234_s24  ;;  %s2355_s0 = int_to_ptr.vmem [resolvable:$true] %s2354_s0 }
 0x963   : > { %s2919_s26 = scalar_lea.vmem %s2355_s0, 64 }
 0x964   : > { %v2554_v31 = vld [vmem:[%s3708_s20] ss:$0 sm:$0xff]  ;;  %p2920_p3 = scmp.ne.s32.totalorder %s2355_s0, %s2919_s26  ;;  %s3025_s20 = smov [#allocation9]  }
 0x965   : > { %s2923_s25 = sshll.u32 %s3025_s20, 4  ;;  %s2924_s25 = int_to_ptr.vmem [resolvable:$false] %s2923_s25 }
 0x966   : > { %v2555_v34 = vld [vmem:[%s3709_s17] ss:$0 sm:$0xff]  ;;  %p2921_p13 = pnand %p2920_p3, %p3177_p9  ;;  %s2925_s2 = scalar_lea.vmem %s2924_s25, 128 }
 0x967   : > { %s3711_s29 = smov %s3710_s1  ;;  %s2352_s5 = scalar_lea.hbm %s3710_s1, %s2558_s3 }
 0x968   : > { %p2922_p5 = pneg %p2921_p13  ;;  %p2926_p12 = scmp.lt.s32.totalorder %s2355_s0, %s2924_s25 }
 0x969   : > { %p2927_p6 = scmp.lt.s32.totalorder %s2925_s2, %s2919_s26 }
 0x96b   : > { %p2928_p7 = por %p2927_p6, %p2926_p12 }
 0x96d   : > { %p2929_p1 = pnand %p2928_p7, %p2922_p5 }
 0x9da   : > { %v2310_v13 = vpop.xlane.xlu0 %2309 }
 0x9db   : > { %v2311_v28 = vmul.f32 0.03125, %v2310_v13 }
 0x9dd   : > { %v2312_v29 = vadd.f32 1e-06, %v2311_v28 }
 0x9df   : > { %2835 = vrsqrt.f32 %v2312_v29 }
 0x9ec   : > { %v2836_v30 = vpop.eup %2835 }
 0x9ed   : > { %v2314_v32 = vmul.f32 %v2836_v30, %v2306_v22 }
 0x9ef   : > { %v2322_v35 = vmul.f32 %v2554_v31, %v2314_v32 }
 0x9f1   : > { %v2330_v36 = vadd.f32 %v2555_v34, %v2322_v35 }
 0x9f3   : > { %v2331_v37 = vpack.c.bf16 %v2330_v36, %v2330_v36 }
 0x9f5   : > { %2333 = vst.msk [vmem:[%s677_s4] sm:$0xf] %vm2332_vm7, %v2331_v37 }
 0x9f6   : > { %2932 = shalt.err (!%p2929_p1)
}
 0x9f7   : > { %s2933_s18 = scalar_lea.hbm %s2352_s5, 64  ;;  %s2937_s3 = scalar_lea.hbm %s3711_s29, 128 }
 0x9f8   : > { %p2934_p2 = scmp.ne.s32.totalorder %s2352_s5, %s2933_s18  ;;  %p2938_p8 = scmp.lt.s32.totalorder %s2352_s5, %s3711_s29 }
 0x9f9   : > { %p2939_p0 = scmp.lt.s32.totalorder %s2937_s3, %s2933_s18 }
 0x9fa   : > { %p2935_p4 = pnand %p2934_p2, %p3177_p9 }
 0x9fb   : > { %p2940_p3 = por %p2939_p0, %p2938_p8 }
 0x9fc   : > { %p2936_p10 = pneg %p2935_p4 }
 0x9fe   : > { %p2941_p13 = pnand %p2940_p3, %p2936_p10 }
 0xa00   : > { %2944 = shalt.err (!%p2941_p13)
}
 0xa01   : > { %2716 = dma.vmem_to_hbm [thread:$0]  (%p3177_p9), %s2355_s0, 64, %s2352_s5, %s2335_s27  }
 0xa02 PF: > { %s3712_s28 = sld [smem:[#allocation16_spill]]  ;;  %p3714_p5 = scmp.ge.s32.totalorder %s3007_s22, 2 }
 0xa04   : > { %p2728_p12 = pnand %p3714_p5, %p3184_p11 }
 0xa06   : > { %p2729_p6 = pneg %p2728_p12 }
 0xa08   : > { %s2383_s1 = sand.u32 1, %s3712_s28  }
 0xa09   : > { %s2384_s26 = scalar_lea.sflag [#allocation6], %s2383_s1 }
 0xa0a   : > { %2978 = dma.done.wait (%p2729_p6), %s2384_s26, 64  }
 0xa0b   : > { %2980 = vsyncadd (%p2729_p6), %s2384_s26, 4294967232  ;;  %s2393_s20 = scalar_lea.sflag [#allocation11], %s2383_s1 }
 0xa0c   : > { %2982 = dma.done.wait (%p2729_p6), %s2393_s20, 256  }
 0xa0d   : > { %2984 = vsyncadd (%p2729_p6), %s2393_s20, 4294967040  ;;  %s42_s22 = sadd.s32 1, %s3007_s22   ;;  %s3715_s5 = sld [smem:[#allocation17_spill]] }
 0xa0e   : > { %p39_p7 = scmp.ge.s32.totalorder %s42_s22, 4   ;;  %s3716_s20 = sld [smem:[#allocation22_spill]] }
 0xa0f   : > { %s3717_s21 = sld [smem:[#allocation19_spill]]  ;;  %s3719_s0 = smov %s2991_s30 }
 0xa10   : > { %s3718_s1 = sld [smem:[#allocation20_spill]]  ;;  %41 = sbr.rel (!%p39_p7) target bundleno = 21 (0x15), region = 171 }
 0xa13   : > { %s3720_s30 = smov %s3715_s5 }
 0xa15   :  { %2398 = vsyncpa [#allocation5], 1 }
 0xa16   :  { %2400 = vsyncpa [#allocation5 + $0x1], 1 }
 0xa17   :  { %2401 = vsyncpa [#allocation8], 1 }
 0xa18   :  { %2403 = vsyncpa [#allocation8 + $0x1], 1 }
 0xa19   :  { %2404 = vsyncpa [#allocation6], 1 }
 0xa1a   :  { %2406 = vsyncpa [#allocation6 + $0x1], 1 }
 0xa1b   :  { %2407 = vsyncpa [#allocation11], 1 }
 0xa1c   :  { %2409 = vsyncpa [#allocation11 + $0x1], 1 }

</bundles_post_ra>
